<compile_context>
chip_gen: v7x
topology: tpu7x:2x2x1
jax: 0.10.0
libtpu: 0.0.40
codegen_flags: <defaults>
</compile_context>

<pallas_src>
import functools

import numpy as np
import jax
import jax.numpy as jnp
from jax.experimental import pallas as pl
from jax.experimental.pallas import tpu as pltpu


_F32_EPS = float(np.finfo(np.float32).eps)

# Single-buffer kwargs for constant operands (index_map is always (0, 0), so no
# double-buffering is needed).  Guarded so the script also runs on older jax.
_SINGLE_BUFFER = {"pipeline_mode": pl.Buffered(1)} if hasattr(pl, "Buffered") else {}


# ----------------------------------------------------------------------------
# Pallas kernels
# ----------------------------------------------------------------------------
def _window_spectrum_kernel(frames_ref, f0_ref, trig_ref, ps_ref, *,
                            sample_rate, fft_length, m_pad):
    """F0-adaptive Hanning windowing + one-sided power spectrum (|DFT|^2 via MXU)."""
    frames = frames_ref[...]                                    # (TN, L) f32
    f0 = f0_ref[...]                                            # (TN, 1) f32
    _, L = frames.shape

    # time index relative to the frame centre, kept as a single (1, L) row
    base = (jax.lax.broadcasted_iota(jnp.int32, (1, L), 1).astype(jnp.float32)
            - float(fft_length // 2))                           # (1, L)
    half = jnp.floor(1.5 * sample_rate / f0 + 0.5)              # (TN, 1) round(1.5*fs/f0)
    ang = base * ((jnp.pi / (1.5 * sample_rate)) * f0)          # (TN, L)
    win = jnp.where(jnp.abs(base) <= half, 0.5 * jnp.cos(ang) + 0.5, 0.0)
    # normalize window power (normalize_power=True)
    win = win * jax.lax.rsqrt(jnp.sum(win * win, axis=-1, keepdims=True))

    # TODO(synk): reference adds randn*1e-12 safeguard noise to the waveform;
    # omitted (deterministic) -- negligible at this magnitude.
    wav = frames * win
    # weighted DC removal
    coeff = jnp.sum(wav, axis=-1, keepdims=True) / jnp.sum(win, axis=-1, keepdims=True)
    wav = wav - win * coeff

    # fused [cos | sin] DFT matrix: one MXU matmul, lane-dense (TN, 2*Mp) result
    trig = trig_ref[...]                                        # (L, 2*Mp) bf16/f32
    reim = jnp.dot(wav.astype(trig.dtype), trig, preferred_element_type=jnp.float32)
    re = reim[:, :m_pad]
    im = reim[:, m_pad:]
    # sinm holds +sin instead of rfft's -sin imaginary part; harmless (squared).
    ps_ref[...] = re * re + im * im                             # power spectrum


def _envelope_kernel(ps_ref, f0_ref, cir_ref, chf_ref, out_ref, *,
                     sample_rate, q1, out_scale, out_exp):
    """log -> real cepstrum (irfft matmul) -> liftering -> hfft matmul -> formatter."""
    ps = ps_ref[...]                                            # (TN, Mp)
    f0 = f0_ref[...]                                            # (TN, 1)
    _, m_pad = ps.shape

    # TODO(synk): reference adds randn().abs() * float32-eps; a constant eps is an
    # equivalent (deterministic) log(0) safeguard.
    log_ps = jnp.log(ps + _F32_EPS)

    cir = cir_ref[...]                                          # (Mp, Mp) irfft matrix
    cep = jnp.dot(log_ps.astype(cir.dtype), cir, preferred_element_type=jnp.float32)

    k = jax.lax.broadcasted_iota(jnp.int32, (1, m_pad), 1)      # (1, Mp)
    quef = k.astype(jnp.float32) * (1.0 / sample_rate)          # (1, Mp)
    z = (jnp.pi * f0) * quef                                    # (TN, Mp)
    z_safe = jnp.where(k == 0, 1.0, z)
    smoothing = jnp.where(k == 0, 1.0, jnp.sin(z_safe) / z_safe)
    compensation = (1.0 - 2.0 * q1) + (2.0 * q1) * jnp.cos(2.0 * z)

    lifted = cep * smoothing * compensation
    chf = chf_ref[...]                                          # (Mp, Mp) hfft matrix
    log_env = jnp.dot(lifted.astype(chf.dtype), chf, preferred_element_type=jnp.float32)
    log_env = log_env * out_scale
    out_ref[...] = jnp.exp(log_env) if out_exp else log_env


# ----------------------------------------------------------------------------
# Constant matrices (numpy, built once)
# ----------------------------------------------------------------------------
def _build_matrices(fft_length, m_pad, dtype):
    L = fft_length
    M = L // 2 + 1
    n = np.arange(L, dtype=np.float64)[:, None]
    k = np.arange(M, dtype=np.float64)[None, :]
    ang = 2.0 * np.pi * n * k / L
    trig = np.zeros((L, 2 * m_pad), np.float64)
    trig[:, :M] = np.cos(ang)                                   # rfft real part
    trig[:, m_pad:m_pad + M] = np.sin(ang)                      # rfft imag part (sign-free)

    r = np.arange(M, dtype=np.float64)[:, None]
    c = np.arange(M, dtype=np.float64)[None, :]
    w = np.full((M, 1), 2.0)
    w[0, 0] = 1.0
    w[-1, 0] = 1.0
    half_cos = w * np.cos(2.0 * np.pi * r * c / L)
    cir = np.zeros((m_pad, m_pad), np.float64)
    chf = np.zeros((m_pad, m_pad), np.float64)
    cir[:M, :M] = half_cos / L                                  # irfft(one-sided real)[:M]
    chf[:M, :M] = half_cos                                      # hfft(real)[:M]
    # zero rows/cols outside (M, M) guarantee padded lanes never contribute / explode
    return (jnp.asarray(trig, dtype), jnp.asarray(cir, dtype), jnp.asarray(chf, dtype))


# ----------------------------------------------------------------------------
# WORLD spectral corrections (plain JAX glue; data-dependent gathers)
# ----------------------------------------------------------------------------
def _dc_correction(ps, f0, sample_rate, fft_length):
    # WORLD DCCorrection: mirror the spectrum around f0 for bins below f0.
    M = fft_length // 2 + 1
    rate = sample_rate / fft_length
    k = jnp.arange(M, dtype=jnp.float32)
    pos = f0 / rate - k                                         # bin position of (f0 - f_k)
    idx0 = jnp.clip(jnp.floor(pos), 0.0, M - 2).astype(jnp.int32)
    frac = pos - idx0.astype(jnp.float32)
    lo = jnp.take_along_axis(ps, idx0, axis=-1)
    hi = jnp.take_along_axis(ps, idx0 + 1, axis=-1)
    replica = lo + (hi - lo) * frac
    mask = k <= jnp.floor(f0 / rate)
    return ps + jnp.where(mask, replica, 0.0)


def _linear_smoothing(ps, width, sample_rate, fft_length):
    # WORLD LinearSmoothing: boxcar average of `width` Hz over the reflection-padded
    # spectrum via cumulative integral + linear interpolation.
    M = fft_length // 2 + 1
    rate = sample_rate / fft_length
    pad = M - 1
    j = jnp.arange(-pad, M + pad)
    refl = jnp.abs(j)
    refl = jnp.where(refl > M - 1, 2 * (M - 1) - refl, refl)
    seg = jnp.cumsum(ps[..., refl], axis=-1) * rate
    seg_n = seg.shape[-1]

    def interp(q):
        posf = q / rate + (pad - 0.5)
        base = jnp.clip(jnp.floor(posf), 0.0, seg_n - 2).astype(jnp.int32)
        frac = posf - base.astype(jnp.float32)
        lo = jnp.take_along_axis(seg, base, axis=-1)
        hi = jnp.take_along_axis(seg, base + 1, axis=-1)
        return lo + (hi - lo) * frac

    freq = jnp.arange(M, dtype=jnp.float32) * rate
    high_levels = interp(freq + 0.5 * width)
    low_levels = interp(freq - 0.5 * width)
    return (high_levels - low_levels) / width


# ----------------------------------------------------------------------------
# Wrapper
# ----------------------------------------------------------------------------
def _choose_frame_tile(bn, requested):
    """Pick a row tile: multiple of 8, and shrink when BN is small so the grid
    has >= 2 steps (keeps both v7x TensorCores busy)."""
    tile = int(requested)
    if bn <= tile:
        tile = max(8, ((-(-bn // 2)) + 7) // 8 * 8)
    return tile


def pitch_adaptive_spectral_analysis(x, f0, *, frame_period, sample_rate, fft_length,
                                     out_format="power", q1=-0.15, default_f0=500.0,
                                     frame_tile=256, use_bf16_matmul=True):
    assert 1 <= frame_period
    assert 8000 <= sample_rate
    f_min = 3.0 * sample_rate / (fft_length - 3)
    assert f_min <= default_f0
    min_fft_length = 2 ** (1 + int(np.log(3 * sample_rate / f_min + 1) / np.log(2)))
    assert min_fft_length <= fft_length

    L = fft_length
    M = L // 2 + 1
    Mp = ((M + 127) // 128) * 128        # lane-pad frequency axis (513 -> 640)

    B, T = x.shape
    N = f0.shape[-1]
    BN = B * N
    frame_tile = _choose_frame_tile(BN, frame_tile)
    BNp = pl.cdiv(BN, frame_tile) * frame_tile   # row-pad so the tile divides evenly

    if out_format in (0, "db"):
        out_scale, out_exp = 10.0 / float(np.log(10.0)), False
    elif out_format in (1, "log-magnitude"):
        out_scale, out_exp = 0.5, False
    elif out_format in (2, "magnitude"):
        out_scale, out_exp = 0.5, True
    elif out_format in (3, "power"):
        out_scale, out_exp = 1.0, True
    else:
        raise ValueError(f"out_format {out_format} is not supported.")

    x = x.astype(jnp.float32)
    f0 = jnp.where(f0 <= f_min, default_f0, f0).astype(jnp.float32)
    f0col = f0.reshape(BN, 1)

    # Frame extraction: frame n is centred at sample n * frame_period (WORLD origin).
    # TODO(synk): extract frames in-kernel from a contiguous DMA'd span of x
    # (memory_space=pl.ANY) to avoid the ~L/frame_period x inflation of input HBM traffic.
    centers = jnp.arange(N) * frame_period
    offsets = jnp.arange(L) - L // 2
    idx = jnp.clip(centers[:, None] + offsets[None, :], 0, T - 1)
    frames = x[:, idx].reshape(BN, L)

    pad_rows = BNp - BN
    if pad_rows:
        frames = jnp.concatenate(
            [frames, jnp.zeros((pad_rows, L), jnp.float32)], axis=0)
        f0col = jnp.concatenate(
            [f0col, jnp.full((pad_rows, 1), default_f0, jnp.float32)], axis=0)

    mat_dtype = jnp.bfloat16 if use_bf16_matmul else jnp.float32
    trig, cir, chf = _build_matrices(L, Mp, mat_dtype)

    grid = (BNp // frame_tile,)

    def row_spec(cols):
        return pl.BlockSpec((frame_tile, cols), lambda i: (i, 0))

    def const_spec(shape):
        # constant operand: same block every step -> single-buffer it
        return pl.BlockSpec(shape, lambda i: (0, 0), **_SINGLE_BUFFER)

    cparams = pltpu.CompilerParams(dimension_semantics=("parallel",),
                                   vmem_limit_bytes=48 * 1024 * 1024)

    # ---- kernel 1: F0-adaptive windowing + power spectrum -------------------
    ps = pl.pallas_call(
        functools.partial(_window_spectrum_kernel,
                          sample_rate=float(sample_rate), fft_length=L, m_pad=Mp),
        out_shape=jax.ShapeDtypeStruct((BNp, Mp), jnp.float32),
        grid_spec=pltpu.PrefetchScalarGridSpec(
            num_scalar_prefetch=0, grid=grid,
            in_specs=[row_spec(L), row_spec(1), const_spec((L, 2 * Mp))],
            out_specs=row_spec(Mp)),
        compiler_params=cparams,
    )(frames, f0col, trig)

    # ---- WORLD spectral corrections (data-dependent gathers -> plain JAX) ---
    # TODO(synk): fold dc_correction / linear_smoothing into the envelope-kernel
    # prologue (needs in-kernel gather + cumsum) to remove these HBM round trips.
    ps = ps[:, :M]
    ps = _dc_correction(ps, f0col, sample_rate, L)
    ps = _linear_smoothing(ps, f0col * (2.0 / 3.0), sample_rate, L)
    # lane-pad back to Mp with 1.0 so log(padded) == 0 (padded cir rows are zero anyway)
    ps = jnp.pad(ps, ((0, 0), (0, Mp - M)), constant_values=1.0)

    # ---- kernel 2: cepstral smoothing with spectral recovery -----------------
    env = pl.pallas_call(
        functools.partial(_envelope_kernel,
                          sample_rate=float(sample_rate), q1=float(q1),
                          out_scale=float(out_scale), out_exp=bool(out_exp)),
        out_shape=jax.ShapeDtypeStruct((BNp, Mp), jnp.float32),
        grid_spec=pltpu.PrefetchScalarGridSpec(
            num_scalar_prefetch=0, grid=grid,
            in_specs=[row_spec(Mp), row_spec(1),
                      const_spec((Mp, Mp)), const_spec((Mp, Mp))],
            out_specs=row_spec(Mp)),
        compiler_params=cparams,
    )(ps, f0col, cir, chf)

    return env[:BN, :M].reshape(B, N, M)


# ----------------------------------------------------------------------------
if __name__ == "__main__":
    frame_period = 80
    sample_rate = 8000
    fft_length = 1024          # module requires fft_length >= 1024
    B = 2
    T = 640
    N = T // frame_period      # 8 frames

    key = jax.random.PRNGKey(0)
    kx, kf = jax.random.split(key)
    x = jax.random.normal(kx, (B, T), dtype=jnp.float32)
    f0 = jax.random.uniform(kf, (B, N), minval=0.0, maxval=400.0, dtype=jnp.float32)

    out = pitch_adaptive_spectral_analysis(
        x, f0, frame_period=frame_period, sample_rate=sample_rate,
        fft_length=fft_length)
    out = jax.block_until_ready(out)

    assert out.shape == (B, N, fft_length // 2 + 1), out.shape
    assert bool(jnp.all(jnp.isfinite(out)))
    print("KERNEL_OK")
</pallas_src>

<mosaic_0001>
module attributes {stable_mosaic.version = 11 : i64} {
  func.func @_window_spectrum_kernel(%arg0: i32, %arg1: memref<8x1024xf32, #tpu.memory_space<vmem>>, %arg2: memref<8x1xf32, #tpu.memory_space<vmem>>, %arg3: memref<1024x1280xbf16, #tpu.memory_space<vmem>>, %arg4: memref<8x640xf32, #tpu.memory_space<vmem>>) attributes {dimension_semantics = [#tpu.dimension_semantics<parallel>], iteration_bounds = array<i64: 2>, scalar_prefetch = 0 : i64, scratch_operands = 0 : i64, tpu.core_type = #tpu.core_type<tc>, window_params = [{transform_indices = @transform_0, window_bounds = array<i64: 8, 1024>}, {transform_indices = @transform_1, window_bounds = array<i64: 8, 1>}, {pipeline_mode = #tpu.pipeline_mode<synchronous>, transform_indices = @transform_2, window_bounds = array<i64: 1024, 1280>}, {transform_indices = @transform_3, window_bounds = array<i64: 8, 640>}]} {
    %c0 = arith.constant 0 : index
    %c0_0 = arith.constant 0 : index
    %0 = vector.load %arg1[%c0, %c0_0] : memref<8x1024xf32, #tpu.memory_space<vmem>>, vector<8x1024xf32>
    %c0_1 = arith.constant 0 : index
    %c0_2 = arith.constant 0 : index
    %1 = vector.load %arg2[%c0_1, %c0_2] : memref<8x1xf32, #tpu.memory_space<vmem>>, vector<8x1xf32>
    %2 = tpu.iota {dimensions = array<i32: 1>} : vector<1x1024xi32>
    %3 = arith.sitofp %2 : vector<1x1024xi32> to vector<1x1024xf32>
    %cst = arith.constant 5.120000e+02 : f32
    %4 = vector.broadcast %cst : f32 to vector<1x1024xf32>
    %5 = arith.subf %3, %4 : vector<1x1024xf32>
    %cst_3 = arith.constant 1.200000e+04 : f32
    %6 = vector.broadcast %cst_3 : f32 to vector<8x1xf32>
    %7 = arith.divf %6, %1 : vector<8x1xf32>
    %cst_4 = arith.constant 5.000000e-01 : f32
    %8 = vector.broadcast %cst_4 : f32 to vector<8x1xf32>
    %9 = arith.addf %7, %8 : vector<8x1xf32>
    %10 = math.floor %9 : vector<8x1xf32>
    %cst_5 = arith.constant 2.61799374E-4 : f32
    %11 = vector.broadcast %cst_5 : f32 to vector<8x1xf32>
    %12 = arith.mulf %11, %1 : vector<8x1xf32>
    %13 = vector.broadcast %5 : vector<1x1024xf32> to vector<8x1024xf32>
    %14 = vector.broadcast %12 : vector<8x1xf32> to vector<8x1024xf32>
    %15 = arith.mulf %13, %14 : vector<8x1024xf32>
    %16 = math.absf %5 : vector<1x1024xf32>
    %17 = vector.broadcast %16 : vector<1x1024xf32> to vector<8x1024xf32>
    %18 = vector.broadcast %10 : vector<8x1xf32> to vector<8x1024xf32>
    %19 = arith.cmpf ole, %17, %18 : vector<8x1024xf32>
    %20 = math.cos %15 : vector<8x1024xf32>
    %cst_6 = arith.constant 5.000000e-01 : f32
    %21 = vector.broadcast %cst_6 : f32 to vector<8x1024xf32>
    %22 = arith.mulf %21, %20 : vector<8x1024xf32>
    %cst_7 = arith.constant 5.000000e-01 : f32
    %23 = vector.broadcast %cst_7 : f32 to vector<8x1024xf32>
    %24 = arith.addf %22, %23 : vector<8x1024xf32>
    %cst_8 = arith.constant 0.000000e+00 : f32
    %25 = vector.broadcast %cst_8 : f32 to vector<8x1024xf32>
    %26 = arith.select %19, %24, %25 : vector<8x1024xi1>, vector<8x1024xf32>
    %27 = arith.mulf %26, %26 : vector<8x1024xf32>
    %cst_9 = arith.constant dense<0.000000e+00> : vector<8xf32>
    %28 = vector.multi_reduction <add>, %27, %cst_9 [1] : vector<8x1024xf32> to vector<8xf32>
    %29 = vector.shape_cast %28 : vector<8xf32> to vector<8x1xf32>
    %30 = math.rsqrt %29 : vector<8x1xf32>
    %31 = vector.broadcast %30 : vector<8x1xf32> to vector<8x1024xf32>
    %32 = arith.mulf %26, %31 : vector<8x1024xf32>
    %33 = arith.mulf %0, %32 : vector<8x1024xf32>
    %cst_10 = arith.constant dense<0.000000e+00> : vector<8xf32>
    %34 = vector.multi_reduction <add>, %33, %cst_10 [1] : vector<8x1024xf32> to vector<8xf32>
    %35 = vector.shape_cast %34 : vector<8xf32> to vector<8x1xf32>
    %cst_11 = arith.constant dense<0.000000e+00> : vector<8xf32>
    %36 = vector.multi_reduction <add>, %32, %cst_11 [1] : vector<8x1024xf32> to vector<8xf32>
    %37 = vector.shape_cast %36 : vector<8xf32> to vector<8x1xf32>
    %38 = arith.divf %35, %37 : vector<8x1xf32>
    %39 = vector.broadcast %38 : vector<8x1xf32> to vector<8x1024xf32>
    %40 = arith.mulf %32, %39 : vector<8x1024xf32>
    %41 = arith.subf %33, %40 : vector<8x1024xf32>
    %c0_12 = arith.constant 0 : index
    %c0_13 = arith.constant 0 : index
    %42 = vector.load %arg3[%c0_12, %c0_13] : memref<1024x1280xbf16, #tpu.memory_space<vmem>>, vector<1024x1280xbf16>
    %43 = arith.truncf %41 : vector<8x1024xf32> to vector<8x1024xbf16>
    %cst_14 = arith.constant dense<0.000000e+00> : vector<8x1280xf32>
    %44 = tpu.matmul %43, %42, %cst_14 {dimension_numbers = #tpu.dot_dimension_numbers<[1], [0], [0], [1], [0, 0, 1, 1], [], []>} : vector<8x1024xbf16>, vector<1024x1280xbf16>, vector<8x1280xf32> -> vector<8x1280xf32>
    %45 = vector.extract_strided_slice %44 {offsets = [0, 0], sizes = [8, 640], strides = [1, 1]} : vector<8x1280xf32> to vector<8x640xf32>
    %46 = vector.extract_strided_slice %44 {offsets = [0, 640], sizes = [8, 640], strides = [1, 1]} : vector<8x1280xf32> to vector<8x640xf32>
    %47 = arith.mulf %45, %45 : vector<8x640xf32>
    %48 = arith.mulf %46, %46 : vector<8x640xf32>
    %49 = arith.addf %47, %48 : vector<8x640xf32>
    %c0_15 = arith.constant 0 : index
    %c0_16 = arith.constant 0 : index
    %50 = vector.load %arg4[%c0_15, %c0_16] : memref<8x640xf32, #tpu.memory_space<vmem>>, vector<8x640xf32>
    tpu.vector_store %arg4[%c0_15, %c0_16], %49 {strides = array<i32>} : memref<8x640xf32, #tpu.memory_space<vmem>>, vector<8x640xf32>,
    return
  }
  func.func @transform_0(%arg0: i32) -> (i32, i32) {
    %c0_i32 = arith.constant 0 : i32
    %c0_i32_0 = arith.constant 0 : i32
    return %arg0, %c0_i32 : i32, i32
  }
  func.func @transform_1(%arg0: i32) -> (i32, i32) {
    %c0_i32 = arith.constant 0 : i32
    %c0_i32_0 = arith.constant 0 : i32
    return %arg0, %c0_i32 : i32, i32
  }
  func.func @transform_2(%arg0: i32) -> (i32, i32) {
    %c0_i32 = arith.constant 0 : i32
    %c0_i32_0 = arith.constant 0 : i32
    %c0_i32_1 = arith.constant 0 : i32
    return %c0_i32, %c0_i32_0 : i32, i32
  }
  func.func @transform_3(%arg0: i32) -> (i32, i32) {
    %c0_i32 = arith.constant 0 : i32
    %c0_i32_0 = arith.constant 0 : i32
    return %arg0, %c0_i32 : i32, i32
  }
}

</mosaic_0001>

<bundles_post_ra>
// kernel: tpu_custom_call.1
= control target key start
LH: loop header
LB: loop body
LE: loop exit
PB: predicated region body
PF: predicated region fallthrough
CT: control target
= control target key end

     0   :  { %8 = vsyncpa [#allocation3], 0  ;;  %s9226_s0 = inlined_call_operand.hbm [shape: f32[16,1024], index: 0, kind: input, shape index: {}]   ;;  %s9227_s1 = inlined_call_operand.vmem [shape: f32[16,1], index: 1, kind: input, shape index: {}]   ;;  %s9228_s2 = inlined_call_operand.hbm [shape: bf16[1024,1280], index: 2, kind: input, shape index: {}]   ;;  %s9229_s3 = inlined_call_operand.hbm [shape: f32[16,640], index: 3, kind: output, shape index: {}]  }
   0x1   :  { %10 = vsyncpa [#allocation3 + $0x1], 0 }
   0x2   :  { %11 = vsyncpa [#allocation6], 0 }
   0x3   :  { %12 = vsyncpa [#allocation4], 0 }
   0x4   :  { %14 = vsyncpa [#allocation4 + $0x1], 0  ;;  %s8019_s12 = smov 0   ;;  %s8021_s13 = smov 0  }
   0x5   :  { %s8023_s14 = smov 0   ;;  %s8025_s15 = smov 0  }
   0x6 LB: > { %s8040_s16 = sadd.s32 4294967295, %s7985_s15   ;;  %s6005_s17 = sadd.s32 4294967294, %s7985_s15   ;;  %s7985_s15 = sphi %s8025_s15, %s9326_s15   ;;  %s7981_s14 = sphi %s8023_s14, %s9325_s14   ;;  %s7977_s13 = sphi %s8021_s13, %s9324_s13   ;;  %s7973_s12 = sphi %s8019_s12, %s9323_s12  }
   0x7   : > { %p40_p0 = scmp.ne.s32.totalorder %s7977_s13, %s7973_s12  ;;  %p9230_p1 = scmp.eq.s32.totalorder %s8040_s16, 0 }
   0x8   : > { %p117_p3 = scmp.eq.s32.totalorder %s6005_s17, 1  ;;  %p6006_p5 = scmp.ge.s32.totalorder %s7985_s15, 1 }
   0x9   : > { %p8049_p4 = por %p9230_p1, %p40_p0  ;;  %p124_p7 = scmp.lt.s32.totalorder %s7985_s15, 3 }
   0xa   : > { %p8054_p6 = por %p117_p3, %p40_p0  ;;  %s7987_s21 = smov [#allocation5]  }
   0xb   : > { %s9258_s18 = scalar_select %p8049_p4, 1, 0 }
   0xc   : > { %s9259_s19 = scalar_select %p8054_p6, 1, 0 }
   0xd   : > { %p8059_p8 = pnand %p6006_p5, %p124_p7  ;;  %s136_s22 = sshll.u32 %s7987_s21, 4  ;;  %s8063_s22 = int_to_ptr.vmem [resolvable:$true] %s136_s22 }
   0xe   : > { %s8075_s24 = sadd.s32 1, %s7985_s15   ;;  %s27_s25 = sadd.s32 1, %s7981_s14 }
   0xf   : > { %s9260_s20 = scalar_select %p8059_p8, 1, 0 }
  0x10   : > { %p6800_p9 = pneg %p8059_p8  ;;  %s24_s26 = ssub.s32 %s7985_s15, %s8075_s24 }
  0x11   : > { %s7857_s29 = scalar_lea.hbm %s9228_s2, 81920 }
  0x12   : > { %p8070_p11 = pnand %p6800_p9, %p9230_p1  ;;  %p7858_p12 = scmp.ne.s32.totalorder %s9228_s2, %s7857_s29 }
  0x13   : > { %p7864_p5 = scmp.lt.u32.totalorder %s7857_s29, %s9228_s2 }
  0x14   : > { %p7859_p13 = pneg %p8070_p11 }
  0x16   : > { %p7860_p0 = pnand %p7859_p13, %p7858_p12 }
  0x18   : > { %p7861_p3 = pneg %p7860_p0 }
  0x1a   : > { %p7866_p7 = pnand %p7864_p5, %p7861_p3 }
  0x1c   : > { %7869 = shalt.err (!%p7866_p7)
}
  0x1d   : > { %s7870_s7 = scalar_lea.vmem %s8063_s22, 81920  ;;  %p7878_p2 = scmp.lt.s32.totalorder %s8063_s22, %s8063_s22 }
  0x1e   : > { %p7871_p9 = scmp.ne.s32.totalorder %s8063_s22, %s7870_s7  ;;  %p7879_p6 = scmp.lt.s32.totalorder %s7870_s7, %s7870_s7 }
  0x20   : > { %p7873_p10 = pnand %p7871_p9, %p7859_p13  ;;  %p7880_p4 = por %p7879_p6, %p7878_p2 }
  0x22   : > { %p7874_p1 = pneg %p7873_p10 }
  0x24   : > { %p7881_p8 = pnand %p7880_p4, %p7874_p1 }
  0x26   : > { %7884 = shalt.err (!%p7881_p8)
}
  0x27   : > { %s7988_s8 = smov 640   ;;  %s7989_s9 = smov 40  }
  0x28   : > { %6803 = dma.hbm_to_vmem [thread:$0]  (!%p8070_p11), %s9228_s2, 81920, %s8063_s22, [#allocation6], %s7988_s8, %s7988_s8, %s7989_s9  }
  0x29   : > { %p25_p2 = scmp.eq.s32.totalorder %s24_s26, 0  ;;  %p34_p1 = scmp.ne.s32.totalorder %s7981_s14, %s7977_s13 }
  0x2a   : > { %p35_p4 = scmp.eq.s32.totalorder %s7985_s15, 0  ;;  %p6813_p6 = scmp.lt.s32.totalorder %s7985_s15, 2 }
  0x2b   : > { %s8106_s17 = scalar_select %p25_p2, %s7981_s14, %s27_s25  }
  0x2c   : > { %p36_p8 = por %p35_p4, %p34_p1  ;;  %p9262_p10 = scmp.eq.s32.totalorder %s8040_s16, 1 }
  0x2d   : > { %s150_s27 = sand.u32 1, %s7981_s14   ;;  %s6699_s28 = sshll.u32 %s7985_s15, 10 }
  0x2e   : > { %p8110_p12 = por %p9262_p10, %p34_p1  ;;  %s6009_s29 = sshll.u32 %s150_s27, 6 }
  0x2f   : > { %s8119_s4 = scalar_lea.hbm %s9226_s0, %s6699_s28  ;;  %s154_s22 = scalar_lea.vmem [#allocation2], %s6009_s29 }
  0x30   : > { %s162_s25 = sshll.u32 %s154_s22, 4  ;;  %p8121_p11 = pnand %p6813_p6, %p36_p8  ;;  %s8125_s25 = int_to_ptr.vmem [resolvable:$true] %s162_s25 }
  0x31   : > { %s151_s5 = scalar_lea.sflag [#allocation3], %s150_s27  ;;  %s7885_s6 = scalar_lea.hbm %s8119_s4, 1024 }
  0x32   : > { %p7886_p13 = scmp.ne.s32.totalorder %s8119_s4, %s7885_s6  ;;  %p7887_p0 = pneg %p8121_p11 }
  0x33   : > { %s7890_s9 = scalar_lea.hbm %s9226_s0, 2048  ;;  %p7891_p7 = scmp.lt.u32.totalorder %s8119_s4, %s9226_s0 }
  0x34   : > { %p7888_p3 = pnand %p7887_p0, %p7886_p13  ;;  %p7892_p9 = scmp.lt.u32.totalorder %s7890_s9, %s7885_s6 }
  0x35   : > { %p7894_p1 = scmp.lt.u32.totalorder %s7885_s6, %s8119_s4 }
  0x36   : > { %p7889_p5 = pneg %p7888_p3  ;;  %p7893_p2 = por %p7892_p9, %p7891_p7 }
  0x38   : > { %p7895_p4 = por %p7894_p1, %p7893_p2 }
  0x3a   : > { %p7896_p6 = pnand %p7895_p4, %p7889_p5 }
  0x3c   : > { %7899 = shalt.err (!%p7896_p6)
}
  0x3d   : > { %s7900_s27 = scalar_lea.vmem %s8125_s25, 1024  ;;  %s7990_s28 = smov [#allocation2]  }
  0x3e   : > { %p7901_p8 = scmp.ne.s32.totalorder %s8125_s25, %s7900_s27  ;;  %s7905_s29 = sshll.u32 %s7990_s28, 4  ;;  %s7906_s29 = int_to_ptr.vmem [resolvable:$false] %s7905_s29 }
  0x3f   : > { %s7907_s23 = scalar_lea.vmem %s7906_s29, 2048  ;;  %p7908_p3 = scmp.lt.s32.totalorder %s8125_s25, %s7906_s29 }
  0x40   : > { %p7903_p10 = pnand %p7901_p8, %p7887_p0  ;;  %p7909_p7 = scmp.lt.s32.totalorder %s7907_s23, %s7900_s27 }
  0x42   : > { %p7904_p13 = pneg %p7903_p10  ;;  %p7910_p9 = por %p7909_p7, %p7908_p3 }
  0x44   : > { %p7911_p2 = pnand %p7910_p9, %p7904_p13 }
  0x46   : > { %7914 = shalt.err (!%p7911_p2)
}
  0x47   : > { %6807 = dma.hbm_to_vmem [thread:$0]  (!%p8121_p11), %s8119_s4, 1024, %s8125_s25, %s151_s5  }
  0x48   : > { %p9265_p5 = scmp.ne.s32.totalorder %s9260_s20, 0 }
  0x4a   : > { %178 = sbr.rel (%p9265_p5) target bundleno = 1601 (0x641), region = 32 }
  0x51   : > { %s8155_s30 = sand.u32 1, %s7977_s13   ;;  %p9266_p0 = scmp.ne.s32.totalorder %s9258_s18, 0 }
  0x52   : > { %s6013_s22 = sshll.u32 %s8155_s30, 6  ;;  %s181_s6 = scalar_lea.sflag [#allocation3], %s8155_s30 }
  0x53   : > { %s8159_s7 = scalar_lea.vmem [#allocation2], %s6013_s22 }
  0x54   : > { %7960 = dma.done.wait (%p9266_p0), %s181_s6, 1024  }
  0x55   : > { %7962 = vsyncadd (%p9266_p0), %s181_s6, 4294966272  ;;  %p9267_p11 = scmp.eq.s32.totalorder %s8040_s16, 0 }
  0x57   : > { %7964 = dma.done.wait (%p9267_p11), [#allocation6], 81920   ;;  %p9268_p1 = pmov %p9267_p11 }
  0x58   : > { %p215_p4 = scmp.lt.s32.totalorder %s8040_s16, 1  ;;  %v7991_v0 = vmov 0   ;;  %v228_v7 = vlaneseq  ;;  %v9242_v42 = vmov 683565275   ;;  %v9238_v44 = vmov 2475754826  }
  0x59   : > { %7966 = vsyncadd (%p9268_p1), [#allocation6], 4294885376  ;;  %6858 = vset.pattern.permute.xlu0 %v7991_v0  ;;  %v9240_v47 = vmov 2131351028   ;;  %v9244_v50 = vmov 2102212464  }
  0x5a   : > { %s216_s20 = scalar_select %p215_p4, %s8040_s16, 1  ;;  %v8174_v8 = vand.u32 127, %v228_v7  ;;  %v9253_v53 = vmov 920167782   ;;  %v9246_v58 = vmov 1326507024  }
  0x5b   : > { %s6758_s18 = smul.u32 40, %s8155_s30  ;;  %s5899_s28 = scalar_lea.sflag [#allocation4], %s8155_s30 }
  0x5c   : > { %s6015_s4 = sshll.u32 %s216_s20, 3  ;;  %v230_v9 = vadd.s32 128, %v8174_v8  ;;  %v237_v10 = vcvt.s32.f32 %v8174_v8  ;;  %v231_v17 = vadd.s32 256, %v8174_v8  ;;  %v8206_v35 = vadd.s32 384, %v8174_v8  ;;  %s6791_s9 = smul.u32 640, %s8040_s16 }
  0x5d   : > { %s218_s5 = scalar_lea.vmem %s9227_s1, %s6015_s4  ;;  %s9160_s8 = scalar_lea.vmem [#allocation7], %s6758_s18 }
  0x5e   : > { %v227_v1 = vld [vmem:[%s218_s5] sm:$0xff]  ;;  %v238_v11 = vcvt.s32.f32 %v230_v9  ;;  %v8178_v12 = vadd.f32 -512.0, %v237_v10  ;;  %v239_v22 = vcvt.s32.f32 %v231_v17  ;;  %s5913_s10 = sshll.u32 %s9160_s8, 4  ;;  %s9179_s27 = scalar_lea.hbm %s9229_s3, %s6791_s9  ;;  %s9181_s10 = int_to_ptr.vmem [resolvable:$true] %s5913_s10 }
  0x5f   : > { %v257_v2 = vmul.f32 0.00026179937, %v227_v1  ;;  %7819 = vrcp.f32 %v227_v1  ;;  %s7915_s29 = scalar_lea.vmem %s9181_s10, 640  ;;  %s7998_s23 = smov [#allocation7]  }
  0x60   : > { %v8180_v13 = vadd.f32 -512.0, %v238_v11  ;;  %v8196_v28 = vadd.f32 -512.0, %v239_v22  ;;  %p7916_p6 = scmp.ne.s32.totalorder %s9181_s10, %s7915_s29  ;;  %s7919_s22 = sshll.u32 %s7998_s23, 4  ;;  %s7920_s22 = int_to_ptr.vmem [resolvable:$false] %s7919_s22 }
  0x61   : > { %260 = vperm.xlu0 %6858, %v257_v2   ;;  %s7921_s6 = scalar_lea.vmem %s7920_s22, 1280  ;;  %p7922_p13 = scmp.lt.s32.totalorder %s9181_s10, %s7920_s22 }
  0x62   : > { %9269 = vst [vmem:[#allocation11_spill] sm:$0xff] %v8196_v28  ;;  %p7917_p8 = pnand %p7916_p6, %p8110_p12  ;;  %p7923_p3 = scmp.lt.s32.totalorder %s7921_s6, %s7915_s29 }
  0x64   : > { %p7918_p10 = pneg %p7917_p8  ;;  %p7924_p7 = por %p7923_p3, %p7922_p13 }
  0x66   : > { %p7925_p9 = pnand %p7924_p7, %p7918_p10 }
  0x69   : > { %v7820_v3 = vpop.eup %7819 }
  0x6a   : > { %v254_v4 = vmul.f32 12000.0, %v7820_v3 }
  0x6c   : > { %v255_v5 = vadd.f32 0.5, %v254_v4 }
  0x6e   : > { %v256_v6 = vfloor.f32 %v255_v5  ;;  %v240_v5 = vcvt.s32.f32 %v8206_v35 }
  0x70   : > { %281 = vperm.xlu0 %6858, %v256_v6  }
  0xe0   : > { %v8182_v14 = vpop.permute.xlu0 %260 }
  0xe1   : > { %v8186_v15 = vmul.f32 %v8178_v12, %v8182_v14  ;;  %v8190_v16 = vmul.f32 %v8180_v13, %v8182_v14  ;;  %v8203_v33 = vmul.f32 %v8196_v28, %v8182_v14 }
  0xe3   : > { %v295_v18 = vand.u32 2139095040, %v8186_v15  ;;  %v398_v19 = vand.u32 2139095040, %v8190_v16  ;;  %v9237_v25 = vand.u32 2147483647, %v8186_v15  ;;  %v9236_v29 = vand.u32 2147483647, %v8190_v16 }
  0xe4   : > { %v501_v41 = vand.u32 2139095040, %v8203_v33 }
  0xe5   : > { %v296_v20 = vshrl.u32 %v295_v18, 23  ;;  %v399_v21 = vshrl.u32 %v398_v19, 23  ;;  %v299_v31 = vand.u32 8388607, %v9237_v25  ;;  %v8210_v38 = vand.u32 8388607, %v9236_v29 }
  0xe6   : > { %v502_v1 = vshrl.u32 %v501_v41, 23 }
  0xe7   : > { %v6024_v23 = vadd.s32 4294967169, %v296_v20  ;;  %v6028_v24 = vadd.s32 4294967169, %v399_v21  ;;  %v300_v37 = vor.u32 8388608, %v299_v31 }
  0xe8   : > { %v6032_v21 = vadd.s32 4294967169, %v502_v1 }
  0xe9   : > { %v302_v26 = vadd.s32 1, %v6024_v23  ;;  %v405_v27 = vadd.s32 1, %v6028_v24  ;;  %v340_v4 = vshll.u32 %v300_v37, 8 }
  0xeb   : > { %vm303_vm0 = vcmp.gt.s32.totalorder %v302_v26, 0  ;;  %vm406_vm1 = vcmp.gt.s32.totalorder %v405_v27, 0 }
  0xec   : > { %v304_v30 = vsel %vm303_vm0, %v302_v26, 0  ;;  %v407_v34 = vsel %vm406_vm1, %v405_v27, 0 }
  0xed   : > { %v306_v32 = vand.u32 31, %v304_v30  ;;  %v8212_v39 = vshrl.u32 %v304_v30, 5  ;;  %v409_v40 = vand.u32 31, %v407_v34  ;;  %v8255_v22 = vshrl.u32 %v407_v34, 5 }
  0xef   : > { %v307_v36 = vsub.s32 32, %v306_v32  ;;  %v309_v43 = vshll.u32 %v9242_v42, %v306_v32  ;;  %v312_v46 = vshll.u32 %v9238_v44, %v306_v32  ;;  %v315_v49 = vshll.u32 %v9240_v47, %v306_v32 }
  0xf0   : > { %v318_v52 = vshll.u32 %v9244_v50, %v306_v32  ;;  %v321_v57 = vshll.u32 %v9253_v53, %v306_v32  ;;  %v8225_v60 = vsub.s32 32, %v409_v40  ;;  %vm324_vm2 = vcmp.lt.s32.totalorder %v8212_v39, 1 }
  0xf1   : > { %v310_v45 = vshrl.u32 %v9238_v44, %v307_v36  ;;  %v313_v48 = vshrl.u32 %v9240_v47, %v307_v36  ;;  %v316_v51 = vshrl.u32 %v9244_v50, %v307_v36  ;;  %v319_v54 = vshrl.u32 %v9253_v53, %v307_v36 }
  0xf2   : > { %v322_v59 = vshrl.u32 %v9246_v58, %v307_v36  ;;  %vm327_vm3 = vcmp.lt.s32.totalorder %v8212_v39, 4  ;;  %vm326_vm4 = vcmp.lt.s32.totalorder %v8212_v39, 3  ;;  %vm325_vm5 = vcmp.lt.s32.totalorder %v8212_v39, 2 }
  0xf3   : > { %v311_v55 = vor.u32 %v310_v45, %v309_v43  ;;  %v314_v56 = vor.u32 %v313_v48, %v312_v46  ;;  %v317_v61 = vor.u32 %v316_v51, %v315_v49  ;;  %v320_v62 = vor.u32 %v319_v54, %v318_v52 }
  0xf4   : > { %v323_v63 = vor.u32 %v322_v59, %v321_v57  ;;  %v412_v11 = vshll.u32 %v9242_v42, %v409_v40  ;;  %v413_v17 = vshrl.u32 %v9238_v44, %v8225_v60  ;;  %v415_v27 = vshll.u32 %v9238_v44, %v409_v40 }
  0xf5   : > { %v332_v0 = vsel %vm324_vm2, %v311_v55, %v314_v56  ;;  %v333_v2 = vsel %vm327_vm3, %v320_v62, 920167782  ;;  %v336_v3 = vsel %vm324_vm2, %v314_v56, %v317_v61  ;;  %v416_v30 = vshrl.u32 %v9240_v47, %v8225_v60 }
  0xf6   : > { %v334_v6 = vsel %vm326_vm4, %v317_v61, %v333_v2  ;;  %v337_v7 = vsel %vm327_vm3, %v323_v63, 1326507024  ;;  %v414_v26 = vor.u32 %v413_v17, %v412_v11  ;;  %v418_v31 = vshll.u32 %v9240_v47, %v409_v40 }
  0xf7   : > { %v335_v9 = vsel %vm325_vm5, %v332_v0, %v334_v6  ;;  %v338_v10 = vsel %vm326_vm4, %v320_v62, %v337_v7  ;;  %v419_v32 = vshrl.u32 %v9244_v50, %v8225_v60  ;;  %v421_v35 = vshll.u32 %v9244_v50, %v409_v40 }
  0xf8   : > { %v339_v18 = vsel %vm325_vm5, %v336_v3, %v338_v10  ;;  %v8251_v19 = vmul.u32.u64.low %v340_v4, %v335_v9  ;;  %v8252_v20 = vmul.u32.u64.high %v340_v4, %v335_v9, %v8251_v19  ;;  %v422_v34 = vshrl.u32 %v9253_v53, %v8225_v60 }
  0xf9   : > { %v8257_v23 = vmul.u32.u64.low %v340_v4, %v339_v18  ;;  %v8258_v24 = vmul.u32.u64.high %v340_v4, %v339_v18, %v8257_v23  ;;  %v424_v37 = vshll.u32 %v9253_v53, %v409_v40  ;;  %v425_v41 = vshrl.u32 %v9246_v58, %v8225_v60 }
  0xfa   : > { %v308_v43 = vshrl.u32 %v9242_v42, %v307_v36  ;;  %v329_v45 = vsel %vm327_vm3, %v317_v61, 2102212464  ;;  %v417_v46 = vor.u32 %v416_v30, %v415_v27  ;;  %v420_v48 = vor.u32 %v419_v32, %v418_v31 }
  0xfb   : > { %v8275_v49 = vadd.f32 -512.0, %v240_v5  ;;  %v403_v51 = vor.u32 8388608, %v8210_v38  ;;  %v423_v52 = vor.u32 %v422_v34, %v421_v35  ;;  %v426_v54 = vor.u32 %v425_v41, %v424_v37 }
  0xfc   : > { %v328_v57 = vsel %vm324_vm2, %v308_v43, %v311_v55  ;;  %vm427_vm6 = vcmp.lt.s32.totalorder %v8255_v22, 1  ;;  %vm430_vm7 = vcmp.lt.s32.totalorder %v8255_v22, 4  ;;  %v508_v40 = vadd.s32 1, %v6032_v21 }
  0xfd   : > { %v330_v36 = vsel %vm326_vm4, %v314_v56, %v329_v45  ;;  %vm429_vm8 = vcmp.lt.s32.totalorder %v8255_v22, 3  ;;  %v435_v59 = vsel %vm427_vm6, %v414_v26, %v417_v46  ;;  %v436_v38 = vsel %vm430_vm7, %v423_v52, 920167782 }
  0xfe   : > { %v350_v61 = vadd.s32 1, %v8252_v20  ;;  %v437_v55 = vsel %vm429_vm8, %v420_v48, %v436_v38  ;;  %v439_v62 = vsel %vm427_vm6, %v417_v46, %v420_v48  ;;  %v440_v63 = vsel %vm430_vm7, %v426_v54, 1326507024 }
  0xff   : > { %vm349_vm9 = vc.u32 %v8258_v24, %v8251_v19  ;;  %vm428_vm10 = vcmp.lt.s32.totalorder %v8255_v22, 2  ;;  %v441_v56 = vsel %vm429_vm8, %v423_v52, %v440_v63  ;;  %v331_v0 = vsel %vm325_vm5, %v328_v57, %v330_v36 }
 0x100   : > { %v438_v1 = vsel %vm428_vm10, %v435_v59, %v437_v55  ;;  %v442_v2 = vsel %vm428_vm10, %v439_v62, %v441_v56  ;;  %v443_v3 = vshll.u32 %v403_v51, 8  ;;  %vm509_vm11 = vcmp.gt.s32.totalorder %v508_v40, 0 }
 0x101   : > { %v8309_v5 = vmul.f32 %v8275_v49, %v8182_v14  ;;  %v351_v6 = vsel %vm349_vm9, %v350_v61, %v8252_v20  ;;  %v510_v7 = vsel %vm509_vm11, %v508_v40, 0  ;;  %v347_v9 = vmul.u32 %v340_v4, %v331_v0 }
 0x102   : > { %v8312_v10 = vmul.u32.u64.low %v443_v3, %v438_v1  ;;  %v8313_v11 = vmul.u32.u64.high %v443_v3, %v438_v1, %v8312_v10  ;;  %v512_v39 = vand.u32 31, %v510_v7  ;;  %v9235_v21 = vand.u32 2147483647, %v8203_v33 }
 0x103   : > { %v8316_v17 = vmul.u32.u64.low %v443_v3, %v442_v2  ;;  %v8317_v18 = vmul.u32.u64.high %v443_v3, %v442_v2, %v8316_v17  ;;  %v352_v23 = vadd.s32 %v351_v6, %v347_v9  ;;  %v432_v27 = vsel %vm430_vm7, %v420_v48, 2102212464 }
 0x104   : > { %v411_v30 = vshrl.u32 %v9242_v42, %v8225_v60  ;;  %v513_v20 = vsub.s32 32, %v512_v39  ;;  %v604_v4 = vand.u32 2139095040, %v8309_v5  ;;  %v433_v32 = vsel %vm429_vm8, %v417_v46, %v432_v27 }
 0x105   : > { %v353_v35 = vadd.s32 536870912, %v352_v23  ;;  %v505_v34 = vand.u32 8388607, %v9235_v21  ;;  %v453_v45 = vadd.s32 1, %v8313_v11  ;;  %vm452_vm12 = vc.u32 %v8317_v18, %v8312_v10 }
 0x106   : > { %v431_v31 = vsel %vm427_vm6, %v411_v30, %v414_v26  ;;  %v516_v37 = vshrl.u32 %v9238_v44, %v513_v20  ;;  %v519_v41 = vshrl.u32 %v9240_v47, %v513_v20  ;;  %v605_v43 = vshrl.u32 %v604_v4, 23 }
 0x107   : > { %v434_v60 = vsel %vm428_vm10, %v431_v31, %v433_v32  ;;  %v522_v48 = vshrl.u32 %v9244_v50, %v513_v20  ;;  %v525_v26 = vshrl.u32 %v9253_v53, %v513_v20  ;;  %v515_v46 = vshll.u32 %v9242_v42, %v512_v39 }
 0x108   : > { %v518_v51 = vshll.u32 %v9238_v44, %v512_v39  ;;  %v524_v52 = vshll.u32 %v9244_v50, %v512_v39  ;;  %v8343_v54 = vshrl.u32 %v353_v35, 30  ;;  %v511_v57 = vshrl.u32 %v510_v7, 5 }
 0x109   : > { %v521_v22 = vshll.u32 %v9240_v47, %v512_v39  ;;  %v528_v40 = vshrl.u32 %v9246_v58, %v513_v20  ;;  %v517_v36 = vor.u32 %v516_v37, %v515_v46  ;;  %v454_v61 = vsel %vm452_vm12, %v453_v45, %v8313_v11 }
 0x10a   : > { %v520_v59 = vor.u32 %v519_v41, %v518_v51  ;;  %v526_v38 = vor.u32 %v525_v26, %v524_v52  ;;  %v527_v62 = vshll.u32 %v9253_v53, %v512_v39  ;;  %v450_v63 = vmul.u32 %v443_v3, %v434_v60 }
 0x10b   : > { %v523_v55 = vor.u32 %v522_v48, %v521_v22  ;;  %v506_v56 = vor.u32 8388608, %v505_v34  ;;  %v6036_v0 = vadd.s32 4294967169, %v605_v43  ;;  %v355_v1 = vshll.u32 %v8343_v54, 30 }
 0x10c   : > { %v529_v2 = vor.u32 %v528_v40, %v527_v62  ;;  %vm530_vm13 = vcmp.lt.s32.totalorder %v511_v57, 1  ;;  %vm533_vm14 = vcmp.lt.s32.totalorder %v511_v57, 4  ;;  %v455_v6 = vadd.s32 %v454_v61, %v450_v63 }
 0x10d   : > { %vm532_vm15 = vcmp.lt.s32.totalorder %v511_v57, 3  ;;  %v538_v7 = vsel %vm530_vm13, %v517_v36, %v520_v59  ;;  %v539_v9 = vsel %vm533_vm14, %v526_v38, 920167782  ;;  %vm531_vm0 = vcmp.lt.s32.totalorder %v511_v57, 2 }
 0x10e   : > { %v540_v17 = vsel %vm532_vm15, %v523_v55, %v539_v9  ;;  %v542_v11 = vsel %vm530_vm13, %v520_v59, %v523_v55  ;;  %v546_v39 = vshll.u32 %v506_v56, 8  ;;  %v611_v3 = vadd.s32 1, %v6036_v0 }
 0x10f   : > { %v8354_v27 = vsub.s32 %v352_v23, %v355_v1  ;;  %v541_v30 = vsel %vm531_vm0, %v538_v7, %v540_v17  ;;  %v543_v4 = vsel %vm533_vm14, %v529_v2, 1326507024  ;;  %v456_v31 = vadd.s32 536870912, %v455_v6 }
 0x110   : > { %v544_v32 = vsel %vm532_vm15, %v526_v38, %v543_v4  ;;  %v8359_v35 = vmul.u32.u64.low %v546_v39, %v541_v30  ;;  %v8360_v34 = vmul.u32.u64.high %v546_v39, %v541_v30, %v8359_v35  ;;  %v233_v41 = vadd.s32 512, %v8174_v8 }
 0x111   : > { %v545_v37 = vsel %vm531_vm0, %v542_v11, %v544_v32  ;;  %vm612_vm1 = vcmp.gt.s32.totalorder %v611_v3, 0  ;;  %v535_v23 = vsel %vm533_vm14, %v523_v55, 2102212464  ;;  %v358_v48 = vsub.s32 0, %v8354_v27 }
 0x112   : > { %v8365_v43 = vmul.u32.u64.low %v546_v39, %v545_v37  ;;  %v8366_v60 = vmul.u32.u64.high %v546_v39, %v545_v37, %v8365_v43  ;;  %v613_v45 = vsel %vm612_vm1, %v611_v3, 0  ;;  %v8370_v26 = vshrl.u32 %v456_v31, 30 }
 0x113   : > { %v514_v46 = vshrl.u32 %v9242_v42, %v513_v20  ;;  %v615_v51 = vand.u32 31, %v613_v45  ;;  %v241_v52 = vcvt.s32.f32 %v233_v41  ;;  %v536_v40 = vsel %vm532_vm15, %v520_v59, %v535_v23 }
 0x114   : > { %v9234_v38 = vand.u32 2147483647, %v8309_v5  ;;  %v556_v61 = vadd.s32 1, %v8360_v34  ;;  %v6025_v55 = vmin.u32 %v358_v48, %v8354_v27  ;;  %v458_v63 = vshll.u32 %v8370_v26, 30 }
 0x115   : > { %v534_v22 = vsel %vm530_vm13, %v514_v46, %v517_v36  ;;  %v616_v62 = vsub.s32 32, %v615_v51  ;;  %vm555_vm2 = vc.u32 %v8366_v60, %v8359_v35  ;;  %v8382_v56 = vadd.f32 -512.0, %v241_v52 }
 0x116   : > { %v537_v20 = vsel %vm531_vm0, %v534_v22, %v536_v40  ;;  %v557_v36 = vsel %vm555_vm2, %v556_v61, %v8360_v34  ;;  %v608_v59 = vand.u32 8388607, %v9234_v38  ;;  %v360_v2 = vclz %v6025_v55 }
 0x117   : > { %9270 = vst [vmem:[#allocation12_spill] sm:$0xff] %v8382_v56  ;;  %v619_v0 = vshrl.u32 %v9238_v44, %v616_v62  ;;  %v622_v1 = vshrl.u32 %v9240_v47, %v616_v62  ;;  %v8389_v7 = vsub.s32 %v455_v6, %v458_v63  ;;  %v553_v9 = vmul.u32 %v546_v39, %v537_v20 }
 0x118   : > { %v618_v17 = vshll.u32 %v9242_v42, %v615_v51  ;;  %v621_v57 = vshll.u32 %v9238_v44, %v615_v51  ;;  %v625_v11 = vshrl.u32 %v9244_v50, %v616_v62  ;;  %v627_v3 = vshll.u32 %v9244_v50, %v615_v51 }
 0x119   : > { %v628_v30 = vshrl.u32 %v9253_v53, %v616_v62  ;;  %v8398_v4 = vmul.f32 %v8382_v56, %v8182_v14  ;;  %v558_v31 = vadd.s32 %v557_v36, %v553_v9  ;;  %v614_v32 = vshrl.u32 %v613_v45, 5 }
 0x11a   : > { %v624_v6 = vshll.u32 %v9240_v47, %v615_v51  ;;  %v620_v34 = vor.u32 %v619_v0, %v618_v17  ;;  %v623_v39 = vor.u32 %v622_v1, %v621_v57  ;;  %v631_v41 = vshrl.u32 %v9246_v58, %v616_v62 }
 0x11b   : > { %v629_v37 = vor.u32 %v628_v30, %v627_v3  ;;  %v609_v43 = vor.u32 8388608, %v608_v59  ;;  %v6026_v48 = vadd.s32 4294967294, %v360_v2  ;;  %v461_v46 = vsub.s32 0, %v8389_v7 }
 0x11c   : > { %v626_v23 = vor.u32 %v625_v11, %v624_v6  ;;  %v630_v52 = vshll.u32 %v9253_v53, %v615_v51  ;;  %v559_v22 = vadd.s32 536870912, %v558_v31  ;;  %vm633_vm3 = vcmp.lt.s32.totalorder %v614_v32, 1 }
 0x11d   : > { %vm636_vm4 = vcmp.lt.s32.totalorder %v614_v32, 4  ;;  %v707_v40 = vand.u32 2139095040, %v8398_v4  ;;  %vm635_vm5 = vcmp.lt.s32.totalorder %v614_v32, 3  ;;  %v641_v61 = vsel %vm633_vm3, %v620_v34, %v623_v39 }
 0x11e   : > { %v632_v45 = vor.u32 %v631_v41, %v630_v52  ;;  %v642_v55 = vsel %vm636_vm4, %v629_v37, 920167782  ;;  %v649_v20 = vshll.u32 %v609_v43, 8  ;;  %v617_v36 = vshrl.u32 %v9242_v42, %v616_v62 }
 0x11f   : > { %v643_v63 = vsel %vm635_vm5, %v626_v23, %v642_v55  ;;  %vm634_vm6 = vcmp.lt.s32.totalorder %v614_v32, 2  ;;  %v638_v59 = vsel %vm636_vm4, %v626_v23, 2102212464  ;;  %vm6027_vm7 = vcmp.lt.s32.totalorder %v6026_v48, 0 }
 0x120   : > { %v644_v51 = vsel %vm634_vm6, %v641_v61, %v643_v63  ;;  %v645_v0 = vsel %vm633_vm3, %v623_v39, %v626_v23  ;;  %v708_v1 = vshrl.u32 %v707_v40, 23  ;;  %v6029_v2 = vmin.u32 %v461_v46, %v8389_v7 }
 0x121   : > { %v8413_v9 = vshrl.u32 %v559_v22, 30  ;;  %v637_v17 = vsel %vm633_vm3, %v617_v36, %v620_v34  ;;  %v646_v57 = vsel %vm636_vm4, %v632_v45, 1326507024  ;;  %v639_v11 = vsel %vm635_vm5, %v623_v39, %v638_v59 }
 0x122   : > { %v647_v62 = vsel %vm635_vm5, %v629_v37, %v646_v57  ;;  %v8419_v3 = vmul.u32.u64.low %v649_v20, %v644_v51  ;;  %v8420_v30 = vmul.u32.u64.high %v649_v20, %v644_v51, %v8419_v3  ;;  %v234_v6 = vadd.s32 640, %v8174_v8 }
 0x123   : > { %v648_v41 = vsel %vm634_vm6, %v645_v0, %v647_v62  ;;  %v6040_v46 = vadd.s32 4294967169, %v708_v1  ;;  %v8429_v34 = vsel %vm6027_vm7, 0, %v6026_v48  ;;  %v561_v52 = vshll.u32 %v8413_v9, 30 }
 0x124   : > { %v8425_v43 = vmul.u32.u64.low %v649_v20, %v648_v41  ;;  %v8426_v23 = vmul.u32.u64.high %v649_v20, %v648_v41, %v8425_v43  ;;  %v640_v39 = vsel %vm634_vm6, %v637_v17, %v639_v11  ;;  %v463_v37 = vclz %v6029_v2 }
 0x125   : > { %v659_v22 = vadd.s32 1, %v8420_v30  ;;  %v714_v40 = vadd.s32 1, %v6040_v46  ;;  %v242_v45 = vcvt.s32.f32 %v234_v6  ;;  %v368_v61 = vsub.s32 4294967266, %v8429_v34 }
 0x126   : > { %v656_v55 = vmul.u32 %v649_v20, %v640_v39  ;;  %vm658_vm8 = vc.u32 %v8426_v23, %v8419_v3  ;;  %v8437_v63 = vsub.s32 %v558_v31, %v561_v52  ;;  %v8441_v32 = vadd.s32 768, %v8174_v8 }
 0x127   : > { %vm715_vm9 = vcmp.gt.s32.totalorder %v714_v40, 0  ;;  %v660_v48 = vsel %vm658_vm8, %v659_v22, %v8420_v30  ;;  %v6030_v59 = vadd.s32 4294967294, %v463_v37  ;;  %v8443_v1 = vadd.f32 -512.0, %v242_v45 }
 0x128   : > { %v716_v36 = vsel %vm715_vm9, %v714_v40, 0  ;;  %v661_v51 = vadd.s32 %v660_v48, %v656_v55  ;;  %v9233_v2 = vand.u32 2147483647, %v8398_v4  ;;  %v369_v20 = vadd.s32 127, %v368_v61 }
 0x129   : > { %v718_v0 = vand.u32 31, %v716_v36  ;;  %9271 = vst [vmem:[#allocation13_spill] sm:$0xff] %v8443_v1  ;;  %v564_v57 = vsub.s32 0, %v8437_v63  ;;  %vm6031_vm10 = vcmp.lt.s32.totalorder %v6030_v59, 0  ;;  %v236_v11 = vadd.s32 896, %v8174_v8 }
 0x12a   : > { %v662_v31 = vadd.s32 536870912, %v661_v51  ;;  %v243_v62 = vcvt.s32.f32 %v8441_v32  ;;  %v8451_v30 = vmul.f32 %v8443_v1, %v8182_v14  ;;  %v364_v6 = vsub.s32 32, %v8429_v34 }
 0x12b   : > { %v719_v17 = vsub.s32 32, %v718_v0  ;;  %v370_v41 = vshll.u32 %v369_v20, 23  ;;  %v711_v43 = vand.u32 8388607, %v9233_v2  ;;  %v8458_v39 = vsel %vm6031_vm10, 0, %v6030_v59 }
 0x12c   : > { %v6033_v8 = vmin.u32 %v564_v57, %v8437_v63  ;;  %v717_v37 = vshrl.u32 %v716_v36, 5  ;;  %v8462_v40 = vshrl.u32 %v662_v31, 30  ;;  %v721_v45 = vshll.u32 %v9242_v42, %v718_v0 }
 0x12d   : > { %v722_v46 = vshrl.u32 %v9238_v44, %v719_v17  ;;  %v725_v52 = vshrl.u32 %v9240_v47, %v719_v17  ;;  %v728_v22 = vshrl.u32 %v9244_v50, %v719_v17  ;;  %v724_v61 = vshll.u32 %v9238_v44, %v718_v0 }
 0x12e   : > { %v731_v55 = vshrl.u32 %v9253_v53, %v719_v17  ;;  %v727_v48 = vshll.u32 %v9240_v47, %v718_v0  ;;  %v730_v32 = vshll.u32 %v9244_v50, %v718_v0  ;;  %v733_v59 = vshll.u32 %v9253_v53, %v718_v0 }
 0x12f   : > { %v734_v20 = vshrl.u32 %v9246_v58, %v719_v17  ;;  %v348_v36 = vadd.s32 %v8251_v19, %v8258_v24  ;;  %v712_v57 = vor.u32 8388608, %v711_v43  ;;  %v723_v31 = vor.u32 %v722_v46, %v721_v45 }
 0x130   : > { %v726_v2 = vor.u32 %v725_v52, %v724_v61  ;;  %v244_v38 = vcvt.s32.f32 %v236_v11  ;;  %v729_v21 = vor.u32 %v728_v22, %v727_v48  ;;  %v732_v29 = vor.u32 %v731_v55, %v730_v32 }
 0x131   : > { %v735_v25 = vor.u32 %v734_v20, %v733_v59  ;;  %v365_v44 = vshll.u32 %v8354_v27, %v8429_v34  ;;  %v366_v47 = vshrl.u32 %v348_v36, %v364_v6  ;;  %v371_v42 = vor.u32 4788187, %v370_v41 }
 0x132   : > { %v471_v50 = vsub.s32 4294967266, %v8458_v39  ;;  %v566_v0 = vclz %v6033_v8  ;;  %v664_v58 = vshll.u32 %v8462_v40, 30  ;;  %vm736_vm11 = vcmp.lt.s32.totalorder %v717_v37, 1 }
 0x133   : > { %v810_v19 = vand.u32 2139095040, %v8451_v30  ;;  %vm738_vm12 = vcmp.lt.s32.totalorder %v717_v37, 3  ;;  %vm739_vm13 = vcmp.lt.s32.totalorder %v717_v37, 4  ;;  %v744_v24 = vsel %vm736_vm11, %v723_v31, %v726_v2 }
 0x134   : > { %v752_v11 = vshll.u32 %v712_v57, 8  ;;  %v741_v43 = vsel %vm739_vm13, %v729_v21, 2102212464  ;;  %v745_v46 = vsel %vm739_vm13, %v732_v29, 920167782  ;;  %v748_v52 = vsel %vm736_vm11, %v726_v2, %v729_v21 }
 0x135   : > { %v749_v27 = vsel %vm739_vm13, %v735_v25, 1326507024  ;;  %v9272_v34 = vmov 683565275   ;;  %vm737_vm14 = vcmp.lt.s32.totalorder %v717_v37, 2  ;;  %v746_v41 = vsel %vm738_vm12, %v729_v21, %v745_v46 }
 0x136   : > { %v720_v6 = vshrl.u32 %v9272_v34, %v719_v17  ;;  %v750_v8 = vsel %vm738_vm12, %v732_v29, %v749_v27  ;;  %v8483_v22 = vsub.s32 %v661_v51, %v664_v58  ;;  %v747_v45 = vsel %vm737_vm14, %v744_v24, %v746_v41 }
 0x137   : > { %v751_v61 = vsel %vm737_vm14, %v748_v52, %v750_v8  ;;  %v811_v55 = vshrl.u32 %v810_v19, 23  ;;  %v742_v32 = vsel %vm738_vm12, %v726_v2, %v741_v43  ;;  %v6034_v17 = vadd.s32 4294967294, %v566_v0 }
 0x138   : > { %v740_v48 = vsel %vm736_vm11, %v720_v6, %v723_v31  ;;  %v8489_v59 = vmul.u32.u64.low %v752_v11, %v751_v61  ;;  %v8490_v25 = vmul.u32.u64.high %v752_v11, %v751_v61, %v8489_v59  ;;  %v8496_v58 = vadd.f32 -512.0, %v243_v62 }
 0x139   : > { %v8492_v20 = vmul.u32.u64.low %v752_v11, %v747_v45  ;;  %v8493_v36 = vmul.u32.u64.high %v752_v11, %v747_v45, %v8492_v20  ;;  %v6044_v29 = vadd.s32 4294967169, %v811_v55  ;;  %v8498_v21 = vadd.f32 -512.0, %v244_v38 }
 0x13a   : > { %9273 = vst [vmem:[#allocation14_spill] sm:$0xff] %v8496_v58  ;;  %v472_v57 = vadd.s32 127, %v471_v50  ;;  %v367_v19 = vor.u32 %v366_v47, %v365_v44  ;;  %v743_v2 = vsel %vm737_vm14, %v740_v48, %v742_v32  ;;  %v372_v43 = vand.u32 2147483647, %v371_v42 }
 0x13b   : > { %9274 = vst [vmem:[#allocation15_spill] sm:$0xff] %v8498_v21  ;;  %v817_v24 = vadd.s32 1, %v6044_v29  ;;  %v667_v46 = vsub.s32 0, %v8483_v22  ;;  %vm761_vm15 = vc.u32 %v8490_v25, %v8492_v20  ;;  %vm6035_vm0 = vcmp.lt.s32.totalorder %v6034_v17, 0 }
 0x13c   : > { %v762_v38 = vadd.s32 1, %v8493_v36  ;;  %v9248_v62 = vand.u32 2147483647, %v8451_v30  ;;  %v467_v50 = vsub.s32 32, %v8458_v39  ;;  %v473_v44 = vshll.u32 %v472_v57, 23 }
 0x13d   : > { %vm818_vm1 = vcmp.gt.s32.totalorder %v817_v24, 0  ;;  %v759_v47 = vmul.u32 %v752_v11, %v743_v2  ;;  %v8512_v52 = vmul.f32 %v8496_v58, %v8182_v14  ;;  %v374_v42 = vcvt.s32.f32 %v367_v19 }
 0x13e   : > { %v819_v37 = vsel %vm818_vm1, %v817_v24, 0  ;;  %v763_v27 = vsel %vm761_vm15, %v762_v38, %v8493_v36  ;;  %v451_v41 = vadd.s32 %v8312_v10, %v8317_v18  ;;  %v8517_v8 = vsel %vm6035_vm0, 0, %v6034_v17 }
 0x13f   : > { %v821_v6 = vand.u32 31, %v819_v37  ;;  %v6037_v45 = vmin.u32 %v667_v46, %v8483_v22  ;;  %v764_v61 = vadd.s32 %v763_v27, %v759_v47  ;;  %v8520_v55 = vmul.f32 %v374_v42, %v372_v43 }
 0x140   : > { %v468_v11 = vshll.u32 %v8389_v7, %v8458_v39  ;;  %v814_v48 = vand.u32 8388607, %v9248_v62  ;;  %v469_v59 = vshrl.u32 %v451_v41, %v467_v50  ;;  %v8526_v36 = vor.u32 4788187, %v473_v44 }
 0x141   : > { %v822_v32 = vsub.s32 32, %v821_v6  ;;  %v554_v10 = vadd.s32 %v8359_v35, %v8366_v60  ;;  %v765_v18 = vadd.s32 536870912, %v764_v61  ;;  %v570_v17 = vsub.s32 32, %v8517_v8 }
 0x142   : > { %v574_v29 = vsub.s32 4294967266, %v8517_v8  ;;  %v9275_v57 = vmov 2475754826   ;;  %v9276_v2 = vmov 2131351028   ;;  %v669_v7 = vclz %v6037_v45 }
 0x143   : > { %v825_v19 = vshrl.u32 %v9275_v57, %v822_v32  ;;  %v828_v24 = vshrl.u32 %v9276_v2, %v822_v32  ;;  %v8534_v39 = vshrl.u32 %v765_v18, 30  ;;  %v824_v43 = vshll.u32 %v9272_v34, %v821_v6 }
 0x144   : > { %v9277_v46 = vmov 2102212464   ;;  %v815_v50 = vor.u32 8388608, %v814_v48  ;;  %v827_v44 = vshll.u32 %v9275_v57, %v821_v6  ;;  %v834_v60 = vshrl.u32 %v9253_v53, %v822_v32 }
 0x145   : > { %v831_v38 = vshrl.u32 %v9277_v46, %v822_v32  ;;  %v833_v35 = vshll.u32 %v9277_v46, %v821_v6  ;;  %v767_v47 = vshll.u32 %v8534_v39, 30  ;;  %v820_v42 = vshrl.u32 %v819_v37, 5 }
 0x146   : > { %v826_v27 = vor.u32 %v825_v19, %v824_v43  ;;  %v830_v41 = vshll.u32 %v9276_v2, %v821_v6  ;;  %v829_v45 = vor.u32 %v828_v24, %v827_v44  ;;  %v836_v0 = vshll.u32 %v9253_v53, %v821_v6 }
 0x147   : > { %v835_v18 = vor.u32 %v834_v60, %v833_v35  ;;  %v9278_v31 = vmov 1326507024   ;;  %v376_v48 = vxor.u32 2147483648, %v8520_v55  ;;  %v378_v62 = vsub.s32 4, %v8343_v54 }
 0x148   : > { %v837_v51 = vshrl.u32 %v9278_v31, %v822_v32  ;;  %v8547_v58 = vsub.s32 %v764_v61, %v767_v47  ;;  %v832_v1 = vor.u32 %v831_v38, %v830_v41  ;;  %v470_v56 = vor.u32 %v469_v59, %v468_v11 }
 0x149   : > { %v475_v28 = vand.u32 2147483647, %v8526_v36  ;;  %v572_v37 = vshrl.u32 %v554_v10, %v570_v17  ;;  %v575_v43 = vadd.s32 127, %v574_v29  ;;  %vm839_vm2 = vcmp.lt.s32.totalorder %v820_v42, 1 }
 0x14a   : > { %v838_v19 = vor.u32 %v837_v51, %v836_v0  ;;  %v770_v24 = vsub.s32 0, %v8547_v58  ;;  %vm842_vm3 = vcmp.lt.s32.totalorder %v820_v42, 4  ;;  %v6038_v6 = vadd.s32 4294967294, %v669_v7 }
 0x14b   : > { %v847_v44 = vsel %vm839_vm2, %v826_v27, %v829_v45  ;;  %v848_v35 = vsel %vm842_vm3, %v835_v18, 920167782  ;;  %v855_v60 = vshll.u32 %v815_v50, 8  ;;  %v823_v53 = vshrl.u32 %v9272_v34, %v822_v32 }
 0x14c   : > { %vm840_vm4 = vcmp.lt.s32.totalorder %v820_v42, 2  ;;  %vm841_vm5 = vcmp.lt.s32.totalorder %v820_v42, 3  ;;  %v844_v61 = vsel %vm842_vm3, %v832_v1, 2102212464  ;;  %v6041_v11 = vmin.u32 %v770_v24, %v8547_v58 }
 0x14d   : > { %v849_v59 = vsel %vm841_vm5, %v832_v1, %v848_v35  ;;  %v851_v36 = vsel %vm839_vm2, %v829_v45, %v832_v1  ;;  %v852_v10 = vsel %vm842_vm3, %v838_v19, 1326507024  ;;  %v576_v51 = vshll.u32 %v575_v43, 23 }
 0x14e   : > { %v843_v0 = vsel %vm839_vm2, %v823_v53, %v826_v27  ;;  %v850_v17 = vsel %vm840_vm4, %v847_v44, %v849_v59  ;;  %v853_v29 = vsel %vm841_vm5, %v835_v18, %v852_v10  ;;  %v845_v38 = vsel %vm841_vm5, %v829_v45, %v844_v61 }
 0x14f   : > { %v854_v7 = vsel %vm840_vm4, %v851_v36, %v853_v29  ;;  %v8555_v47 = vmul.u32.u64.low %v855_v60, %v850_v17  ;;  %v8556_v50 = vmul.u32.u64.high %v855_v60, %v850_v17, %v8555_v47  ;;  %vm6039_vm6 = vcmp.lt.s32.totalorder %v6038_v6, 0 }
 0x150   : > { %v8559_v32 = vmul.u32.u64.low %v855_v60, %v854_v7  ;;  %v8560_v41 = vmul.u32.u64.high %v855_v60, %v854_v7, %v8559_v32  ;;  %v913_v24 = vand.u32 2139095040, %v8512_v52  ;;  %v8565_v1 = vmul.f32 %v8498_v21, %v8182_v14 }
 0x151   : > { %v477_v27 = vcvt.s32.f32 %v470_v56  ;;  %v772_v45 = vclz %v6041_v11  ;;  %v571_v18 = vshll.u32 %v8437_v63, %v8517_v8  ;;  %v577_v19 = vor.u32 4788187, %v576_v51 }
 0x152   : > { %v846_v43 = vsel %vm840_vm4, %v843_v0, %v845_v38  ;;  %v914_v44 = vshrl.u32 %v913_v24, 23  ;;  %vm294_vm7 = vcmp.lt.s32.totalorder %v8186_v15, 0  ;;  %vm397_vm8 = vcmp.lt.s32.totalorder %v8190_v16, 0 }
 0x153   : > { %v672_v35 = vsel %vm6039_vm6, 0, %v6038_v6  ;;  %v865_v61 = vadd.s32 1, %v8556_v50  ;;  %v377_v14 = vsel %vm294_vm7, %v376_v48, %v8520_v55  ;;  %v379_v59 = vsel %vm294_vm7, %v378_v62, %v8343_v54 }
 0x154   : > { %v478_v56 = vmul.f32 %v477_v27, %v475_v28  ;;  %v573_v11 = vor.u32 %v572_v37, %v571_v18  ;;  %v6042_v36 = vadd.s32 4294967294, %v772_v45  ;;  %v862_v10 = vmul.u32 %v855_v60, %v846_v43 }
 0x155   : > { %vm864_vm9 = vc.u32 %v8560_v41, %v8555_v47  ;;  %v6048_v63 = vadd.s32 4294967169, %v914_v44  ;;  %v9279_v8 = vand.u32 2147483647, %v8186_v15  ;;  %v578_v6 = vand.u32 2147483647, %v577_v19 }
 0x156   : > { %v677_v51 = vsub.s32 4294967266, %v672_v35  ;;  %v866_v55 = vsel %vm864_vm9, %v865_v61, %v8556_v50  ;;  %v9255_v62 = vand.u32 2147483647, %v8512_v52  ;;  %v481_v60 = vsub.s32 4, %v8370_v26 }
 0x157   : > { %vm8580_vm10 = vcmp.le.f32.partialorder %v9279_v8, 0.7853982  ;;  %v867_v54 = vadd.s32 %v866_v55, %v862_v10  ;;  %v920_v48 = vadd.s32 1, %v6048_v63  ;;  %v580_v0 = vcvt.s32.f32 %v573_v11 }
 0x158   : > { %v381_v28 = vsel %vm8580_vm10, 0, %v379_v59  ;;  %v8591_v37 = vsel %vm8580_vm10, %v8186_v15, %v377_v14  ;;  %v1016_v17 = vand.u32 2139095040, %v8565_v1  ;;  %v479_v29 = vxor.u32 2147483648, %v478_v56 }
 0x159   : > { %vm6043_vm11 = vcmp.lt.s32.totalorder %v6042_v36, 0  ;;  %v868_v38 = vadd.s32 536870912, %v867_v54  ;;  %vm921_vm12 = vcmp.gt.s32.totalorder %v920_v48, 0  ;;  %v8595_v7 = vmul.f32 %v580_v0, %v578_v6 }
 0x15a   : > { %v673_v50 = vsub.s32 32, %v672_v35  ;;  %v678_v32 = vadd.s32 127, %v677_v51  ;;  %v922_v24 = vsel %vm921_vm12, %v920_v48, 0  ;;  %v8597_v27 = vand.u32 3, %v381_v28 }
 0x15b   : > { %v8599_v45 = vshrl.u32 %v868_v38, 30  ;;  %v917_v18 = vand.u32 8388607, %v9255_v62  ;;  %v924_v19 = vand.u32 31, %v922_v24  ;;  %v8606_v43 = vsel %vm397_vm8, %v481_v60, %v8370_v26 }
 0x15c   : > { %v657_v44 = vadd.s32 %v8419_v3, %v8426_v23  ;;  %v8610_v61 = vsel %vm6043_vm11, 0, %v6042_v36  ;;  %v1017_v14 = vshrl.u32 %v1016_v17, 23  ;;  %7821 = vcosq.f32 %v8591_v37 }
 0x15d   : > { %v8615_v59 = vsel %vm397_vm8, %v479_v29, %v478_v56  ;;  %v870_v11 = vshll.u32 %v8599_v45, 30  ;;  %v925_v10 = vsub.s32 32, %v924_v19  ;;  %v674_v26 = vshll.u32 %v8483_v22, %v672_v35 }
 0x15e   : > { %v675_v8 = vshrl.u32 %v657_v44, %v673_v50  ;;  %v679_v42 = vshll.u32 %v678_v32, 23  ;;  %v780_v3 = vsub.s32 4294967266, %v8610_v61  ;;  %v918_v36 = vor.u32 8388608, %v917_v18 }
 0x15f   : > { %v8621_v23 = vsub.s32 %v867_v54, %v870_v11  ;;  %v928_v6 = vshrl.u32 %v9275_v57, %v925_v10  ;;  %v927_v51 = vshll.u32 %v9272_v34, %v924_v19  ;;  %v931_v56 = vshrl.u32 %v9276_v2, %v925_v10 }
 0x160   : > { %v934_v55 = vshrl.u32 %v9277_v46, %v925_v10  ;;  %v6052_v28 = vadd.s32 4294967169, %v1017_v14  ;;  %v930_v22 = vshll.u32 %v9275_v57, %v924_v19  ;;  %v933_v35 = vshll.u32 %v9276_v2, %v924_v19 }
 0x161   : > { %v873_v48 = vsub.s32 0, %v8621_v23  ;;  %v9282_v60 = vmov 920167782   ;;  %v676_v54 = vor.u32 %v675_v8, %v674_v26  ;;  %v680_v17 = vor.u32 4788187, %v679_v42 }
 0x162   : > { %v937_v0 = vshrl.u32 %v9282_v60, %v925_v10  ;;  %v923_v29 = vshrl.u32 %v922_v24, 5  ;;  %v936_v38 = vshll.u32 %v9277_v46, %v924_v19  ;;  %v929_v32 = vor.u32 %v928_v6, %v927_v51 }
 0x163   : > { %v6045_v50 = vmin.u32 %v873_v48, %v8621_v23  ;;  %v932_v18 = vor.u32 %v931_v56, %v930_v22  ;;  %v935_v44 = vor.u32 %v934_v55, %v933_v35  ;;  %v939_v14 = vshll.u32 %v9282_v60, %v924_v19 }
 0x164   : > { %v938_v11 = vor.u32 %v937_v0, %v936_v38  ;;  %v940_v53 = vshrl.u32 %v9278_v31, %v925_v10  ;;  %v958_v62 = vshll.u32 %v918_v36, 8  ;;  %v9283_v63 = vand.u32 2147483647, %v8190_v16 }
 0x165   : > { %v781_v24 = vadd.s32 127, %v780_v3  ;;  %v875_v26 = vclz %v6045_v50  ;;  %v926_v8 = vshrl.u32 %v9272_v34, %v925_v10  ;;  %v1023_v42 = vadd.s32 1, %v6052_v28 }
 0x166   : > { %vm8637_vm13 = vcmp.le.f32.partialorder %v9283_v63, 0.7853982  ;;  %vm500_vm14 = vcmp.lt.s32.totalorder %v8203_v33, 0  ;;  %v941_v6 = vor.u32 %v940_v53, %v939_v14  ;;  %vm942_vm15 = vcmp.lt.s32.totalorder %v923_v29, 1  ;;  %v8643_v19 = vpop.eup %7821 }
 0x167   : > { %vm944_vm0 = vcmp.lt.s32.totalorder %v923_v29, 3  ;;  %vm945_vm1 = vcmp.lt.s32.totalorder %v923_v29, 4  ;;  %v6046_v36 = vadd.s32 4294967294, %v875_v26  ;;  %v950_v56 = vsel %vm942_vm15, %v929_v32, %v932_v18 }
 0x168   : > { %v947_v51 = vsel %vm945_vm1, %v935_v44, 2102212464  ;;  %v951_v63 = vsel %vm945_vm1, %v938_v11, 920167782  ;;  %vm943_vm2 = vcmp.lt.s32.totalorder %v923_v29, 2  ;;  %v954_v48 = vsel %vm942_vm15, %v932_v18, %v935_v44 }
 0x169   : > { %v952_v55 = vsel %vm944_vm0, %v935_v44, %v951_v63  ;;  %v955_v3 = vsel %vm945_vm1, %v941_v6, 1326507024  ;;  %v946_v22 = vsel %vm942_vm15, %v926_v8, %v929_v32  ;;  %v948_v35 = vsel %vm944_vm0, %v932_v18, %v947_v51 }
 0x16a   : > { %v953_v10 = vsel %vm943_vm2, %v950_v56, %v952_v55  ;;  %v956_v28 = vsel %vm944_vm0, %v938_v11, %v955_v3  ;;  %v9286_v53 = vand.u32 2147483647, %v8203_v33  ;;  %vm6047_vm4 = vcmp.lt.s32.totalorder %v6046_v36, 0 }
 0x16b   : > { %v957_v38 = vsel %vm943_vm2, %v954_v48, %v956_v28  ;;  %v8653_v50 = vmul.u32.u64.low %v958_v62, %v953_v10  ;;  %v8654_v14 = vmul.u32.u64.high %v958_v62, %v953_v10, %v8653_v50  ;;  %v681_v44 = vand.u32 2147483647, %v680_v17 }
 0x16c   : > { %vm8648_vm3 = vcmp.le.f32.partialorder %v9286_v53, 0.7853982  ;;  %v760_v32 = vadd.s32 %v8492_v20, %v8490_v25  ;;  %v776_v18 = vsub.s32 32, %v8610_v61  ;;  %v9257_v11 = vand.u32 2147483647, %v8565_v1 }
 0x16d   : > { %v782_v26 = vshll.u32 %v781_v24, 23  ;;  %v8661_v8 = vmul.u32.u64.low %v958_v62, %v957_v38  ;;  %v8662_v6 = vmul.u32.u64.high %v958_v62, %v957_v38, %v8661_v8  ;;  %vm1024_vm5 = vcmp.gt.s32.totalorder %v1023_v42, 0 }
 0x16e   : > { %v683_v51 = vcvt.s32.f32 %v676_v54  ;;  %v8664_v56 = vsel %vm6047_vm4, 0, %v6046_v36  ;;  %v949_v63 = vsel %vm943_vm2, %v946_v22, %v948_v35  ;;  %v1025_v55 = vsel %vm1024_vm5, %v1023_v42, 0 }
 0x16f   : > { %7823 = vsinq.f32 %v8591_v37  ;;  %v483_v25 = vsel %vm8637_vm13, %v8190_v16, %v8615_v59  ;;  %v968_v20 = vadd.s32 1, %v8654_v14  ;;  %v1027_v17 = vand.u32 31, %v1025_v55 }
 0x170   : > { %v9289_v24 = vxor.u32 2147483648, %v8595_v7  ;;  %v684_v36 = vmul.f32 %v683_v51, %v681_v44  ;;  %v778_v29 = vshrl.u32 %v760_v32, %v776_v18  ;;  %v1020_v42 = vand.u32 8388607, %v9257_v11 }
 0x171   : > { %v783_v37 = vor.u32 4788187, %v782_v26  ;;  %v883_v48 = vsub.s32 4294967266, %v8664_v56  ;;  %v965_v3 = vmul.u32 %v958_v62, %v949_v63  ;;  %vm967_vm6 = vc.u32 %v8662_v6, %v8653_v50 }
 0x172   : > { %v583_v54 = vsel %vm500_vm14, %v9289_v24, %v8595_v7  ;;  %7825 = vcosq.f32 %v483_v25  ;;  %vm603_vm7 = vcmp.lt.s32.totalorder %v8309_v5, 0  ;;  %v777_v59 = vshll.u32 %v8547_v58, %v8610_v61 }
 0x173   : > { %v969_v7 = vsel %vm967_vm6, %v968_v20, %v8654_v14  ;;  %v1028_v22 = vsub.s32 32, %v1027_v17  ;;  %v484_v35 = vsel %vm8637_vm13, 0, %v8606_v43  ;;  %7827 = vsinq.f32 %v483_v25 }
 0x174   : > { %v970_v62 = vadd.s32 %v969_v7, %v965_v3  ;;  %v8694_v28 = vsel %vm8648_vm3, %v8203_v33, %v583_v54  ;;  %v685_v53 = vxor.u32 2147483648, %v684_v36  ;;  %v779_v38 = vor.u32 %v778_v29, %v777_v59 }
 0x175   : > { %v1021_v44 = vor.u32 8388608, %v1020_v42  ;;  %v784_v58 = vand.u32 2147483647, %v783_v37  ;;  %v879_v61 = vsub.s32 32, %v8664_v56  ;;  %v884_v14 = vadd.s32 127, %v883_v48 }
 0x176   : > { %v971_v32 = vadd.s32 536870912, %v970_v62  ;;  %v8697_v18 = vshrl.u32 %v1025_v55, 5  ;;  %v1031_v26 = vshrl.u32 %v9275_v57, %v1028_v22  ;;  %v1034_v8 = vshrl.u32 %v9276_v2, %v1028_v22 }
 0x177   : > { %v1037_v51 = vshrl.u32 %v9277_v46, %v1028_v22  ;;  %v1030_v25 = vshll.u32 %v9272_v34, %v1027_v17  ;;  %v1036_v20 = vshll.u32 %v9276_v2, %v1027_v17  ;;  %v1040_v24 = vshrl.u32 %v9282_v60, %v1028_v22 }
 0x178   : > { %v8702_v63 = vshrl.u32 %v971_v32, 30  ;;  %v1033_v54 = vshll.u32 %v9275_v57, %v1027_v17  ;;  %v1039_v29 = vshll.u32 %v9277_v46, %v1027_v17  ;;  %v1042_v55 = vshll.u32 %v9282_v60, %v1027_v17 }
 0x179   : > { %v1043_v42 = vshrl.u32 %v9278_v31, %v1028_v22  ;;  %v8711_v37 = vpop.eup %7823  ;;  %v786_v48 = vcvt.s32.f32 %v779_v38  ;;  %v863_v3 = vadd.s32 %v8555_v47, %v8560_v41  ;;  %v1038_v7 = vor.u32 %v1037_v51, %v1036_v20 }
 0x17a   : > { %v973_v59 = vshll.u32 %v8702_v63, 30  ;;  %v1032_v2 = vor.u32 %v1031_v26, %v1030_v25  ;;  %v1035_v32 = vor.u32 %v1034_v8, %v1033_v54  ;;  %v1041_v11 = vor.u32 %v1040_v24, %v1039_v29 }
 0x17b   : > { %v1044_v10 = vor.u32 %v1043_v42, %v1042_v55  ;;  %v686_v57 = vsel %vm603_vm7, %v685_v53, %v684_v36  ;;  %v881_v46 = vshrl.u32 %v863_v3, %v879_v61  ;;  %v885_v60 = vshll.u32 %v884_v14, 23 }
 0x17c   : > { %v8718_v17 = vsub.s32 %v970_v62, %v973_v59  ;;  %v8720_v31 = vpop.eup %7825  ;;  %v9290_v38 = vand.u32 2147483647, %v8309_v5  ;;  %v8728_v41 = vmul.f32 %v786_v48, %v784_v58  ;;  %v880_v26 = vshll.u32 %v8621_v23, %v8664_v56 }
 0x17d   : > { %vm1048_vm9 = vcmp.lt.s32.totalorder %v8697_v18, 4  ;;  %v1061_v36 = vshll.u32 %v1021_v44, 8  ;;  %v8733_v53 = vpop.eup %7827  ;;  %v1029_v61 = vshrl.u32 %v9272_v34, %v1028_v22  ;;  %vm1045_vm10 = vcmp.lt.s32.totalorder %v8697_v18, 1 }
 0x17e   : > { %vm8724_vm8 = vcmp.le.f32.partialorder %v9290_v38, 0.7853982  ;;  %v976_v62 = vsub.s32 0, %v8718_v17  ;;  %v1050_v14 = vsel %vm1048_vm9, %v1038_v7, 2102212464  ;;  %v1053_v8 = vsel %vm1045_vm10, %v1032_v2, %v1035_v32 }
 0x17f   : > { %v1054_v51 = vsel %vm1048_vm9, %v1041_v11, 920167782  ;;  %v1057_v25 = vsel %vm1045_vm10, %v1035_v32, %v1038_v7  ;;  %v1058_v58 = vsel %vm1048_vm9, %v1044_v10, 1326507024  ;;  %v882_v20 = vor.u32 %v881_v46, %v880_v26 }
 0x180   : > { %v886_v24 = vor.u32 4788187, %v885_v60  ;;  %v6049_v23 = vmin.u32 %v976_v62, %v8718_v17  ;;  %vm1047_vm11 = vcmp.lt.s32.totalorder %v8697_v18, 3  ;;  %vm1046_vm12 = vcmp.lt.s32.totalorder %v8697_v18, 2 }
 0x181   : > { %v1049_v56 = vsel %vm1045_vm10, %v1029_v61, %v1032_v2  ;;  %v1055_v44 = vsel %vm1047_vm11, %v1038_v7, %v1054_v51  ;;  %v1059_v54 = vsel %vm1047_vm11, %v1041_v11, %v1058_v58  ;;  %v1051_v34 = vsel %vm1047_vm11, %v1035_v32, %v1050_v14 }
 0x182   : > { %v978_v29 = vclz %v6049_v23  ;;  %v1056_v22 = vsel %vm1046_vm12, %v1053_v8, %v1055_v44  ;;  %v1060_v55 = vsel %vm1046_vm12, %v1057_v25, %v1059_v54  ;;  %v8756_v11 = vand.u32 3, %v484_v35 }
 0x183   : > { %v8745_v10 = vmul.u32.u64.low %v1061_v36, %v1060_v55  ;;  %v8746_v42 = vmul.u32.u64.high %v1061_v36, %v1060_v55, %v8745_v10  ;;  %v8748_v48 = vmul.u32.u64.low %v1061_v36, %v1056_v22  ;;  %v8749_v3 = vmul.u32.u64.high %v1061_v36, %v1056_v22, %v8748_v48 }
 0x184   : > { %7829 = vcosq.f32 %v8694_v28  ;;  %v887_v59 = vand.u32 2147483647, %v886_v24  ;;  %v6050_v7 = vadd.s32 4294967294, %v978_v29  ;;  %v9293_v2 = vsub.s32 4, %v8413_v9 }
 0x185   : > { %7831 = vsinq.f32 %v8694_v28  ;;  %v9294_v46 = vand.u32 2147483647, %v8398_v4  ;;  %vm706_vm13 = vcmp.lt.s32.totalorder %v8398_v4, 0  ;;  %v1052_v43 = vsel %vm1046_vm12, %v1049_v56, %v1051_v34 }
 0x186   : > { %v585_v32 = vsel %vm500_vm14, %v9293_v2, %v8413_v9  ;;  %vm387_vm0 = vcmp.eq.s32.totalorder %v8597_v27, 0  ;;  %v689_v35 = vsel %vm8724_vm8, %v8309_v5, %v686_v57  ;;  %v788_v9 = vxor.u32 2147483648, %v8728_v41 }
 0x187   : > { %vm8767_vm15 = vcmp.le.f32.partialorder %v9294_v46, 0.7853982  ;;  %v889_v28 = vcvt.s32.f32 %v882_v20  ;;  %vm6051_vm14 = vcmp.lt.s32.totalorder %v6050_v7, 0  ;;  %v966_v60 = vadd.s32 %v8653_v50, %v8662_v6 }
 0x188   : > { %v981_v38 = vsel %vm6051_vm14, 0, %v6050_v7  ;;  %vm1070_vm1 = vc.u32 %v8746_v42, %v8748_v48  ;;  %v1071_v18 = vadd.s32 1, %v8749_v3  ;;  %v1068_v14 = vmul.u32 %v1061_v36, %v1052_v43 }
 0x189   : > { %v890_v26 = vmul.f32 %v889_v28, %v887_v59  ;;  %v982_v62 = vsub.s32 32, %v981_v38  ;;  %v986_v61 = vsub.s32 4294967266, %v981_v38  ;;  %v391_v8 = vxor.u32 2147483648, %v8643_v19 }
 0x18a   : > { %v587_v57 = vsel %vm8648_vm3, 0, %v585_v32  ;;  %v687_v51 = vsub.s32 4, %v8462_v40  ;;  %v1072_v25 = vsel %vm1070_vm1, %v1071_v18, %v8749_v3  ;;  %vm386_vm2 = vcmp.lt.s32.totalorder %v8597_v27, 2 }
 0x18b   : > { %v983_v50 = vshll.u32 %v8718_v17, %v981_v38  ;;  %v984_v6 = vshrl.u32 %v966_v60, %v982_v62  ;;  %v987_v58 = vadd.s32 127, %v986_v61  ;;  %v1073_v20 = vadd.s32 %v1072_v25, %v1068_v14 }
 0x18c   : > { %v388_v24 = vxor.u32 2147483648, %v8711_v37  ;;  %vm390_vm4 = vcmp.eq.s32.totalorder %v8597_v27, 2  ;;  %7833 = vcosq.f32 %v689_v35  ;;  %v789_v0 = vsel %vm706_vm13, %v788_v9, %v8728_v41 }
 0x18d   : > { %v891_v36 = vxor.u32 2147483648, %v890_v26  ;;  %v985_v23 = vor.u32 %v984_v6, %v983_v50  ;;  %v988_v56 = vshll.u32 %v987_v58, 23  ;;  %v1074_v44 = vadd.s32 536870912, %v1073_v20 }
 0x18e   : > { %v392_v54 = vsel %vm390_vm4, %v391_v8, %v8711_v37  ;;  %vm490_vm3 = vcmp.eq.s32.totalorder %v8756_v11, 0  ;;  %v8798_v17 = vand.u32 3, %v587_v57  ;;  %v688_v29 = vsel %vm603_vm7, %v687_v51, %v8462_v40  ;;  %v7830_v34 = vpop.eup %7829 }
 0x18f   : > { %vm489_vm5 = vcmp.lt.s32.totalorder %v8756_v11, 2  ;;  %7835 = vsinq.f32 %v689_v35  ;;  %v792_v41 = vsel %vm8767_vm15, %v8398_v4, %v789_v0  ;;  %v989_v22 = vor.u32 4788187, %v988_v56  ;;  %v7832_v37 = vpop.eup %7831 }
 0x190   : > { %v8807_v55 = vshrl.u32 %v1074_v44, 30  ;;  %vm384_vm6 = vweird.f32 %v8186_v15  ;;  %v389_v10 = vsel %vm387_vm0, %v8643_v19, %v388_v24  ;;  %v491_v40 = vxor.u32 2147483648, %v8733_v53 }
 0x191   : > { %v494_v3 = vxor.u32 2147483648, %v8720_v31  ;;  %vm809_vm7 = vcmp.lt.s32.totalorder %v8451_v30, 0  ;;  %v990_v7 = vand.u32 2147483647, %v989_v22  ;;  %v992_v2 = vcvt.s32.f32 %v985_v23 }
 0x192   : > { %v892_v59 = vsel %vm809_vm7, %v891_v36, %v890_v26  ;;  %v1076_v32 = vshll.u32 %v8807_v55, 30  ;;  %vm487_vm9 = vweird.f32 %v8190_v16  ;;  %vm493_vm10 = vcmp.eq.s32.totalorder %v8756_v11, 2 }
 0x193   : > { %v690_v19 = vsel %vm8724_vm8, 0, %v688_v29  ;;  %7837 = vcosq.f32 %v792_v41  ;;  %v9297_v46 = vand.u32 2147483647, %v8451_v30  ;;  %v790_v35 = vsub.s32 4, %v8534_v39 }
 0x194   : > { %7839 = vsinq.f32 %v792_v41  ;;  %v993_v9 = vmul.f32 %v992_v2, %v990_v7  ;;  %v8830_v28 = vsub.s32 %v1073_v20, %v1076_v32  ;;  %v393_v60 = vsel %vm386_vm2, %v389_v10, %v392_v54  ;;  %v8874_v54 = vpop.permute.xlu0 %281 }
 0x195   : > { %vm8825_vm11 = vcmp.le.f32.partialorder %v9297_v46, 0.7853982  ;;  %v495_v38 = vsel %vm493_vm10, %v494_v3, %v8733_v53  ;;  %vm592_vm8 = vcmp.lt.s32.totalorder %v8798_v17, 2  ;;  %v492_v18 = vsel %vm490_vm3, %v8720_v31, %v491_v40 }
 0x196   : > { %v895_v47 = vsel %vm8825_vm11, %v8451_v30, %v892_v59  ;;  %v8842_v26 = vand.u32 3, %v690_v19  ;;  %v994_v62 = vxor.u32 2147483648, %v993_v9  ;;  %v1079_v61 = vsub.s32 0, %v8830_v28  ;;  %v7834_v14 = vpop.eup %7833 }
 0x197   : > { %v594_v27 = vxor.u32 2147483648, %v7832_v37  ;;  %v597_v8 = vxor.u32 2147483648, %v7830_v34  ;;  %v9300_v53 = vand.u32 2147483647, %v8512_v52  ;;  %vm912_vm0 = vcmp.lt.s32.totalorder %v8512_v52, 0 }
 0x198   : > { %v791_v31 = vsel %vm706_vm13, %v790_v35, %v8534_v39  ;;  %7841 = vcosq.f32 %v895_v47  ;;  %v995_v51 = vsel %vm912_vm0, %v994_v62, %v993_v9  ;;  %v6053_v25 = vmin.u32 %v1079_v61, %v8830_v28 }
 0x199   : > { %vm8847_vm12 = vcmp.le.f32.partialorder %v9300_v53, 0.7853982  ;;  %v496_v50 = vsel %vm489_vm5, %v492_v18, %v495_v38  ;;  %vm590_vm14 = vweird.f32 %v8203_v33  ;;  %v893_v6 = vsub.s32 4, %v8599_v45  ;;  %v7836_v20 = vpop.eup %7835 }
 0x19a   : > { %7843 = vsinq.f32 %v895_v47  ;;  %v998_v58 = vsel %vm8847_vm12, %v8512_v52, %v995_v51  ;;  %v394_v39 = vsel %vm384_vm6, nan, %v393_v60  ;;  %vm593_vm13 = vcmp.eq.s32.totalorder %v8798_v17, 0  ;;  %v9309_v51 = vld [vmem:[#allocation11_spill] sm:$0xff] }
 0x19b   : > { %vm596_vm1 = vcmp.eq.s32.totalorder %v8798_v17, 2  ;;  %v1081_v24 = vclz %v6053_v25  ;;  %v595_v11 = vsel %vm593_vm13, %v7830_v34, %v594_v27  ;;  %v700_v36 = vxor.u32 2147483648, %v7834_v14 }
 0x19c   : > { %v598_v0 = vsel %vm596_vm1, %v597_v8, %v7832_v37  ;;  %v793_v23 = vsel %vm8767_vm15, 0, %v791_v31  ;;  %v497_v56 = vsel %vm487_vm9, nan, %v496_v50  ;;  %vm695_vm2 = vcmp.lt.s32.totalorder %v8842_v26, 2 }
 0x19d   : > { %7845 = vcosq.f32 %v998_v58  ;;  %v6054_v44 = vadd.s32 4294967294, %v1081_v24  ;;  %v7838_v15 = vpop.eup %7837  ;;  %vm696_vm4 = vcmp.eq.s32.totalorder %v8842_v26, 0  ;;  %v697_v29 = vxor.u32 2147483648, %v7836_v20 }
 0x19e   : > { %v894_v34 = vsel %vm809_vm7, %v893_v6, %v8599_v45  ;;  %7847 = vsinq.f32 %v998_v58  ;;  %v7840_v21 = vpop.eup %7839  ;;  %v599_v16 = vsel %vm592_vm8, %v595_v11, %v598_v0  ;;  %vm693_vm15 = vweird.f32 %v8309_v5 }
 0x19f   : > { %vm699_vm3 = vcmp.eq.s32.totalorder %v8842_v26, 2  ;;  %v797_v41 = vand.u32 3, %v793_v23  ;;  %vm6055_vm5 = vcmp.lt.s32.totalorder %v6054_v44, 0  ;;  %v996_v37 = vsub.s32 4, %v8702_v63 }
 0x1a0   : > { %v701_v22 = vsel %vm699_vm3, %v700_v36, %v7836_v20  ;;  %v1084_v10 = vsel %vm6055_vm5, 0, %v6054_v44  ;;  %v1116_v40 = vmul.f32 0.5, %v394_v39  ;;  %v9303_v3 = vand.u32 2147483647, %v8178_v12 }
 0x1a1   : > { %v9306_v17 = vand.u32 2147483647, %v8180_v13  ;;  %v896_v7 = vsel %vm8825_vm11, 0, %v894_v34  ;;  %v1069_v2 = vadd.s32 %v8748_v48, %v8746_v42  ;;  %v1085_v32 = vsub.s32 32, %v1084_v10 }
 0x1a2   : > { %vm8888_vm6 = vcmp.le.f32.partialorder %v9303_v3, %v8874_v54  ;;  %v1089_v19 = vsub.s32 4294967266, %v1084_v10  ;;  %v698_v12 = vsel %vm696_vm4, %v7834_v14, %v697_v29  ;;  %v800_v46 = vxor.u32 2147483648, %v7840_v21  ;;  %v7842_v60 = vpop.eup %7841  ;;  %v6865_v3 = vld [vmem:[#allocation5 + $0x54] ss:$40 sps:$4 sm:$0xff]  }
 0x1a3   : > { %vm8895_vm7 = vcmp.le.f32.partialorder %v9306_v17, %v8874_v54  ;;  %v803_v35 = vxor.u32 2147483648, %v7838_v15  ;;  %v1117_v9 = vmul.f32 0.5, %v497_v56  ;;  %v600_v13 = vsel %vm590_vm14, nan, %v599_v16 }
 0x1a4   : > { %v1086_v38 = vshll.u32 %v8830_v28, %v1084_v10  ;;  %v1087_v47 = vshrl.u32 %v1069_v2, %v1085_v32  ;;  %v1090_v43 = vadd.s32 127, %v1089_v19  ;;  %v7844_v18 = vpop.eup %7843  ;;  %vm799_vm9 = vcmp.eq.s32.totalorder %v797_v41, 0 }
 0x1a5   : > { %vm802_vm10 = vcmp.eq.s32.totalorder %v797_v41, 2  ;;  %v900_v42 = vand.u32 3, %v896_v7  ;;  %v997_v48 = vsel %vm912_vm0, %v996_v37, %v8702_v63  ;;  %v702_v62 = vsel %vm695_vm2, %v698_v12, %v701_v22 }
 0x1a6   : > { %v1088_v61 = vor.u32 %v1087_v47, %v1086_v38  ;;  %v1091_v14 = vshll.u32 %v1090_v43, 23  ;;  %v1124_v27 = vadd.f32 0.5, %v1116_v40  ;;  %v801_v33 = vsel %vm799_vm9, %v7838_v15, %v800_v46 }
 0x1a7   : > { %v804_v8 = vsel %vm802_vm10, %v803_v35, %v7840_v21  ;;  %v906_v53 = vxor.u32 2147483648, %v7842_v60  ;;  %v1125_v28 = vadd.f32 0.5, %v1117_v9  ;;  %v7846_v31 = vpop.eup %7845  ;;  %v9310_v25 = vand.u32 2147483647, %v9309_v51  ;;  %v9316_v9 = vld [vmem:[#allocation12_spill] sm:$0xff] }
 0x1a8   : > { %vm796_vm8 = vweird.f32 %v8398_v4  ;;  %v903_v63 = vxor.u32 2147483648, %v7844_v18  ;;  %v999_v26 = vsel %vm8847_vm12, 0, %v997_v48  ;;  %v1092_v6 = vor.u32 4788187, %v1091_v14  ;;  %v7848_v58 = vpop.eup %7847 }
 0x1a9   : > { %vm8916_vm11 = vcmp.le.f32.partialorder %v9310_v25, %v8874_v54  ;;  %v703_v20 = vsel %vm693_vm15, nan, %v702_v62  ;;  %vm798_vm0 = vcmp.lt.s32.totalorder %v797_v41, 2  ;;  %vm899_vm14 = vweird.f32 %v8451_v30 }
 0x1aa   : > { %vm902_vm13 = vcmp.eq.s32.totalorder %v900_v42, 0  ;;  %v1118_v39 = vmul.f32 0.5, %v600_v13  ;;  %v805_v24 = vsel %vm798_vm0, %v801_v33, %v804_v8  ;;  %vm905_vm1 = vcmp.eq.s32.totalorder %v900_v42, 2 }
 0x1ab   : > { %v1093_v11 = vand.u32 2147483647, %v1092_v6  ;;  %v1095_v0 = vcvt.s32.f32 %v1088_v61  ;;  %v907_v36 = vsel %vm905_vm1, %v906_v53, %v7844_v18  ;;  %v1003_v23 = vand.u32 3, %v999_v26 }
 0x1ac   : > { %v8928_v57 = vsel %vm8888_vm6, %v1124_v27, 0.0  ;;  %v8932_v56 = vsel %vm8895_vm7, %v1125_v28, 0.0  ;;  %v904_v5 = vsel %vm902_vm13, %v7842_v60, %v903_v63  ;;  %v1006_v44 = vxor.u32 2147483648, %v7848_v58  ;;  %v9319_v28 = vld [vmem:[#allocation14_spill] sm:$0xff] }
 0x1ad   : > { %v1009_v15 = vxor.u32 2147483648, %v7846_v31  ;;  %v1096_v29 = vmul.f32 %v1095_v0, %v1093_v11  ;;  %vm901_vm12 = vcmp.lt.s32.totalorder %v900_v42, 2  ;;  %vm1015_vm2 = vcmp.lt.s32.totalorder %v8565_v1, 0 }
 0x1ae   : > { %v1119_v34 = vmul.f32 0.5, %v703_v20  ;;  %v1126_v21 = vadd.f32 0.5, %v1118_v39  ;;  %v806_v16 = vsel %vm796_vm8, nan, %v805_v24  ;;  %v1140_v22 = vmul.f32 %v8928_v57, %v8928_v57 }
 0x1af   : > { %v1097_v41 = vxor.u32 2147483648, %v1096_v29  ;;  %v1141_v37 = vmul.f32 %v8932_v56, %v8932_v56  ;;  %v908_v10 = vsel %vm901_vm12, %v904_v5, %v907_v36  ;;  %vm1005_vm4 = vcmp.eq.s32.totalorder %v1003_v23, 0  ;;  %v9320_v36 = vld [vmem:[#allocation15_spill] sm:$0xff] }
 0x1b0   : > { %vm1008_vm15 = vcmp.eq.s32.totalorder %v1003_v23, 2  ;;  %v9313_v40 = vand.u32 2147483647, %v8565_v1  ;;  %v1007_v45 = vsel %vm1005_vm4, %v7846_v31, %v1006_v44  ;;  %v1099_v59 = vsub.s32 4, %v8807_v55 }
 0x1b1   : > { %v1010_v17 = vsel %vm1008_vm15, %v1009_v15, %v7848_v58  ;;  %v1098_v4 = vsel %vm1015_vm2, %v1097_v41, %v1096_v29  ;;  %v1120_v2 = vmul.f32 0.5, %v806_v16  ;;  %v1127_v32 = vadd.f32 0.5, %v1119_v34 }
 0x1b2   : > { %vm8943_vm3 = vcmp.le.f32.partialorder %v9313_v40, 0.7853982  ;;  %v8955_v19 = vsel %vm8916_vm11, %v1126_v21, 0.0  ;;  %v909_v12 = vsel %vm899_vm14, nan, %v908_v10  ;;  %vm1004_vm5 = vcmp.lt.s32.totalorder %v1003_v23, 2 }
 0x1b3   : > { %v1101_v7 = vsel %vm8943_vm3, %v8565_v1, %v1098_v4  ;;  %v1148_v46 = vadd.f32 %v1141_v37, %v1140_v22  ;;  %v1011_v35 = vsel %vm1004_vm5, %v1007_v45, %v1010_v17  ;;  %v275_v60 = vand.u32 2147483647, %v9316_v9  ;;  %v6859_v22 = vld [vmem:[#allocation5 + $0x4] ss:$40 sps:$4 sm:$0xff]   ;;  %v6863_v10 = vld [vmem:[#allocation5] ss:$40 sps:$4 sm:$0xff]  }
 0x1b4   : > { %7849 = vcosq.f32 %v1101_v7  ;;  %v9317_v13 = vand.u32 2147483647, %v8275_v49  ;;  %v1100_v38 = vsel %vm1015_vm2, %v1099_v59, %v8807_v55  ;;  %v1142_v47 = vmul.f32 %v8955_v19, %v8955_v19  ;;  %v9318_v49 = vld [vmem:[#allocation13_spill] sm:$0xff]  ;;  %v6867_v45 = vld [vmem:[#allocation5 + $0xa54] ss:$40 sps:$4 sm:$0xff]   ;;  %5058 = vmatprep.subr.bf16.mxu1 %v6859_v22 }
 0x1b5   : > { %7851 = vsinq.f32 %v1101_v7  ;;  %vm1002_vm7 = vweird.f32 %v8512_v52  ;;  %v1121_v30 = vmul.f32 0.5, %v909_v12  ;;  %v1128_v43 = vadd.f32 0.5, %v1120_v2  ;;  %v6861_v37 = vld [vmem:[#allocation5 + $0xa04] ss:$40 sps:$4 sm:$0xff]   ;;  %v6864_v40 = vld [vmem:[#allocation5 + $0xa00] ss:$40 sps:$4 sm:$0xff]   ;;  %5059 = vmatpush1.bf16.msra.mxu1 %v6863_v10 }
 0x1b6   : > { %vm287_vm6 = vcmp.le.f32.partialorder %v9317_v13, %v8874_v54  ;;  %v1012_v42 = vsel %vm1002_vm7, nan, %v1011_v35  ;;  %v1149_v48 = vadd.f32 %v1148_v46, %v1142_v47  ;;  %v1102_v62 = vsel %vm8943_vm3, 0, %v1100_v38  ;;  %5140 = vmatprep.subr.bf16.mxu0 %v6861_v37  ;;  %v6869_v17 = vld [vmem:[#allocation5 + $0x50] ss:$40 sps:$4 sm:$0xff]   ;;  %5060 = vmatprep.subr.bf16.mxu1 %v6865_v3  ;;  %v6871_v4 = vld [vmem:[#allocation5 + $0xa4] ss:$40 sps:$4 sm:$0xff]  }
 0x1b7   : > { %v8969_v18 = vsel %vm287_vm6, %v1127_v32, 0.0  ;;  %v276_v61 = vand.u32 2147483647, %v9318_v49  ;;  %vm288_vm9 = vcmp.le.f32.partialorder %v275_v60, %v8874_v54  ;;  %v1122_v14 = vmul.f32 0.5, %v1012_v42  ;;  %5141 = vmatpush1.bf16.msra.mxu0 %v6864_v40  ;;  %v6873_v59 = vld [vmem:[#allocation5 + $0xaa4] ss:$40 sps:$4 sm:$0xff]  }
 0x1b8   : > { %v1143_v55 = vmul.f32 %v8969_v18, %v8969_v18  ;;  %v1129_v27 = vadd.f32 0.5, %v1121_v30  ;;  %v8977_v33 = vsel %vm288_vm9, %v1128_v43, 0.0  ;;  %v1106_v52 = vand.u32 3, %v1102_v62  ;;  %5142 = vmatprep.subr.bf16.mxu0 %v6867_v45  ;;  %v6875_v7 = vld [vmem:[#allocation5 + $0xa0] ss:$40 sps:$4 sm:$0xff]  }
 0x1b9   : > { %v277_v31 = vand.u32 2147483647, %v9319_v28  ;;  %vm289_vm10 = vcmp.le.f32.partialorder %v276_v61, %v8874_v54  ;;  %v1144_v51 = vmul.f32 %v8977_v33, %v8977_v33  ;;  %v1130_v63 = vadd.f32 0.5, %v1122_v14  ;;  %5061 = vmatpush1.bf16.msra.mxu1 %v6869_v17  ;;  %v6876_v2 = vld [vmem:[#allocation5 + $0xaa0] ss:$40 sps:$4 sm:$0xff]  }
 0x1ba   : > { %v1150_v8 = vadd.f32 %v1149_v48, %v1143_v55  ;;  %v8983_v26 = vsel %vm289_vm10, %v1129_v27, 0.0  ;;  %vm1111_vm11 = vcmp.eq.s32.totalorder %v1106_v52, 2  ;;  %vm1108_vm8 = vcmp.eq.s32.totalorder %v1106_v52, 0  ;;  %5062 = vmatprep.subr.bf16.mxu1 %v6871_v4  ;;  %v6877_v32 = vld [vmem:[#allocation5 + $0xf4] ss:$40 sps:$4 sm:$0xff]   ;;  %v223_v40 = vld [vmem:[%s8159_s7 + $0x20] sm:$0xff] }
 0x1bb   : > { %vm290_vm0 = vcmp.le.f32.partialorder %v277_v31, %v8874_v54  ;;  %vm1107_vm14 = vcmp.lt.s32.totalorder %v1106_v52, 2  ;;  %v1145_v24 = vmul.f32 %v8983_v26, %v8983_v26  ;;  %vm1105_vm13 = vweird.f32 %v8565_v1  ;;  %v6879_v12 = vld [vmem:[#allocation5 + $0xaf4] ss:$40 sps:$4 sm:$0xff]   ;;  %v6881_v46 = vld [vmem:[#allocation5 + $0xf0] ss:$40 sps:$4 sm:$0xff]  }
 0x1bc   : > { %v1151_v58 = vadd.f32 %v1150_v8, %v1144_v51  ;;  %v8989_v0 = vsel %vm290_vm0, %v1130_v63, 0.0  ;;  %v278_v23 = vand.u32 2147483647, %v9320_v36  ;;  %v6882_v35 = vld [vmem:[#allocation5 + $0xaf0] ss:$40 sps:$4 sm:$0xff]  }
 0x1bd   : > { %v1146_v29 = vmul.f32 %v8989_v0, %v8989_v0  ;;  %5063 = vmatpush1.bf16.msra.mxu1 %v6875_v7  ;;  %v6883_v9 = vld [vmem:[#allocation5 + $0x144] ss:$40 sps:$4 sm:$0xff]   ;;  %v6887_v13 = vld [vmem:[#allocation5 + $0x140] ss:$40 sps:$4 sm:$0xff]   ;;  %v6889_v47 = vld [vmem:[#allocation5 + $0x194] ss:$40 sps:$4 sm:$0xff]  }
 0x1be   : > { %v7850_v53 = vpop.eup %7849  ;;  %v1152_v44 = vadd.f32 %v1151_v58, %v1145_v24  ;;  %vm291_vm1 = vcmp.le.f32.partialorder %v278_v23, %v8874_v54  ;;  %v6870_v54 = vld [vmem:[#allocation5 + $0xa50] ss:$40 sps:$4 sm:$0xff]   ;;  %5064 = vmatprep.subr.bf16.mxu1 %v6877_v32  ;;  %v6885_v60 = vld [vmem:[#allocation5 + $0xb44] ss:$40 sps:$4 sm:$0xff]   ;;  %v6888_v38 = vld [vmem:[#allocation5 + $0xb40] ss:$40 sps:$4 sm:$0xff]  }
 0x1bf   : > { %v7852_v25 = vpop.eup %7851  ;;  %v1112_v50 = vxor.u32 2147483648, %v7850_v53  ;;  %5143 = vmatpush1.bf16.msra.mxu0 %v6870_v54  ;;  %v6891_v30 = vld [vmem:[#allocation5 + $0xb94] ss:$40 sps:$4 sm:$0xff]   ;;  %v6893_v43 = vld [vmem:[#allocation5 + $0x190] ss:$40 sps:$4 sm:$0xff]   ;;  %v224_v54 = vld [vmem:[%s8159_s7 + $0x28] sm:$0xff] }
 0x1c0   : > { %v1109_v6 = vxor.u32 2147483648, %v7852_v25  ;;  %v1153_v21 = vadd.f32 %v1152_v44, %v1146_v29  ;;  %5144 = vmatprep.subr.bf16.mxu0 %v6873_v59  ;;  %v6894_v42 = vld [vmem:[#allocation5 + $0xb90] ss:$40 sps:$4 sm:$0xff]   ;;  %v6895_v48 = vld [vmem:[#allocation5 + $0x1e4] ss:$40 sps:$4 sm:$0xff]  }
 0x1c1   : > { %v1113_v20 = vsel %vm1111_vm11, %v1112_v50, %v7852_v25  ;;  %5065 = vmatpush1.bf16.msra.mxu1 %v6881_v46  ;;  %v6897_v62 = vld [vmem:[#allocation5 + $0xbe4] ss:$40 sps:$4 sm:$0xff]   ;;  %v6899_v49 = vld [vmem:[#allocation5 + $0x1e0] ss:$40 sps:$4 sm:$0xff]   ;;  %v6901_v55 = vld [vmem:[#allocation5 + $0x234] ss:$40 sps:$4 sm:$0xff]  }
 0x1c2   : > { %v1110_v39 = vsel %vm1108_vm8, %v7850_v53, %v1109_v6  ;;  %5066 = vmatprep.subr.bf16.mxu1 %v6883_v9  ;;  %v6900_v61 = vld [vmem:[#allocation5 + $0xbe0] ss:$40 sps:$4 sm:$0xff]   ;;  %v6903_v14 = vld [vmem:[#allocation5 + $0xc34] ss:$40 sps:$4 sm:$0xff]   ;;  %v6905_v27 = vld [vmem:[#allocation5 + $0x230] ss:$40 sps:$4 sm:$0xff]  }
 0x1c3   : > { %v1114_v11 = vsel %vm1107_vm14, %v1110_v39, %v1113_v20  ;;  %5145 = vmatpush1.bf16.msra.mxu0 %v6876_v2  ;;  %v6906_v52 = vld [vmem:[#allocation5 + $0xc30] ss:$40 sps:$4 sm:$0xff]   ;;  %v6907_v8 = vld [vmem:[#allocation5 + $0x284] ss:$40 sps:$4 sm:$0xff]   ;;  %v6911_v28 = vld [vmem:[#allocation5 + $0x280] ss:$40 sps:$4 sm:$0xff]  }
 0x1c4   : > { %v1115_v5 = vsel %vm1105_vm13, nan, %v1114_v11  ;;  %5146 = vmatprep.subr.bf16.mxu0 %v6879_v12  ;;  %v6909_v53 = vld [vmem:[#allocation5 + $0xc84] ss:$40 sps:$4 sm:$0xff]   ;;  %v6912_v31 = vld [vmem:[#allocation5 + $0xc80] ss:$40 sps:$4 sm:$0xff]  }
 0x1c5   : > { %v1123_v15 = vmul.f32 0.5, %v1115_v5  ;;  %5067 = vmatpush1.bf16.msra.mxu1 %v6887_v13  ;;  %v6913_v51 = vld [vmem:[#allocation5 + $0x2d4] ss:$40 sps:$4 sm:$0xff]   ;;  %v6917_v50 = vld [vmem:[#allocation5 + $0x2d0] ss:$40 sps:$4 sm:$0xff]   ;;  %v219_v5 = vld [vmem:[%s8159_s7] sm:$0xff] }
 0x1c6   : > { %5068 = vmatprep.subr.bf16.mxu1 %v6889_v47  ;;  %v6915_v25 = vld [vmem:[#allocation5 + $0xcd4] ss:$40 sps:$4 sm:$0xff]   ;;  %v6918_v63 = vld [vmem:[#allocation5 + $0xcd0] ss:$40 sps:$4 sm:$0xff]   ;;  %v6919_v6 = vld [vmem:[#allocation5 + $0x324] ss:$40 sps:$4 sm:$0xff]  }
 0x1c7   : > { %v1131_v34 = vadd.f32 0.5, %v1123_v15  ;;  %5147 = vmatpush1.bf16.msra.mxu0 %v6882_v35  ;;  %v6921_v58 = vld [vmem:[#allocation5 + $0xd24] ss:$40 sps:$4 sm:$0xff]   ;;  %v6923_v20 = vld [vmem:[#allocation5 + $0x320] ss:$40 sps:$4 sm:$0xff]  }
 0x1c8   : > { %5148 = vmatprep.subr.bf16.mxu0 %v6885_v60  ;;  %v6924_v39 = vld [vmem:[#allocation5 + $0xd20] ss:$40 sps:$4 sm:$0xff]   ;;  %v6925_v24 = vld [vmem:[#allocation5 + $0x374] ss:$40 sps:$4 sm:$0xff]  }
 0x1c9   : > { %v8995_v16 = vsel %vm291_vm1, %v1131_v34, 0.0  ;;  %5069 = vmatpush1.bf16.msra.mxu1 %v6893_v43  ;;  %v6927_v11 = vld [vmem:[#allocation5 + $0xd74] ss:$40 sps:$4 sm:$0xff]   ;;  %v220_v44 = vld [vmem:[%s8159_s7 + $0x8] sm:$0xff]  ;;  %v6929_v43 = vld [vmem:[#allocation5 + $0x370] ss:$40 sps:$4 sm:$0xff]  }
 0x1ca   : > { %v1147_v1 = vmul.f32 %v8995_v16, %v8995_v16  ;;  %5070 = vmatprep.subr.bf16.mxu1 %v6895_v48  ;;  %v6931_v48 = vld [vmem:[#allocation5 + $0x3c4] ss:$40 sps:$4 sm:$0xff]  }
 0x1cb   : > { %5149 = vmatpush1.bf16.msra.mxu0 %v6888_v38 }
 0x1cc   : > { %v1154_v41 = vadd.f32 %v1153_v21, %v1147_v1  ;;  %5150 = vmatprep.subr.bf16.mxu0 %v6891_v30  ;;  %v221_v21 = vld [vmem:[%s8159_s7 + $0x10] sm:$0xff] }
 0x1cd   : > { %5071 = vmatpush1.bf16.msra.mxu1 %v6899_v49  ;;  %v6935_v49 = vld [vmem:[#allocation5 + $0x3c0] ss:$40 sps:$4 sm:$0xff]  }
 0x1ce   : > { %1155 = vadd.xlane.f32.xlu1 %v1154_v41  ;;  %5072 = vmatprep.subr.bf16.mxu1 %v6901_v55  ;;  %v6937_v55 = vld [vmem:[#allocation5 + $0x414] ss:$40 sps:$4 sm:$0xff]  }
 0x1cf   : > { %5151 = vmatpush1.bf16.msra.mxu0 %v6894_v42  ;;  %v6930_v42 = vld [vmem:[#allocation5 + $0xd70] ss:$40 sps:$4 sm:$0xff]  }
 0x1d0   : > { %5152 = vmatprep.subr.bf16.mxu0 %v6897_v62  ;;  %v6933_v62 = vld [vmem:[#allocation5 + $0xdc4] ss:$40 sps:$4 sm:$0xff]  }
 0x1d1   : > { %5073 = vmatpush1.bf16.msra.mxu1 %v6905_v27  ;;  %v6941_v27 = vld [vmem:[#allocation5 + $0x410] ss:$40 sps:$4 sm:$0xff]  }
 0x1d2   : > { %5074 = vmatprep.subr.bf16.mxu1 %v6907_v8  ;;  %v6943_v8 = vld [vmem:[#allocation5 + $0x464] ss:$40 sps:$4 sm:$0xff]  }
 0x1d3   : > { %5153 = vmatpush1.bf16.msra.mxu0 %v6900_v61  ;;  %v6936_v61 = vld [vmem:[#allocation5 + $0xdc0] ss:$40 sps:$4 sm:$0xff]  }
 0x1d4   : > { %5154 = vmatprep.subr.bf16.mxu0 %v6903_v14  ;;  %v6939_v14 = vld [vmem:[#allocation5 + $0xe14] ss:$40 sps:$4 sm:$0xff]  }
 0x1d5   : > { %5075 = vmatpush1.bf16.msra.mxu1 %v6911_v28  ;;  %v6947_v28 = vld [vmem:[#allocation5 + $0x460] ss:$40 sps:$4 sm:$0xff]  }
 0x1d6   : > { %5076 = vmatprep.subr.bf16.mxu1 %v6913_v51  ;;  %v6949_v51 = vld [vmem:[#allocation5 + $0x4b4] ss:$40 sps:$4 sm:$0xff]  }
 0x1d7   : > { %5155 = vmatpush1.bf16.msra.mxu0 %v6906_v52  ;;  %v6942_v52 = vld [vmem:[#allocation5 + $0xe10] ss:$40 sps:$4 sm:$0xff]  }
 0x1d8   : > { %5156 = vmatprep.subr.bf16.mxu0 %v6909_v53  ;;  %v6945_v53 = vld [vmem:[#allocation5 + $0xe64] ss:$40 sps:$4 sm:$0xff]  }
 0x1d9   : > { %5077 = vmatpush1.bf16.msra.mxu1 %v6917_v50  ;;  %v6953_v50 = vld [vmem:[#allocation5 + $0x4b0] ss:$40 sps:$4 sm:$0xff]  }
 0x1da   : > { %5078 = vmatprep.subr.bf16.mxu1 %v6919_v6  ;;  %v6957_v6 = vld [vmem:[#allocation5 + $0x504] ss:$40 sps:$4 sm:$0xff]  }
 0x1db   : > { %5157 = vmatpush1.bf16.msra.mxu0 %v6912_v31  ;;  %v6948_v31 = vld [vmem:[#allocation5 + $0xe60] ss:$40 sps:$4 sm:$0xff]  }
 0x1dc   : > { %5158 = vmatprep.subr.bf16.mxu0 %v6915_v25  ;;  %v6951_v25 = vld [vmem:[#allocation5 + $0xeb4] ss:$40 sps:$4 sm:$0xff]  }
 0x1dd   : > { %5079 = vmatpush1.bf16.msra.mxu1 %v6923_v20 }
 0x1de   : > { %5080 = vmatprep.subr.bf16.mxu1 %v6925_v24 }
 0x1df   : > { %5159 = vmatpush1.bf16.msra.mxu0 %v6918_v63  ;;  %v6954_v63 = vld [vmem:[#allocation5 + $0xeb0] ss:$40 sps:$4 sm:$0xff]  }
 0x1e0   : > { %5160 = vmatprep.subr.bf16.mxu0 %v6921_v58  ;;  %v6960_v58 = vld [vmem:[#allocation5 + $0xf04] ss:$40 sps:$4 sm:$0xff]  }
 0x1e1   : > { %5081 = vmatpush1.bf16.msra.mxu1 %v6929_v43  ;;  %v6987_v43 = vld [vmem:[#allocation5 + $0x694] ss:$40 sps:$4 sm:$0xff]  }
 0x1e2   : > { %5082 = vmatprep.subr.bf16.mxu1 %v6931_v48  ;;  %v6985_v48 = vld [vmem:[#allocation5 + $0x690] ss:$40 sps:$4 sm:$0xff]  }
 0x1e3   : > { %5161 = vmatpush1.bf16.msra.mxu0 %v6924_v39 }
 0x1e4   : > { %5162 = vmatprep.subr.bf16.mxu0 %v6927_v11 }
 0x1e5   : > { %5083 = vmatpush1.bf16.msra.mxu1 %v6935_v49  ;;  %v6993_v49 = vld [vmem:[#allocation5 + $0x6e4] ss:$40 sps:$4 sm:$0xff]  }
 0x1e6   : > { %5084 = vmatprep.subr.bf16.mxu1 %v6937_v55  ;;  %v6991_v55 = vld [vmem:[#allocation5 + $0x6e0] ss:$40 sps:$4 sm:$0xff]  }
 0x1e7   : > { %5163 = vmatpush1.bf16.msra.mxu0 %v6930_v42  ;;  %v6990_v42 = vld [vmem:[#allocation5 + $0x1094] ss:$40 sps:$4 sm:$0xff]  }
 0x1e8   : > { %5164 = vmatprep.subr.bf16.mxu0 %v6933_v62  ;;  %v6988_v62 = vld [vmem:[#allocation5 + $0x1090] ss:$40 sps:$4 sm:$0xff]  }
 0x1e9   : > { %5085 = vmatpush1.bf16.msra.mxu1 %v6941_v27  ;;  %v6999_v27 = vld [vmem:[#allocation5 + $0x734] ss:$40 sps:$4 sm:$0xff]  }
 0x1ea   : > { %5086 = vmatprep.subr.bf16.mxu1 %v6943_v8  ;;  %v6997_v8 = vld [vmem:[#allocation5 + $0x730] ss:$40 sps:$4 sm:$0xff]  }
 0x1eb   : > { %5165 = vmatpush1.bf16.msra.mxu0 %v6936_v61  ;;  %v6996_v61 = vld [vmem:[#allocation5 + $0x10e4] ss:$40 sps:$4 sm:$0xff]  }
 0x1ec   : > { %5166 = vmatprep.subr.bf16.mxu0 %v6939_v14  ;;  %v6994_v14 = vld [vmem:[#allocation5 + $0x10e0] ss:$40 sps:$4 sm:$0xff]  }
 0x1ed   : > { %5087 = vmatpush1.bf16.msra.mxu1 %v6947_v28  ;;  %v7005_v28 = vld [vmem:[#allocation5 + $0x784] ss:$40 sps:$4 sm:$0xff]  }
 0x1ee   : > { %5088 = vmatprep.subr.bf16.mxu1 %v6949_v51  ;;  %v7003_v51 = vld [vmem:[#allocation5 + $0x780] ss:$40 sps:$4 sm:$0xff]  }
 0x1ef   : > { %5167 = vmatpush1.bf16.msra.mxu0 %v6942_v52  ;;  %v7002_v52 = vld [vmem:[#allocation5 + $0x1134] ss:$40 sps:$4 sm:$0xff]  }
 0x1f0   : > { %5168 = vmatprep.subr.bf16.mxu0 %v6945_v53  ;;  %v7000_v53 = vld [vmem:[#allocation5 + $0x1130] ss:$40 sps:$4 sm:$0xff]  }
 0x1f1   : > { %5089 = vmatpush1.bf16.msra.mxu1 %v6953_v50  ;;  %v7011_v50 = vld [vmem:[#allocation5 + $0x7d4] ss:$40 sps:$4 sm:$0xff]  }
 0x1f2   : > { %5099 = vmatprep.subr.bf16.mxu1 %v6957_v6  ;;  %v7009_v6 = vld [vmem:[#allocation5 + $0x7d0] ss:$40 sps:$4 sm:$0xff]  }
 0x1f3   : > { %5169 = vmatpush1.bf16.msra.mxu0 %v6948_v31  ;;  %v7008_v31 = vld [vmem:[#allocation5 + $0x1184] ss:$40 sps:$4 sm:$0xff]  }
 0x1f4   : > { %5170 = vmatprep.subr.bf16.mxu0 %v6951_v25  ;;  %v7006_v25 = vld [vmem:[#allocation5 + $0x1180] ss:$40 sps:$4 sm:$0xff]  }
 0x1f7   : > { %5171 = vmatpush1.bf16.msra.mxu0 %v6954_v63  ;;  %v7014_v63 = vld [vmem:[#allocation5 + $0x11d4] ss:$40 sps:$4 sm:$0xff]  }
 0x1f8   : > { %5181 = vmatprep.subr.bf16.mxu0 %v6960_v58  ;;  %v7012_v58 = vld [vmem:[#allocation5 + $0x11d0] ss:$40 sps:$4 sm:$0xff]  }
 0x25b   : > { %v1156_v36 = vpop.xlane.xlu1 %1155 }
 0x25c   : > { %7853 = vrsqrt.f32 %v1156_v36 }
 0x266   : > { %v7854_v23 = vpop.eup %7853 }
 0x267   : > { %v9002_v15 = vmul.f32 %v7854_v23, %v8928_v57  ;;  %v9005_v29 = vmul.f32 %v7854_v23, %v8932_v56  ;;  %v9008_v34 = vmul.f32 %v7854_v23, %v8955_v19  ;;  %v9012_v1 = vmul.f32 %v7854_v23, %v8969_v18  ;;  %v222_v56 = vld [vmem:[%s8159_s7 + $0x18] sm:$0xff] }
 0x268   : > { %v9024_v37 = vmul.f32 %v7854_v23, %v8977_v33  ;;  %v9034_v3 = vmul.f32 %v7854_v23, %v8983_v26  ;;  %v9043_v4 = vmul.f32 %v7854_v23, %v8989_v0  ;;  %v225_v26 = vld [vmem:[%s8159_s7 + $0x30] sm:$0xff]  ;;  %v9052_v32 = vmul.f32 %v7854_v23, %v8995_v16  ;;  %v226_v0 = vld [vmem:[%s8159_s7 + $0x38] sm:$0xff] }
 0x269   : > { %v1183_v41 = vadd.f32 %v9005_v29, %v9002_v15  ;;  %v9017_v22 = vmul.f32 %v9002_v15, %v219_v5  ;;  %v9020_v57 = vmul.f32 %v9005_v29, %v220_v44  ;;  %v9028_v10 = vmul.f32 %v9008_v34, %v221_v21 }
 0x26a   : > { %v9038_v17 = vmul.f32 %v9012_v1, %v222_v56  ;;  %v9047_v7 = vmul.f32 %v9024_v37, %v223_v40  ;;  %v9056_v46 = vmul.f32 %v9034_v3, %v224_v54  ;;  %v9062_v60 = vmul.f32 %v9043_v4, %v225_v26  ;;  %v6969_v26 = vld [vmem:[#allocation5 + $0x5a4] ss:$40 sps:$4 sm:$0xff]  }
 0x26b   : > { %v1184_v19 = vadd.f32 %v1183_v41, %v9008_v34  ;;  %v1174_v18 = vadd.f32 %v9020_v57, %v9017_v22  ;;  %v1173_v16 = vmul.f32 %v9052_v32, %v226_v0  ;;  %v6978_v0 = vld [vmem:[#allocation5 + $0xff4] ss:$40 sps:$4 sm:$0xff]  }
 0x26d   : > { %v1185_v45 = vadd.f32 %v1184_v19, %v9012_v1  ;;  %v1175_v33 = vadd.f32 %v1174_v18, %v9028_v10 }
 0x26f   : > { %v1186_v59 = vadd.f32 %v1185_v45, %v9024_v37  ;;  %v1176_v2 = vadd.f32 %v1175_v33, %v9038_v17 }
 0x271   : > { %v1187_v12 = vadd.f32 %v1186_v59, %v9034_v3  ;;  %v1177_v35 = vadd.f32 %v1176_v2, %v9047_v7  ;;  %v6964_v2 = vld [vmem:[#allocation5 + $0xf50] ss:$40 sps:$4 sm:$0xff]  }
 0x273   : > { %v1188_v9 = vadd.f32 %v1187_v12, %v9043_v4  ;;  %v1178_v13 = vadd.f32 %v1177_v35, %v9056_v46  ;;  %v6967_v12 = vld [vmem:[#allocation5 + $0x5a0] ss:$40 sps:$4 sm:$0xff]   ;;  %v6975_v35 = vld [vmem:[#allocation5 + $0x5f4] ss:$40 sps:$4 sm:$0xff]  }
 0x275   : > { %v1189_v38 = vadd.f32 %v1188_v9, %v9052_v32  ;;  %v1179_v47 = vadd.f32 %v1178_v13, %v9062_v60  ;;  %v6973_v9 = vld [vmem:[#allocation5 + $0x5f0] ss:$40 sps:$4 sm:$0xff]  }
 0x276   : > { %v6976_v13 = vld [vmem:[#allocation5 + $0xff0] ss:$40 sps:$4 sm:$0xff]  }
 0x277   : > { %1190 = vadd.xlane.f32.xlu1 %v1189_v38  ;;  %v1180_v30 = vadd.f32 %v1179_v47, %v1173_v16  ;;  %v6981_v38 = vld [vmem:[#allocation5 + $0x644] ss:$40 sps:$4 sm:$0xff]   ;;  %v6979_v47 = vld [vmem:[#allocation5 + $0x640] ss:$40 sps:$4 sm:$0xff]  }
 0x279   : > { %1181 = vadd.xlane.f32.xlu0 %v1180_v30  ;;  %v6982_v30 = vld [vmem:[#allocation5 + $0x1040] ss:$40 sps:$4 sm:$0xff]  }
 0x304   : > { %v1191_v20 = vpop.xlane.xlu1 %1190 }
 0x305   : > { %7855 = vrcp.f32 %v1191_v20  ;;  %v7017_v20 = vld [vmem:[#allocation5 + $0x824] ss:$40 sps:$4 sm:$0xff]  }
 0x306   : > { %v1182_v24 = vpop.xlane.xlu0 %1181 }
 0x30f   : > { %v7856_v39 = vpop.eup %7855 }
 0x310   : > { %v9068_v11 = vmul.f32 %v7856_v39, %v1182_v24  ;;  %v7020_v39 = vld [vmem:[#allocation5 + $0x1224] ss:$40 sps:$4 sm:$0xff]   ;;  %v7015_v24 = vld [vmem:[#allocation5 + $0x820] ss:$40 sps:$4 sm:$0xff]  }
 0x312   : > { %v1195_v36 = vmul.f32 %v9068_v11, %v9005_v29  ;;  %v1199_v23 = vmul.f32 %v9068_v11, %v9034_v3  ;;  %v1194_v5 = vmul.f32 %v9068_v11, %v9002_v15  ;;  %v1198_v44 = vmul.f32 %v9068_v11, %v9024_v37  ;;  %v6955_v37 = vld [vmem:[#allocation5 + $0x500] ss:$40 sps:$4 sm:$0xff]  }
 0x313   : > { %v1197_v21 = vmul.f32 %v9068_v11, %v9012_v1  ;;  %v1201_v41 = vmul.f32 %v9068_v11, %v9052_v32  ;;  %v6958_v1 = vld [vmem:[#allocation5 + $0xf00] ss:$40 sps:$4 sm:$0xff]   ;;  %v6972_v32 = vld [vmem:[#allocation5 + $0xfa4] ss:$40 sps:$4 sm:$0xff]  }
 0x314   : > { %v1203_v56 = vsub.f32 %v9020_v57, %v1195_v36  ;;  %v1207_v19 = vsub.f32 %v9056_v46, %v1199_v23  ;;  %v1202_v29 = vsub.f32 %v9017_v22, %v1194_v5  ;;  %v1206_v18 = vsub.f32 %v9047_v7, %v1198_v44  ;;  %v6963_v22 = vld [vmem:[#allocation5 + $0x554] ss:$40 sps:$4 sm:$0xff]   ;;  %v6961_v7 = vld [vmem:[#allocation5 + $0x550] ss:$40 sps:$4 sm:$0xff]   ;;  %v6970_v46 = vld [vmem:[#allocation5 + $0xfa0] ss:$40 sps:$4 sm:$0xff]  }
 0x315   : > { %v1205_v40 = vsub.f32 %v9038_v17, %v1197_v21  ;;  %v1209_v15 = vsub.f32 %v1173_v16, %v1201_v41  ;;  %v6966_v57 = vld [vmem:[#allocation5 + $0xf54] ss:$40 sps:$4 sm:$0xff]   ;;  %v6984_v16 = vld [vmem:[#allocation5 + $0x1044] ss:$40 sps:$4 sm:$0xff]   ;;  %v7018_v36 = vld [vmem:[#allocation5 + $0x1220] ss:$40 sps:$4 sm:$0xff]  }
 0x316   : > { %v9087_v3 = vpack.c.bf16 %v1203_v56, %v1203_v56  ;;  %v9089_v45 = vpack.c.bf16 %v1207_v19, %v1207_v19  ;;  %v9091_v33 = vpack.c.bf16 %v1202_v29, %v1202_v29  ;;  %v9093_v54 = vpack.c.bf16 %v1206_v18, %v1206_v18  ;;  %v7023_v23 = vld [vmem:[#allocation5 + $0x874] ss:$40 sps:$4 sm:$0xff]   ;;  %v7021_v44 = vld [vmem:[#allocation5 + $0x870] ss:$40 sps:$4 sm:$0xff]   ;;  %v7029_v41 = vld [vmem:[#allocation5 + $0x8c4] ss:$40 sps:$4 sm:$0xff]  }
 0x317   : > { %v9099_v17 = vpack.c.bf16 %v1205_v40, %v1205_v40  ;;  %v9101_v59 = vpack.c.bf16 %v1209_v15, %v1209_v15  ;;  %v7026_v5 = vld [vmem:[#allocation5 + $0x1274] ss:$40 sps:$4 sm:$0xff]   ;;  %v7024_v21 = vld [vmem:[#allocation5 + $0x1270] ss:$40 sps:$4 sm:$0xff]   ;;  %v7032_v56 = vld [vmem:[#allocation5 + $0x12c4] ss:$40 sps:$4 sm:$0xff]  }
 0x318   : > { %5090 = vmatprep.mubr.bf16.mxu1 %v9087_v3  ;;  %5172 = vmatprep.mubr.bf16.mxu0 %v9089_v45  ;;  %v7027_v19 = vld [vmem:[#allocation5 + $0x8c0] ss:$40 sps:$4 sm:$0xff]   ;;  %v7035_v18 = vld [vmem:[#allocation5 + $0x914] ss:$40 sps:$4 sm:$0xff]   ;;  %v7033_v15 = vld [vmem:[#allocation5 + $0x910] ss:$40 sps:$4 sm:$0xff]  }
 0x319   : > { %5091 = vmatmul.mubr.bf16.vlgmr.msra.gmra.mrb[0].mxu1 %v9091_v33  ;;  %5173 = vmatmul.mubr.bf16.vlgmr.msra.gmra.mrb[0].mxu0 %v9093_v54  ;;  %v7030_v29 = vld [vmem:[#allocation5 + $0x12c0] ss:$40 sps:$4 sm:$0xff]   ;;  %v7038_v40 = vld [vmem:[#allocation5 + $0x1314] ss:$40 sps:$4 sm:$0xff]  }
 0x31a   : > { %5100 = vmatpush1.bf16.msra.mxu1 %v6955_v37  ;;  %5182 = vmatpush1.bf16.msra.mxu0 %v6958_v1  ;;  %v7036_v37 = vld [vmem:[#allocation5 + $0x1310] ss:$40 sps:$4 sm:$0xff]   ;;  %v7041_v1 = vld [vmem:[#allocation5 + $0x964] ss:$40 sps:$4 sm:$0xff]  }
 0x31b   : > { %5131 = vmatprep.mubr.bf16.mxu1 %v9099_v17  ;;  %5213 = vmatprep.mubr.bf16.mxu0 %v9101_v59 }
 0x31c   : > { %5101 = vmatprep.subr.bf16.mxu1 %v6963_v22  ;;  %5183 = vmatprep.subr.bf16.mxu0 %v6966_v57  ;;  %v7044_v22 = vld [vmem:[#allocation5 + $0x1364] ss:$40 sps:$4 sm:$0xff]   ;;  %v7039_v57 = vld [vmem:[#allocation5 + $0x960] ss:$40 sps:$4 sm:$0xff]  }
 0x31e   : > { %5102 = vmatpush1.bf16.msra.mxu1 %v6961_v7  ;;  %5184 = vmatpush1.bf16.msra.mxu0 %v6964_v2  ;;  %v7042_v7 = vld [vmem:[#allocation5 + $0x1360] ss:$40 sps:$4 sm:$0xff]   ;;  %v7047_v2 = vld [vmem:[#allocation5 + $0x9b4] ss:$40 sps:$4 sm:$0xff]  }
 0x31f   : > { %5103 = vmatprep.subr.bf16.mxu1 %v6969_v26  ;;  %5185 = vmatprep.subr.bf16.mxu0 %v6972_v32  ;;  %v7050_v26 = vld [vmem:[#allocation5 + $0x13b4] ss:$40 sps:$4 sm:$0xff]   ;;  %v1196_v32 = vmul.f32 %v9068_v11, %v9008_v34 }
 0x322   : > { %5104 = vmatpush1.bf16.msra.mxu1 %v6967_v12  ;;  %5186 = vmatpush1.bf16.msra.mxu0 %v6970_v46  ;;  %v1200_v12 = vmul.f32 %v9068_v11, %v9043_v4  ;;  %v7045_v46 = vld [vmem:[#allocation5 + $0x9b0] ss:$40 sps:$4 sm:$0xff]   ;;  %v7059_v11 = vld [vmem:[#allocation5 + $0x5c] ss:$40 sps:$4 sm:$0xff]  }
 0x323   : > { %5105 = vmatprep.subr.bf16.mxu1 %v6975_v35  ;;  %5187 = vmatprep.subr.bf16.mxu0 %v6978_v0  ;;  %v7048_v35 = vld [vmem:[#allocation5 + $0x13b0] ss:$40 sps:$4 sm:$0xff]   ;;  %v1204_v0 = vsub.f32 %v9028_v10, %v1196_v32 }
 0x324   : > { %v7054_v4 = vld [vmem:[#allocation5 + $0x10] ss:$40 sps:$4 sm:$0xff]  }
 0x325   : > { %v7057_v10 = vld [vmem:[#allocation5 + $0x58] ss:$40 sps:$4 sm:$0xff]   ;;  %v7123_v32 = vld [vmem:[#allocation5 + $0x3c8] ss:$40 sps:$4 sm:$0xff]  }
 0x326   : > { %5106 = vmatpush1.bf16.msra.mxu1 %v6973_v9  ;;  %5188 = vmatpush1.bf16.msra.mxu0 %v6976_v13  ;;  %v1208_v9 = vsub.f32 %v9062_v60, %v1200_v12  ;;  %v7053_v13 = vld [vmem:[#allocation5 + $0xc] ss:$40 sps:$4 sm:$0xff]   ;;  %v7060_v60 = vld [vmem:[#allocation5 + $0x60] ss:$40 sps:$4 sm:$0xff]   ;;  %v7126_v12 = vld [vmem:[#allocation5 + $0x3d0] ss:$40 sps:$4 sm:$0xff]  }
 0x327   : > { %5107 = vmatprep.subr.bf16.mxu1 %v6981_v38  ;;  %5189 = vmatprep.subr.bf16.mxu0 %v6984_v16  ;;  %v7056_v38 = vld [vmem:[#allocation5 + $0x14] ss:$40 sps:$4 sm:$0xff]   ;;  %v7051_v16 = vld [vmem:[#allocation5 + $0x8] ss:$40 sps:$4 sm:$0xff]  }
 0x328   : > { %v9113_v34 = vpack.c.bf16 %v1208_v9, %v1208_v9  ;;  %v7132_v9 = vld [vmem:[#allocation5 + $0x420] ss:$40 sps:$4 sm:$0xff]  }
 0x32a   : > { %5108 = vmatpush1.bf16.msra.mxu1 %v6979_v47  ;;  %5190 = vmatpush1.bf16.msra.mxu0 %v6982_v30  ;;  %v9111_v47 = vpack.c.bf16 %v1204_v0, %v1204_v0  ;;  %v7062_v30 = vld [vmem:[#allocation5 + $0x64] ss:$40 sps:$4 sm:$0xff]   ;;  %v7129_v0 = vld [vmem:[#allocation5 + $0x418] ss:$40 sps:$4 sm:$0xff]  }
 0x32b   : > { %5109 = vmatprep.subr.bf16.mxu1 %v6987_v43  ;;  %5191 = vmatprep.subr.bf16.mxu0 %v6990_v42  ;;  %v7065_v43 = vld [vmem:[#allocation5 + $0xac] ss:$40 sps:$4 sm:$0xff]  }
 0x32c   : > { %v7068_v42 = vld [vmem:[#allocation5 + $0xb4] ss:$40 sps:$4 sm:$0xff]  }
 0x32e   : > { %5110 = vmatpush1.bf16.msra.mxu1 %v6985_v48  ;;  %5192 = vmatpush1.bf16.msra.mxu0 %v6988_v62  ;;  %v7063_v48 = vld [vmem:[#allocation5 + $0xa8] ss:$40 sps:$4 sm:$0xff]  }
 0x32f   : > { %5111 = vmatprep.subr.bf16.mxu1 %v6993_v49  ;;  %5193 = vmatprep.subr.bf16.mxu0 %v6996_v61  ;;  %v7066_v62 = vld [vmem:[#allocation5 + $0xb0] ss:$40 sps:$4 sm:$0xff]   ;;  %v7071_v49 = vld [vmem:[#allocation5 + $0xfc] ss:$40 sps:$4 sm:$0xff]  }
 0x330   : > { %v7074_v61 = vld [vmem:[#allocation5 + $0x104] ss:$40 sps:$4 sm:$0xff]  }
 0x332   : > { %5112 = vmatpush1.bf16.msra.mxu1 %v6991_v55  ;;  %5194 = vmatpush1.bf16.msra.mxu0 %v6994_v14  ;;  %v7069_v55 = vld [vmem:[#allocation5 + $0xf8] ss:$40 sps:$4 sm:$0xff]  }
 0x333   : > { %5113 = vmatprep.subr.bf16.mxu1 %v6999_v27  ;;  %5195 = vmatprep.subr.bf16.mxu0 %v7002_v52  ;;  %v7072_v14 = vld [vmem:[#allocation5 + $0x100] ss:$40 sps:$4 sm:$0xff]   ;;  %v7077_v27 = vld [vmem:[#allocation5 + $0x14c] ss:$40 sps:$4 sm:$0xff]  }
 0x334   : > { %v7080_v52 = vld [vmem:[#allocation5 + $0x154] ss:$40 sps:$4 sm:$0xff]  }
 0x336   : > { %5114 = vmatpush1.bf16.msra.mxu1 %v6997_v8  ;;  %5196 = vmatpush1.bf16.msra.mxu0 %v7000_v53  ;;  %v7075_v8 = vld [vmem:[#allocation5 + $0x148] ss:$40 sps:$4 sm:$0xff]  }
 0x337   : > { %5115 = vmatprep.subr.bf16.mxu1 %v7005_v28  ;;  %5197 = vmatprep.subr.bf16.mxu0 %v7008_v31  ;;  %v7078_v53 = vld [vmem:[#allocation5 + $0x150] ss:$40 sps:$4 sm:$0xff]   ;;  %v7083_v28 = vld [vmem:[#allocation5 + $0x19c] ss:$40 sps:$4 sm:$0xff]  }
 0x338   : > { %v7086_v31 = vld [vmem:[#allocation5 + $0x1a4] ss:$40 sps:$4 sm:$0xff]  }
 0x33a   : > { %5116 = vmatpush1.bf16.msra.mxu1 %v7003_v51  ;;  %5198 = vmatpush1.bf16.msra.mxu0 %v7006_v25  ;;  %v7081_v51 = vld [vmem:[#allocation5 + $0x198] ss:$40 sps:$4 sm:$0xff]  }
 0x33b   : > { %5117 = vmatprep.subr.bf16.mxu1 %v7011_v50  ;;  %5199 = vmatprep.subr.bf16.mxu0 %v7014_v63  ;;  %v7084_v25 = vld [vmem:[#allocation5 + $0x1a0] ss:$40 sps:$4 sm:$0xff]   ;;  %v7089_v50 = vld [vmem:[#allocation5 + $0x1ec] ss:$40 sps:$4 sm:$0xff]  }
 0x33c   : > { %v7092_v63 = vld [vmem:[#allocation5 + $0x1f4] ss:$40 sps:$4 sm:$0xff]  }
 0x33e   : > { %5118 = vmatpush1.bf16.msra.mxu1 %v7009_v6  ;;  %5200 = vmatpush1.bf16.msra.mxu0 %v7012_v58  ;;  %v7087_v6 = vld [vmem:[#allocation5 + $0x1e8] ss:$40 sps:$4 sm:$0xff]  }
 0x33f   : > { %5119 = vmatprep.subr.bf16.mxu1 %v7017_v20  ;;  %5201 = vmatprep.subr.bf16.mxu0 %v7020_v39  ;;  %v7090_v58 = vld [vmem:[#allocation5 + $0x1f0] ss:$40 sps:$4 sm:$0xff]   ;;  %v7095_v20 = vld [vmem:[#allocation5 + $0x23c] ss:$40 sps:$4 sm:$0xff]  }
 0x340   : > { %v7098_v39 = vld [vmem:[#allocation5 + $0x244] ss:$40 sps:$4 sm:$0xff]  }
 0x342   : > { %5120 = vmatpush1.bf16.msra.mxu1 %v7015_v24  ;;  %5202 = vmatpush1.bf16.msra.mxu0 %v7018_v36  ;;  %v7093_v24 = vld [vmem:[#allocation5 + $0x238] ss:$40 sps:$4 sm:$0xff]  }
 0x343   : > { %5121 = vmatprep.subr.bf16.mxu1 %v7023_v23  ;;  %5203 = vmatprep.subr.bf16.mxu0 %v7026_v5  ;;  %v7096_v36 = vld [vmem:[#allocation5 + $0x240] ss:$40 sps:$4 sm:$0xff]   ;;  %v7101_v23 = vld [vmem:[#allocation5 + $0x28c] ss:$40 sps:$4 sm:$0xff]  }
 0x344   : > { %v7104_v5 = vld [vmem:[#allocation5 + $0x294] ss:$40 sps:$4 sm:$0xff]  }
 0x346   : > { %5122 = vmatpush1.bf16.msra.mxu1 %v7021_v44  ;;  %5204 = vmatpush1.bf16.msra.mxu0 %v7024_v21  ;;  %v7099_v44 = vld [vmem:[#allocation5 + $0x288] ss:$40 sps:$4 sm:$0xff]  }
 0x347   : > { %5123 = vmatprep.subr.bf16.mxu1 %v7029_v41  ;;  %5205 = vmatprep.subr.bf16.mxu0 %v7032_v56  ;;  %v7102_v21 = vld [vmem:[#allocation5 + $0x290] ss:$40 sps:$4 sm:$0xff]   ;;  %v7107_v41 = vld [vmem:[#allocation5 + $0x2dc] ss:$40 sps:$4 sm:$0xff]  }
 0x348   : > { %v7110_v56 = vld [vmem:[#allocation5 + $0x2e4] ss:$40 sps:$4 sm:$0xff]  }
 0x34a   : > { %5124 = vmatpush1.bf16.msra.mxu1 %v7027_v19  ;;  %5206 = vmatpush1.bf16.msra.mxu0 %v7030_v29  ;;  %v7105_v19 = vld [vmem:[#allocation5 + $0x2d8] ss:$40 sps:$4 sm:$0xff]  }
 0x34b   : > { %5125 = vmatprep.subr.bf16.mxu1 %v7035_v18  ;;  %5207 = vmatprep.subr.bf16.mxu0 %v7038_v40  ;;  %v7108_v29 = vld [vmem:[#allocation5 + $0x2e0] ss:$40 sps:$4 sm:$0xff]   ;;  %v7113_v18 = vld [vmem:[#allocation5 + $0x32c] ss:$40 sps:$4 sm:$0xff]  }
 0x34c   : > { %v7116_v40 = vld [vmem:[#allocation5 + $0x334] ss:$40 sps:$4 sm:$0xff]  }
 0x34e   : > { %5126 = vmatpush1.bf16.msra.mxu1 %v7033_v15  ;;  %5208 = vmatpush1.bf16.msra.mxu0 %v7036_v37  ;;  %v7111_v15 = vld [vmem:[#allocation5 + $0x328] ss:$40 sps:$4 sm:$0xff]  }
 0x34f   : > { %5127 = vmatprep.subr.bf16.mxu1 %v7041_v1  ;;  %5209 = vmatprep.subr.bf16.mxu0 %v7044_v22  ;;  %v7114_v37 = vld [vmem:[#allocation5 + $0x330] ss:$40 sps:$4 sm:$0xff]   ;;  %v7119_v1 = vld [vmem:[#allocation5 + $0x37c] ss:$40 sps:$4 sm:$0xff]  }
 0x350   : > { %v7122_v22 = vld [vmem:[#allocation5 + $0x384] ss:$40 sps:$4 sm:$0xff]  }
 0x352   : > { %5128 = vmatpush1.bf16.msra.mxu1 %v7039_v57  ;;  %5210 = vmatpush1.bf16.msra.mxu0 %v7042_v7  ;;  %v7117_v57 = vld [vmem:[#allocation5 + $0x378] ss:$40 sps:$4 sm:$0xff]  }
 0x353   : > { %5129 = vmatprep.subr.bf16.mxu1 %v7047_v2  ;;  %5211 = vmatprep.subr.bf16.mxu0 %v7050_v26  ;;  %v7120_v7 = vld [vmem:[#allocation5 + $0x380] ss:$40 sps:$4 sm:$0xff]   ;;  %v7125_v2 = vld [vmem:[#allocation5 + $0x3cc] ss:$40 sps:$4 sm:$0xff]  }
 0x354   : > { %v7128_v26 = vld [vmem:[#allocation5 + $0x3d4] ss:$40 sps:$4 sm:$0xff]  }
 0x356   : > { %5130 = vmatpush1.bf16.msra.mxu1 %v7045_v46  ;;  %5212 = vmatpush1.bf16.msra.mxu0 %v7048_v35  ;;  %v7131_v46 = vld [vmem:[#allocation5 + $0x41c] ss:$40 sps:$4 sm:$0xff]  }
 0x357   : > { %5222 = vmatprep.subr.bf16.mxu1 %v7053_v13  ;;  %5386 = vmatprep.subr.bf16.mxu0 %v7056_v38  ;;  %v7134_v35 = vld [vmem:[#allocation5 + $0x424] ss:$40 sps:$4 sm:$0xff]   ;;  %v7140_v38 = vld [vmem:[#allocation5 + $0x474] ss:$40 sps:$4 sm:$0xff]  }
 0x358   : > { %v7137_v13 = vld [vmem:[#allocation5 + $0x46c] ss:$40 sps:$4 sm:$0xff]  }
 0x359   : > { %5132 = vmatmul.mubr.bf16.vlgmr.msra.gmra.mrb[0].mxu1 %v9111_v47  ;;  %5214 = vmatmul.mubr.bf16.vlgmr.msra.gmra.mrb[0].mxu0 %v9113_v34 }
 0x35a   : > { %5223 = vmatpush1.bf16.msra.mxu1 %v7051_v16  ;;  %5254 = vmatprep.mubr.bf16.mxu1 %v9087_v3  ;;  %v7135_v16 = vld [vmem:[#allocation5 + $0x468] ss:$40 sps:$4 sm:$0xff]  }
 0x35b   : > { %5387 = vmatpush1.bf16.msra.mxu0 %v7054_v4  ;;  %5418 = vmatprep.mubr.bf16.mxu0 %v9087_v3  ;;  %v7138_v4 = vld [vmem:[#allocation5 + $0x470] ss:$40 sps:$4 sm:$0xff]  }
 0x35c   : > { %5224 = vmatprep.subr.bf16.mxu1 %v7059_v11  ;;  %5388 = vmatprep.subr.bf16.mxu0 %v7062_v30  ;;  %v7143_v11 = vld [vmem:[#allocation5 + $0x4bc] ss:$40 sps:$4 sm:$0xff]  }
 0x35d   : > { %v7146_v30 = vld [vmem:[#allocation5 + $0x4c4] ss:$40 sps:$4 sm:$0xff]  }
 0x35e   : > { %5225 = vmatpush1.bf16.msra.mxu1 %v7057_v10  ;;  %v7141_v10 = vld [vmem:[#allocation5 + $0x4b8] ss:$40 sps:$4 sm:$0xff]  }
 0x35f   : > { %5389 = vmatpush1.bf16.msra.mxu0 %v7060_v60  ;;  %5226 = vmatprep.subr.bf16.mxu1 %v7065_v43  ;;  %v7144_v60 = vld [vmem:[#allocation5 + $0x4c0] ss:$40 sps:$4 sm:$0xff]   ;;  %v7149_v43 = vld [vmem:[#allocation5 + $0x50c] ss:$40 sps:$4 sm:$0xff]  }
 0x360   : > { %5390 = vmatprep.subr.bf16.mxu0 %v7068_v42  ;;  %v7152_v42 = vld [vmem:[#allocation5 + $0x514] ss:$40 sps:$4 sm:$0xff]  }
 0x362   : > { %5227 = vmatpush1.bf16.msra.mxu1 %v7063_v48  ;;  %v7147_v48 = vld [vmem:[#allocation5 + $0x508] ss:$40 sps:$4 sm:$0xff]  }
 0x363   : > { %5391 = vmatpush1.bf16.msra.mxu0 %v7066_v62  ;;  %5228 = vmatprep.subr.bf16.mxu1 %v7071_v49  ;;  %v7150_v62 = vld [vmem:[#allocation5 + $0x510] ss:$40 sps:$4 sm:$0xff]   ;;  %v7155_v49 = vld [vmem:[#allocation5 + $0x55c] ss:$40 sps:$4 sm:$0xff]  }
 0x364   : > { %5392 = vmatprep.subr.bf16.mxu0 %v7074_v61  ;;  %v7158_v61 = vld [vmem:[#allocation5 + $0x564] ss:$40 sps:$4 sm:$0xff]  }
 0x366   : > { %5229 = vmatpush1.bf16.msra.mxu1 %v7069_v55  ;;  %v7153_v55 = vld [vmem:[#allocation5 + $0x558] ss:$40 sps:$4 sm:$0xff]  }
 0x367   : > { %5393 = vmatpush1.bf16.msra.mxu0 %v7072_v14  ;;  %5230 = vmatprep.subr.bf16.mxu1 %v7077_v27  ;;  %v7156_v14 = vld [vmem:[#allocation5 + $0x560] ss:$40 sps:$4 sm:$0xff]   ;;  %v7161_v27 = vld [vmem:[#allocation5 + $0x5ac] ss:$40 sps:$4 sm:$0xff]  }
 0x368   : > { %5394 = vmatprep.subr.bf16.mxu0 %v7080_v52  ;;  %v7164_v52 = vld [vmem:[#allocation5 + $0x5b4] ss:$40 sps:$4 sm:$0xff]  }
 0x36a   : > { %5231 = vmatpush1.bf16.msra.mxu1 %v7075_v8  ;;  %v7159_v8 = vld [vmem:[#allocation5 + $0x5a8] ss:$40 sps:$4 sm:$0xff]  }
 0x36b   : > { %5395 = vmatpush1.bf16.msra.mxu0 %v7078_v53  ;;  %5232 = vmatprep.subr.bf16.mxu1 %v7083_v28  ;;  %v7162_v53 = vld [vmem:[#allocation5 + $0x5b0] ss:$40 sps:$4 sm:$0xff]   ;;  %v7167_v28 = vld [vmem:[#allocation5 + $0x5fc] ss:$40 sps:$4 sm:$0xff]  }
 0x36c   : > { %5396 = vmatprep.subr.bf16.mxu0 %v7086_v31  ;;  %v7170_v31 = vld [vmem:[#allocation5 + $0x604] ss:$40 sps:$4 sm:$0xff]  }
 0x36e   : > { %5233 = vmatpush1.bf16.msra.mxu1 %v7081_v51  ;;  %v7165_v51 = vld [vmem:[#allocation5 + $0x5f8] ss:$40 sps:$4 sm:$0xff]  }
 0x36f   : > { %5397 = vmatpush1.bf16.msra.mxu0 %v7084_v25  ;;  %5234 = vmatprep.subr.bf16.mxu1 %v7089_v50  ;;  %v7168_v25 = vld [vmem:[#allocation5 + $0x600] ss:$40 sps:$4 sm:$0xff]   ;;  %v7173_v50 = vld [vmem:[#allocation5 + $0x64c] ss:$40 sps:$4 sm:$0xff]  }
 0x370   : > { %5398 = vmatprep.subr.bf16.mxu0 %v7092_v63  ;;  %v7176_v63 = vld [vmem:[#allocation5 + $0x654] ss:$40 sps:$4 sm:$0xff]  }
 0x372   : > { %5235 = vmatpush1.bf16.msra.mxu1 %v7087_v6  ;;  %v7171_v6 = vld [vmem:[#allocation5 + $0x648] ss:$40 sps:$4 sm:$0xff]  }
 0x373   : > { %5399 = vmatpush1.bf16.msra.mxu0 %v7090_v58  ;;  %5236 = vmatprep.subr.bf16.mxu1 %v7095_v20  ;;  %v7174_v58 = vld [vmem:[#allocation5 + $0x650] ss:$40 sps:$4 sm:$0xff]   ;;  %v7179_v20 = vld [vmem:[#allocation5 + $0x69c] ss:$40 sps:$4 sm:$0xff]  }
 0x374   : > { %5400 = vmatprep.subr.bf16.mxu0 %v7098_v39  ;;  %v7182_v39 = vld [vmem:[#allocation5 + $0x6a4] ss:$40 sps:$4 sm:$0xff]  }
 0x376   : > { %5237 = vmatpush1.bf16.msra.mxu1 %v7093_v24  ;;  %v7177_v24 = vld [vmem:[#allocation5 + $0x698] ss:$40 sps:$4 sm:$0xff]  }
 0x377   : > { %5401 = vmatpush1.bf16.msra.mxu0 %v7096_v36  ;;  %5238 = vmatprep.subr.bf16.mxu1 %v7101_v23  ;;  %v7180_v36 = vld [vmem:[#allocation5 + $0x6a0] ss:$40 sps:$4 sm:$0xff]   ;;  %v7185_v23 = vld [vmem:[#allocation5 + $0x6ec] ss:$40 sps:$4 sm:$0xff]  }
 0x378   : > { %5402 = vmatprep.subr.bf16.mxu0 %v7104_v5  ;;  %v7188_v5 = vld [vmem:[#allocation5 + $0x6f4] ss:$40 sps:$4 sm:$0xff]  }
 0x37a   : > { %5239 = vmatpush1.bf16.msra.mxu1 %v7099_v44  ;;  %v7183_v44 = vld [vmem:[#allocation5 + $0x6e8] ss:$40 sps:$4 sm:$0xff]  }
 0x37b   : > { %5403 = vmatpush1.bf16.msra.mxu0 %v7102_v21  ;;  %5240 = vmatprep.subr.bf16.mxu1 %v7107_v41  ;;  %v7186_v21 = vld [vmem:[#allocation5 + $0x6f0] ss:$40 sps:$4 sm:$0xff]   ;;  %v7191_v41 = vld [vmem:[#allocation5 + $0x73c] ss:$40 sps:$4 sm:$0xff]  }
 0x37c   : > { %5404 = vmatprep.subr.bf16.mxu0 %v7110_v56  ;;  %v7194_v56 = vld [vmem:[#allocation5 + $0x744] ss:$40 sps:$4 sm:$0xff]  }
 0x37e   : > { %5241 = vmatpush1.bf16.msra.mxu1 %v7105_v19  ;;  %v7189_v19 = vld [vmem:[#allocation5 + $0x738] ss:$40 sps:$4 sm:$0xff]  }
 0x37f   : > { %5405 = vmatpush1.bf16.msra.mxu0 %v7108_v29  ;;  %5242 = vmatprep.subr.bf16.mxu1 %v7113_v18  ;;  %v7192_v29 = vld [vmem:[#allocation5 + $0x740] ss:$40 sps:$4 sm:$0xff]   ;;  %v7197_v18 = vld [vmem:[#allocation5 + $0x78c] ss:$40 sps:$4 sm:$0xff]  }
 0x380   : > { %5406 = vmatprep.subr.bf16.mxu0 %v7116_v40  ;;  %v7200_v40 = vld [vmem:[#allocation5 + $0x794] ss:$40 sps:$4 sm:$0xff]  }
 0x382   : > { %5243 = vmatpush1.bf16.msra.mxu1 %v7111_v15  ;;  %v7195_v15 = vld [vmem:[#allocation5 + $0x788] ss:$40 sps:$4 sm:$0xff]  }
 0x383   : > { %5407 = vmatpush1.bf16.msra.mxu0 %v7114_v37  ;;  %5244 = vmatprep.subr.bf16.mxu1 %v7119_v1  ;;  %v7198_v37 = vld [vmem:[#allocation5 + $0x790] ss:$40 sps:$4 sm:$0xff]   ;;  %v7203_v1 = vld [vmem:[#allocation5 + $0x7dc] ss:$40 sps:$4 sm:$0xff]  }
 0x384   : > { %5408 = vmatprep.subr.bf16.mxu0 %v7122_v22  ;;  %v7206_v22 = vld [vmem:[#allocation5 + $0x7e4] ss:$40 sps:$4 sm:$0xff]  }
 0x386   : > { %5245 = vmatpush1.bf16.msra.mxu1 %v7117_v57  ;;  %v7201_v57 = vld [vmem:[#allocation5 + $0x7d8] ss:$40 sps:$4 sm:$0xff]  }
 0x387   : > { %5409 = vmatpush1.bf16.msra.mxu0 %v7120_v7  ;;  %5246 = vmatprep.subr.bf16.mxu1 %v7125_v2  ;;  %v7204_v7 = vld [vmem:[#allocation5 + $0x7e0] ss:$40 sps:$4 sm:$0xff]   ;;  %v7209_v2 = vld [vmem:[#allocation5 + $0x82c] ss:$40 sps:$4 sm:$0xff]  }
 0x388   : > { %5410 = vmatprep.subr.bf16.mxu0 %v7128_v26  ;;  %v7212_v26 = vld [vmem:[#allocation5 + $0x834] ss:$40 sps:$4 sm:$0xff]  }
 0x38a   : > { %5247 = vmatpush1.bf16.msra.mxu1 %v7123_v32  ;;  %v7207_v32 = vld [vmem:[#allocation5 + $0x828] ss:$40 sps:$4 sm:$0xff]  }
 0x38b   : > { %5411 = vmatpush1.bf16.msra.mxu0 %v7126_v12  ;;  %5248 = vmatprep.subr.bf16.mxu1 %v7131_v46  ;;  %v7210_v12 = vld [vmem:[#allocation5 + $0x830] ss:$40 sps:$4 sm:$0xff]   ;;  %v7215_v46 = vld [vmem:[#allocation5 + $0x87c] ss:$40 sps:$4 sm:$0xff]  }
 0x38c   : > { %5412 = vmatprep.subr.bf16.mxu0 %v7134_v35  ;;  %v7218_v35 = vld [vmem:[#allocation5 + $0x884] ss:$40 sps:$4 sm:$0xff]  }
 0x38e   : > { %5249 = vmatpush1.bf16.msra.mxu1 %v7129_v0  ;;  %v7213_v0 = vld [vmem:[#allocation5 + $0x878] ss:$40 sps:$4 sm:$0xff]  }
 0x38f   : > { %5413 = vmatpush1.bf16.msra.mxu0 %v7132_v9  ;;  %5250 = vmatprep.subr.bf16.mxu1 %v7137_v13  ;;  %v7216_v9 = vld [vmem:[#allocation5 + $0x880] ss:$40 sps:$4 sm:$0xff]   ;;  %v7221_v13 = vld [vmem:[#allocation5 + $0x8cc] ss:$40 sps:$4 sm:$0xff]  }
 0x390   : > { %5414 = vmatprep.subr.bf16.mxu0 %v7140_v38  ;;  %v7224_v38 = vld [vmem:[#allocation5 + $0x8d4] ss:$40 sps:$4 sm:$0xff]  }
 0x392   : > { %5251 = vmatpush1.bf16.msra.mxu1 %v7135_v16  ;;  %v7219_v16 = vld [vmem:[#allocation5 + $0x8c8] ss:$40 sps:$4 sm:$0xff]  }
 0x393   : > { %5415 = vmatpush1.bf16.msra.mxu0 %v7138_v4  ;;  %5252 = vmatprep.subr.bf16.mxu1 %v7143_v11  ;;  %v7222_v4 = vld [vmem:[#allocation5 + $0x8d0] ss:$40 sps:$4 sm:$0xff]   ;;  %v7227_v11 = vld [vmem:[#allocation5 + $0x91c] ss:$40 sps:$4 sm:$0xff]  }
 0x394   : > { %5416 = vmatprep.subr.bf16.mxu0 %v7146_v30  ;;  %v7230_v30 = vld [vmem:[#allocation5 + $0x924] ss:$40 sps:$4 sm:$0xff]  }
 0x396   : > { %5253 = vmatpush1.bf16.msra.mxu1 %v7141_v10  ;;  %v7225_v10 = vld [vmem:[#allocation5 + $0x918] ss:$40 sps:$4 sm:$0xff]  }
 0x397   : > { %5417 = vmatpush1.bf16.msra.mxu0 %v7144_v60  ;;  %5263 = vmatprep.subr.bf16.mxu1 %v7149_v43  ;;  %v7228_v60 = vld [vmem:[#allocation5 + $0x920] ss:$40 sps:$4 sm:$0xff]   ;;  %v7233_v43 = vld [vmem:[#allocation5 + $0x96c] ss:$40 sps:$4 sm:$0xff]  }
 0x398   : > { %5427 = vmatprep.subr.bf16.mxu0 %v7152_v42  ;;  %v7236_v42 = vld [vmem:[#allocation5 + $0x974] ss:$40 sps:$4 sm:$0xff]  }
 0x399   : > { %5255 = vmatmul.mubr.bf16.vlgmr.msra.gmra.mrb[4].mxu1 %v9091_v33 }
 0x39a   : > { %5419 = vmatmul.mubr.bf16.vlgmr.msra.gmra.mrb[4].mxu0 %v9091_v33  ;;  %5264 = vmatpush1.bf16.msra.mxu1 %v7147_v48  ;;  %v7231_v48 = vld [vmem:[#allocation5 + $0x968] ss:$40 sps:$4 sm:$0xff]  }
 0x39b   : > { %5295 = vmatprep.mubr.bf16.mxu1 %v9099_v17  ;;  %5428 = vmatpush1.bf16.msra.mxu0 %v7150_v62  ;;  %v7234_v62 = vld [vmem:[#allocation5 + $0x970] ss:$40 sps:$4 sm:$0xff]  }
 0x39c   : > { %5459 = vmatprep.mubr.bf16.mxu0 %v9099_v17  ;;  %5265 = vmatprep.subr.bf16.mxu1 %v7155_v49  ;;  %v7239_v49 = vld [vmem:[#allocation5 + $0x9bc] ss:$40 sps:$4 sm:$0xff]  }
 0x39d   : > { %5429 = vmatprep.subr.bf16.mxu0 %v7158_v61  ;;  %v7242_v61 = vld [vmem:[#allocation5 + $0x9c4] ss:$40 sps:$4 sm:$0xff]  }
 0x39e   : > { %5266 = vmatpush1.bf16.msra.mxu1 %v7153_v55  ;;  %v7237_v55 = vld [vmem:[#allocation5 + $0x9b8] ss:$40 sps:$4 sm:$0xff]  }
 0x39f   : > { %5430 = vmatpush1.bf16.msra.mxu0 %v7156_v14  ;;  %5267 = vmatprep.subr.bf16.mxu1 %v7161_v27  ;;  %v7240_v14 = vld [vmem:[#allocation5 + $0x9c0] ss:$40 sps:$4 sm:$0xff]   ;;  %v7245_v27 = vld [vmem:[#allocation5 + $0xa0c] ss:$40 sps:$4 sm:$0xff]  }
 0x3a0   : > { %5431 = vmatprep.subr.bf16.mxu0 %v7164_v52  ;;  %v7248_v52 = vld [vmem:[#allocation5 + $0xa14] ss:$40 sps:$4 sm:$0xff]  }
 0x3a2   : > { %5268 = vmatpush1.bf16.msra.mxu1 %v7159_v8  ;;  %v7243_v8 = vld [vmem:[#allocation5 + $0xa08] ss:$40 sps:$4 sm:$0xff]  }
 0x3a3   : > { %5432 = vmatpush1.bf16.msra.mxu0 %v7162_v53  ;;  %5269 = vmatprep.subr.bf16.mxu1 %v7167_v28  ;;  %v7246_v53 = vld [vmem:[#allocation5 + $0xa10] ss:$40 sps:$4 sm:$0xff]   ;;  %v7251_v28 = vld [vmem:[#allocation5 + $0xa5c] ss:$40 sps:$4 sm:$0xff]  }
 0x3a4   : > { %5433 = vmatprep.subr.bf16.mxu0 %v7170_v31  ;;  %v7254_v31 = vld [vmem:[#allocation5 + $0xa64] ss:$40 sps:$4 sm:$0xff]  }
 0x3a6   : > { %5270 = vmatpush1.bf16.msra.mxu1 %v7165_v51  ;;  %v7249_v51 = vld [vmem:[#allocation5 + $0xa58] ss:$40 sps:$4 sm:$0xff]  }
 0x3a7   : > { %5434 = vmatpush1.bf16.msra.mxu0 %v7168_v25  ;;  %5271 = vmatprep.subr.bf16.mxu1 %v7173_v50  ;;  %v7252_v25 = vld [vmem:[#allocation5 + $0xa60] ss:$40 sps:$4 sm:$0xff]   ;;  %v7257_v50 = vld [vmem:[#allocation5 + $0xaac] ss:$40 sps:$4 sm:$0xff]  }
 0x3a8   : > { %5435 = vmatprep.subr.bf16.mxu0 %v7176_v63  ;;  %v7260_v63 = vld [vmem:[#allocation5 + $0xab4] ss:$40 sps:$4 sm:$0xff]  }
 0x3aa   : > { %5272 = vmatpush1.bf16.msra.mxu1 %v7171_v6  ;;  %v7255_v6 = vld [vmem:[#allocation5 + $0xaa8] ss:$40 sps:$4 sm:$0xff]  }
 0x3ab   : > { %5436 = vmatpush1.bf16.msra.mxu0 %v7174_v58  ;;  %5273 = vmatprep.subr.bf16.mxu1 %v7179_v20  ;;  %v7258_v58 = vld [vmem:[#allocation5 + $0xab0] ss:$40 sps:$4 sm:$0xff]   ;;  %v7263_v20 = vld [vmem:[#allocation5 + $0xafc] ss:$40 sps:$4 sm:$0xff]  }
 0x3ac   : > { %5437 = vmatprep.subr.bf16.mxu0 %v7182_v39  ;;  %v7266_v39 = vld [vmem:[#allocation5 + $0xb04] ss:$40 sps:$4 sm:$0xff]  }
 0x3ae   : > { %5274 = vmatpush1.bf16.msra.mxu1 %v7177_v24  ;;  %v7261_v24 = vld [vmem:[#allocation5 + $0xaf8] ss:$40 sps:$4 sm:$0xff]  }
 0x3af   : > { %5438 = vmatpush1.bf16.msra.mxu0 %v7180_v36  ;;  %5275 = vmatprep.subr.bf16.mxu1 %v7185_v23  ;;  %v7264_v36 = vld [vmem:[#allocation5 + $0xb00] ss:$40 sps:$4 sm:$0xff]   ;;  %v7269_v23 = vld [vmem:[#allocation5 + $0xb4c] ss:$40 sps:$4 sm:$0xff]  }
 0x3b0   : > { %5439 = vmatprep.subr.bf16.mxu0 %v7188_v5  ;;  %v7272_v5 = vld [vmem:[#allocation5 + $0xb54] ss:$40 sps:$4 sm:$0xff]  }
 0x3b2   : > { %5276 = vmatpush1.bf16.msra.mxu1 %v7183_v44  ;;  %v7267_v44 = vld [vmem:[#allocation5 + $0xb48] ss:$40 sps:$4 sm:$0xff]  }
 0x3b3   : > { %5440 = vmatpush1.bf16.msra.mxu0 %v7186_v21  ;;  %5277 = vmatprep.subr.bf16.mxu1 %v7191_v41  ;;  %v7270_v21 = vld [vmem:[#allocation5 + $0xb50] ss:$40 sps:$4 sm:$0xff]   ;;  %v7275_v41 = vld [vmem:[#allocation5 + $0xb9c] ss:$40 sps:$4 sm:$0xff]  }
 0x3b4   : > { %5441 = vmatprep.subr.bf16.mxu0 %v7194_v56  ;;  %v7278_v56 = vld [vmem:[#allocation5 + $0xba4] ss:$40 sps:$4 sm:$0xff]  }
 0x3b6   : > { %5278 = vmatpush1.bf16.msra.mxu1 %v7189_v19  ;;  %v7273_v19 = vld [vmem:[#allocation5 + $0xb98] ss:$40 sps:$4 sm:$0xff]  }
 0x3b7   : > { %5442 = vmatpush1.bf16.msra.mxu0 %v7192_v29  ;;  %5279 = vmatprep.subr.bf16.mxu1 %v7197_v18  ;;  %v7276_v29 = vld [vmem:[#allocation5 + $0xba0] ss:$40 sps:$4 sm:$0xff]   ;;  %v7281_v18 = vld [vmem:[#allocation5 + $0xbec] ss:$40 sps:$4 sm:$0xff]  }
 0x3b8   : > { %5443 = vmatprep.subr.bf16.mxu0 %v7200_v40  ;;  %v7284_v40 = vld [vmem:[#allocation5 + $0xbf4] ss:$40 sps:$4 sm:$0xff]  }
 0x3ba   : > { %5280 = vmatpush1.bf16.msra.mxu1 %v7195_v15  ;;  %v7279_v15 = vld [vmem:[#allocation5 + $0xbe8] ss:$40 sps:$4 sm:$0xff]  }
 0x3bb   : > { %5444 = vmatpush1.bf16.msra.mxu0 %v7198_v37  ;;  %5281 = vmatprep.subr.bf16.mxu1 %v7203_v1  ;;  %v7282_v37 = vld [vmem:[#allocation5 + $0xbf0] ss:$40 sps:$4 sm:$0xff]   ;;  %v7287_v1 = vld [vmem:[#allocation5 + $0xc3c] ss:$40 sps:$4 sm:$0xff]  }
 0x3bc   : > { %5445 = vmatprep.subr.bf16.mxu0 %v7206_v22  ;;  %v7290_v22 = vld [vmem:[#allocation5 + $0xc44] ss:$40 sps:$4 sm:$0xff]  }
 0x3be   : > { %5282 = vmatpush1.bf16.msra.mxu1 %v7201_v57  ;;  %v7285_v57 = vld [vmem:[#allocation5 + $0xc38] ss:$40 sps:$4 sm:$0xff]  }
 0x3bf   : > { %5446 = vmatpush1.bf16.msra.mxu0 %v7204_v7  ;;  %5283 = vmatprep.subr.bf16.mxu1 %v7209_v2  ;;  %v7288_v7 = vld [vmem:[#allocation5 + $0xc40] ss:$40 sps:$4 sm:$0xff]   ;;  %v7293_v2 = vld [vmem:[#allocation5 + $0xc8c] ss:$40 sps:$4 sm:$0xff]  }
 0x3c0   : > { %5447 = vmatprep.subr.bf16.mxu0 %v7212_v26  ;;  %v7296_v26 = vld [vmem:[#allocation5 + $0xc94] ss:$40 sps:$4 sm:$0xff]  }
 0x3c2   : > { %5284 = vmatpush1.bf16.msra.mxu1 %v7207_v32  ;;  %v7291_v32 = vld [vmem:[#allocation5 + $0xc88] ss:$40 sps:$4 sm:$0xff]  }
 0x3c3   : > { %5448 = vmatpush1.bf16.msra.mxu0 %v7210_v12  ;;  %5285 = vmatprep.subr.bf16.mxu1 %v7215_v46  ;;  %v7294_v12 = vld [vmem:[#allocation5 + $0xc90] ss:$40 sps:$4 sm:$0xff]   ;;  %v7299_v46 = vld [vmem:[#allocation5 + $0xcdc] ss:$40 sps:$4 sm:$0xff]  }
 0x3c4   : > { %5449 = vmatprep.subr.bf16.mxu0 %v7218_v35  ;;  %v7302_v35 = vld [vmem:[#allocation5 + $0xce4] ss:$40 sps:$4 sm:$0xff]  }
 0x3c6   : > { %5286 = vmatpush1.bf16.msra.mxu1 %v7213_v0  ;;  %v7297_v0 = vld [vmem:[#allocation5 + $0xcd8] ss:$40 sps:$4 sm:$0xff]  }
 0x3c7   : > { %5450 = vmatpush1.bf16.msra.mxu0 %v7216_v9  ;;  %5287 = vmatprep.subr.bf16.mxu1 %v7221_v13  ;;  %v7300_v9 = vld [vmem:[#allocation5 + $0xce0] ss:$40 sps:$4 sm:$0xff]   ;;  %v7305_v13 = vld [vmem:[#allocation5 + $0xd2c] ss:$40 sps:$4 sm:$0xff]  }
 0x3c8   : > { %5451 = vmatprep.subr.bf16.mxu0 %v7224_v38  ;;  %v7308_v38 = vld [vmem:[#allocation5 + $0xd34] ss:$40 sps:$4 sm:$0xff]  }
 0x3ca   : > { %5288 = vmatpush1.bf16.msra.mxu1 %v7219_v16  ;;  %v7303_v16 = vld [vmem:[#allocation5 + $0xd28] ss:$40 sps:$4 sm:$0xff]  }
 0x3cb   : > { %5452 = vmatpush1.bf16.msra.mxu0 %v7222_v4  ;;  %5289 = vmatprep.subr.bf16.mxu1 %v7227_v11  ;;  %v7306_v4 = vld [vmem:[#allocation5 + $0xd30] ss:$40 sps:$4 sm:$0xff]   ;;  %v7311_v11 = vld [vmem:[#allocation5 + $0xd7c] ss:$40 sps:$4 sm:$0xff]  }
 0x3cc   : > { %5453 = vmatprep.subr.bf16.mxu0 %v7230_v30  ;;  %v7314_v30 = vld [vmem:[#allocation5 + $0xd84] ss:$40 sps:$4 sm:$0xff]  }
 0x3ce   : > { %5290 = vmatpush1.bf16.msra.mxu1 %v7225_v10  ;;  %v7309_v10 = vld [vmem:[#allocation5 + $0xd78] ss:$40 sps:$4 sm:$0xff]  }
 0x3cf   : > { %5454 = vmatpush1.bf16.msra.mxu0 %v7228_v60  ;;  %5291 = vmatprep.subr.bf16.mxu1 %v7233_v43  ;;  %v7312_v60 = vld [vmem:[#allocation5 + $0xd80] ss:$40 sps:$4 sm:$0xff]   ;;  %v7317_v43 = vld [vmem:[#allocation5 + $0xdcc] ss:$40 sps:$4 sm:$0xff]  }
 0x3d0   : > { %5455 = vmatprep.subr.bf16.mxu0 %v7236_v42  ;;  %v7320_v42 = vld [vmem:[#allocation5 + $0xdd4] ss:$40 sps:$4 sm:$0xff]  }
 0x3d2   : > { %5292 = vmatpush1.bf16.msra.mxu1 %v7231_v48  ;;  %v7315_v48 = vld [vmem:[#allocation5 + $0xdc8] ss:$40 sps:$4 sm:$0xff]  }
 0x3d3   : > { %5456 = vmatpush1.bf16.msra.mxu0 %v7234_v62  ;;  %5293 = vmatprep.subr.bf16.mxu1 %v7239_v49  ;;  %v7318_v62 = vld [vmem:[#allocation5 + $0xdd0] ss:$40 sps:$4 sm:$0xff]   ;;  %v7323_v49 = vld [vmem:[#allocation5 + $0xe1c] ss:$40 sps:$4 sm:$0xff]  }
 0x3d4   : > { %5457 = vmatprep.subr.bf16.mxu0 %v7242_v61  ;;  %v7326_v61 = vld [vmem:[#allocation5 + $0xe24] ss:$40 sps:$4 sm:$0xff]  }
 0x3d6   : > { %5294 = vmatpush1.bf16.msra.mxu1 %v7237_v55  ;;  %v7321_v55 = vld [vmem:[#allocation5 + $0xe18] ss:$40 sps:$4 sm:$0xff]  }
 0x3d7   : > { %5458 = vmatpush1.bf16.msra.mxu0 %v7240_v14  ;;  %5304 = vmatprep.subr.bf16.mxu1 %v7245_v27  ;;  %v7324_v14 = vld [vmem:[#allocation5 + $0xe20] ss:$40 sps:$4 sm:$0xff]   ;;  %v7329_v27 = vld [vmem:[#allocation5 + $0xe6c] ss:$40 sps:$4 sm:$0xff]  }
 0x3d8   : > { %5468 = vmatprep.subr.bf16.mxu0 %v7248_v52  ;;  %v7332_v52 = vld [vmem:[#allocation5 + $0xe74] ss:$40 sps:$4 sm:$0xff]  }
 0x3d9   : > { %5296 = vmatmul.mubr.bf16.vlgmr.msra.gmra.mrb[4].mxu1 %v9111_v47 }
 0x3da   : > { %5460 = vmatmul.mubr.bf16.vlgmr.msra.gmra.mrb[4].mxu0 %v9111_v47  ;;  %5305 = vmatpush1.bf16.msra.mxu1 %v7243_v8  ;;  %v7327_v8 = vld [vmem:[#allocation5 + $0xe68] ss:$40 sps:$4 sm:$0xff]  }
 0x3db   : > { %5336 = vmatprep.mubr.bf16.mxu1 %v9089_v45  ;;  %5469 = vmatpush1.bf16.msra.mxu0 %v7246_v53  ;;  %v7330_v53 = vld [vmem:[#allocation5 + $0xe70] ss:$40 sps:$4 sm:$0xff]  }
 0x3dc   : > { %5500 = vmatprep.mubr.bf16.mxu0 %v9089_v45  ;;  %5306 = vmatprep.subr.bf16.mxu1 %v7251_v28  ;;  %v7335_v28 = vld [vmem:[#allocation5 + $0xebc] ss:$40 sps:$4 sm:$0xff]  }
 0x3dd   : > { %5470 = vmatprep.subr.bf16.mxu0 %v7254_v31  ;;  %v7338_v31 = vld [vmem:[#allocation5 + $0xec4] ss:$40 sps:$4 sm:$0xff]  }
 0x3de   : > { %5307 = vmatpush1.bf16.msra.mxu1 %v7249_v51  ;;  %v7333_v51 = vld [vmem:[#allocation5 + $0xeb8] ss:$40 sps:$4 sm:$0xff]  }
 0x3df   : > { %5471 = vmatpush1.bf16.msra.mxu0 %v7252_v25  ;;  %5308 = vmatprep.subr.bf16.mxu1 %v7257_v50  ;;  %v7336_v25 = vld [vmem:[#allocation5 + $0xec0] ss:$40 sps:$4 sm:$0xff]   ;;  %v7341_v50 = vld [vmem:[#allocation5 + $0xf0c] ss:$40 sps:$4 sm:$0xff]  }
 0x3e0   : > { %5472 = vmatprep.subr.bf16.mxu0 %v7260_v63  ;;  %v7344_v63 = vld [vmem:[#allocation5 + $0xf14] ss:$40 sps:$4 sm:$0xff]  }
 0x3e2   : > { %5309 = vmatpush1.bf16.msra.mxu1 %v7255_v6  ;;  %v7339_v6 = vld [vmem:[#allocation5 + $0xf08] ss:$40 sps:$4 sm:$0xff]  }
 0x3e3   : > { %5473 = vmatpush1.bf16.msra.mxu0 %v7258_v58  ;;  %5310 = vmatprep.subr.bf16.mxu1 %v7263_v20  ;;  %v7342_v58 = vld [vmem:[#allocation5 + $0xf10] ss:$40 sps:$4 sm:$0xff]   ;;  %v7347_v20 = vld [vmem:[#allocation5 + $0xf5c] ss:$40 sps:$4 sm:$0xff]  }
 0x3e4   : > { %5474 = vmatprep.subr.bf16.mxu0 %v7266_v39  ;;  %v7350_v39 = vld [vmem:[#allocation5 + $0xf64] ss:$40 sps:$4 sm:$0xff]  }
 0x3e6   : > { %5311 = vmatpush1.bf16.msra.mxu1 %v7261_v24  ;;  %v7345_v24 = vld [vmem:[#allocation5 + $0xf58] ss:$40 sps:$4 sm:$0xff]  }
 0x3e7   : > { %5475 = vmatpush1.bf16.msra.mxu0 %v7264_v36  ;;  %5312 = vmatprep.subr.bf16.mxu1 %v7269_v23  ;;  %v7348_v36 = vld [vmem:[#allocation5 + $0xf60] ss:$40 sps:$4 sm:$0xff]   ;;  %v7353_v23 = vld [vmem:[#allocation5 + $0xfac] ss:$40 sps:$4 sm:$0xff]  }
 0x3e8   : > { %5476 = vmatprep.subr.bf16.mxu0 %v7272_v5  ;;  %v7356_v5 = vld [vmem:[#allocation5 + $0xfb4] ss:$40 sps:$4 sm:$0xff]  }
 0x3ea   : > { %5313 = vmatpush1.bf16.msra.mxu1 %v7267_v44  ;;  %v7351_v44 = vld [vmem:[#allocation5 + $0xfa8] ss:$40 sps:$4 sm:$0xff]  }
 0x3eb   : > { %5477 = vmatpush1.bf16.msra.mxu0 %v7270_v21  ;;  %5314 = vmatprep.subr.bf16.mxu1 %v7275_v41  ;;  %v7354_v21 = vld [vmem:[#allocation5 + $0xfb0] ss:$40 sps:$4 sm:$0xff]   ;;  %v7359_v41 = vld [vmem:[#allocation5 + $0xffc] ss:$40 sps:$4 sm:$0xff]  }
 0x3ec   : > { %5478 = vmatprep.subr.bf16.mxu0 %v7278_v56  ;;  %v7362_v56 = vld [vmem:[#allocation5 + $0x1004] ss:$40 sps:$4 sm:$0xff]  }
 0x3ee   : > { %5315 = vmatpush1.bf16.msra.mxu1 %v7273_v19  ;;  %v7357_v19 = vld [vmem:[#allocation5 + $0xff8] ss:$40 sps:$4 sm:$0xff]  }
 0x3ef   : > { %5479 = vmatpush1.bf16.msra.mxu0 %v7276_v29  ;;  %5316 = vmatprep.subr.bf16.mxu1 %v7281_v18  ;;  %v7360_v29 = vld [vmem:[#allocation5 + $0x1000] ss:$40 sps:$4 sm:$0xff]   ;;  %v7365_v18 = vld [vmem:[#allocation5 + $0x104c] ss:$40 sps:$4 sm:$0xff]  }
 0x3f0   : > { %5480 = vmatprep.subr.bf16.mxu0 %v7284_v40  ;;  %v7368_v40 = vld [vmem:[#allocation5 + $0x1054] ss:$40 sps:$4 sm:$0xff]  }
 0x3f2   : > { %5317 = vmatpush1.bf16.msra.mxu1 %v7279_v15  ;;  %v7363_v15 = vld [vmem:[#allocation5 + $0x1048] ss:$40 sps:$4 sm:$0xff]  }
 0x3f3   : > { %5481 = vmatpush1.bf16.msra.mxu0 %v7282_v37  ;;  %5318 = vmatprep.subr.bf16.mxu1 %v7287_v1  ;;  %v7366_v37 = vld [vmem:[#allocation5 + $0x1050] ss:$40 sps:$4 sm:$0xff]   ;;  %v7371_v1 = vld [vmem:[#allocation5 + $0x109c] ss:$40 sps:$4 sm:$0xff]  }
 0x3f4   : > { %5482 = vmatprep.subr.bf16.mxu0 %v7290_v22  ;;  %v7374_v22 = vld [vmem:[#allocation5 + $0x10a4] ss:$40 sps:$4 sm:$0xff]  }
 0x3f6   : > { %5319 = vmatpush1.bf16.msra.mxu1 %v7285_v57  ;;  %v7369_v57 = vld [vmem:[#allocation5 + $0x1098] ss:$40 sps:$4 sm:$0xff]  }
 0x3f7   : > { %5483 = vmatpush1.bf16.msra.mxu0 %v7288_v7  ;;  %5320 = vmatprep.subr.bf16.mxu1 %v7293_v2  ;;  %v7372_v7 = vld [vmem:[#allocation5 + $0x10a0] ss:$40 sps:$4 sm:$0xff]   ;;  %v7377_v2 = vld [vmem:[#allocation5 + $0x10ec] ss:$40 sps:$4 sm:$0xff]  }
 0x3f8   : > { %5484 = vmatprep.subr.bf16.mxu0 %v7296_v26 }
 0x3fa   : > { %5321 = vmatpush1.bf16.msra.mxu1 %v7291_v32 }
 0x3fb   : > { %5485 = vmatpush1.bf16.msra.mxu0 %v7294_v12  ;;  %5322 = vmatprep.subr.bf16.mxu1 %v7299_v46  ;;  %v7380_v12 = vld [vmem:[#allocation5 + $0x10f4] ss:$40 sps:$4 sm:$0xff]  }
 0x3fc   : > { %5486 = vmatprep.subr.bf16.mxu0 %v7302_v35 }
 0x3fe   : > { %5323 = vmatpush1.bf16.msra.mxu1 %v7297_v0 }
 0x3ff   : > { %5487 = vmatpush1.bf16.msra.mxu0 %v7300_v9  ;;  %5324 = vmatprep.subr.bf16.mxu1 %v7305_v13 }
 0x400   : > { %5488 = vmatprep.subr.bf16.mxu0 %v7308_v38 }
 0x402   : > { %5325 = vmatpush1.bf16.msra.mxu1 %v7303_v16  ;;  %v7375_v16 = vld [vmem:[#allocation5 + $0x10e8] ss:$40 sps:$4 sm:$0xff]  }
 0x403   : > { %5489 = vmatpush1.bf16.msra.mxu0 %v7306_v4  ;;  %5326 = vmatprep.subr.bf16.mxu1 %v7311_v11 }
 0x404   : > { %5490 = vmatprep.subr.bf16.mxu0 %v7314_v30  ;;  %v7378_v30 = vld [vmem:[#allocation5 + $0x10f0] ss:$40 sps:$4 sm:$0xff]  }
 0x406   : > { %5327 = vmatpush1.bf16.msra.mxu1 %v7309_v10  ;;  %v7383_v10 = vld [vmem:[#allocation5 + $0x113c] ss:$40 sps:$4 sm:$0xff]  }
 0x407   : > { %5491 = vmatpush1.bf16.msra.mxu0 %v7312_v60  ;;  %5328 = vmatprep.subr.bf16.mxu1 %v7317_v43  ;;  %v7386_v60 = vld [vmem:[#allocation5 + $0x1144] ss:$40 sps:$4 sm:$0xff]   ;;  %v7381_v43 = vld [vmem:[#allocation5 + $0x1138] ss:$40 sps:$4 sm:$0xff]  }
 0x408   : > { %5492 = vmatprep.subr.bf16.mxu0 %v7320_v42  ;;  %v7384_v42 = vld [vmem:[#allocation5 + $0x1140] ss:$40 sps:$4 sm:$0xff]  }
 0x40a   : > { %5329 = vmatpush1.bf16.msra.mxu1 %v7315_v48  ;;  %v7389_v48 = vld [vmem:[#allocation5 + $0x118c] ss:$40 sps:$4 sm:$0xff]  }
 0x40b   : > { %5493 = vmatpush1.bf16.msra.mxu0 %v7318_v62  ;;  %5330 = vmatprep.subr.bf16.mxu1 %v7323_v49  ;;  %v7392_v62 = vld [vmem:[#allocation5 + $0x1194] ss:$40 sps:$4 sm:$0xff]   ;;  %v7387_v49 = vld [vmem:[#allocation5 + $0x1188] ss:$40 sps:$4 sm:$0xff]  }
 0x40c   : > { %5494 = vmatprep.subr.bf16.mxu0 %v7326_v61  ;;  %v7390_v61 = vld [vmem:[#allocation5 + $0x1190] ss:$40 sps:$4 sm:$0xff]  }
 0x40e   : > { %5331 = vmatpush1.bf16.msra.mxu1 %v7321_v55  ;;  %v7395_v55 = vld [vmem:[#allocation5 + $0x11dc] ss:$40 sps:$4 sm:$0xff]  }
 0x40f   : > { %5495 = vmatpush1.bf16.msra.mxu0 %v7324_v14  ;;  %5332 = vmatprep.subr.bf16.mxu1 %v7329_v27  ;;  %v7398_v14 = vld [vmem:[#allocation5 + $0x11e4] ss:$40 sps:$4 sm:$0xff]   ;;  %v7393_v27 = vld [vmem:[#allocation5 + $0x11d8] ss:$40 sps:$4 sm:$0xff]  }
 0x410   : > { %5496 = vmatprep.subr.bf16.mxu0 %v7332_v52  ;;  %v7396_v52 = vld [vmem:[#allocation5 + $0x11e0] ss:$40 sps:$4 sm:$0xff]  }
 0x412   : > { %5333 = vmatpush1.bf16.msra.mxu1 %v7327_v8  ;;  %v7401_v8 = vld [vmem:[#allocation5 + $0x122c] ss:$40 sps:$4 sm:$0xff]  }
 0x413   : > { %5497 = vmatpush1.bf16.msra.mxu0 %v7330_v53  ;;  %5334 = vmatprep.subr.bf16.mxu1 %v7335_v28  ;;  %v7404_v53 = vld [vmem:[#allocation5 + $0x1234] ss:$40 sps:$4 sm:$0xff]   ;;  %v7399_v28 = vld [vmem:[#allocation5 + $0x1228] ss:$40 sps:$4 sm:$0xff]  }
 0x414   : > { %5498 = vmatprep.subr.bf16.mxu0 %v7338_v31  ;;  %v7402_v31 = vld [vmem:[#allocation5 + $0x1230] ss:$40 sps:$4 sm:$0xff]  }
 0x416   : > { %5335 = vmatpush1.bf16.msra.mxu1 %v7333_v51  ;;  %v7407_v51 = vld [vmem:[#allocation5 + $0x127c] ss:$40 sps:$4 sm:$0xff]  }
 0x417   : > { %5499 = vmatpush1.bf16.msra.mxu0 %v7336_v25  ;;  %5345 = vmatprep.subr.bf16.mxu1 %v7341_v50  ;;  %v7410_v25 = vld [vmem:[#allocation5 + $0x1284] ss:$40 sps:$4 sm:$0xff]   ;;  %v7405_v50 = vld [vmem:[#allocation5 + $0x1278] ss:$40 sps:$4 sm:$0xff]  }
 0x418   : > { %5509 = vmatprep.subr.bf16.mxu0 %v7344_v63  ;;  %v7408_v63 = vld [vmem:[#allocation5 + $0x1280] ss:$40 sps:$4 sm:$0xff]  }
 0x419   : > { %5337 = vmatmul.mubr.bf16.vlgmr.msra.gmra.mrb[4].mxu1 %v9093_v54 }
 0x41a   : > { %5501 = vmatmul.mubr.bf16.vlgmr.msra.gmra.mrb[4].mxu0 %v9093_v54  ;;  %5346 = vmatpush1.bf16.msra.mxu1 %v7339_v6  ;;  %v7413_v6 = vld [vmem:[#allocation5 + $0x12cc] ss:$40 sps:$4 sm:$0xff]  }
 0x41b   : > { %5377 = vmatprep.mubr.bf16.mxu1 %v9101_v59  ;;  %5510 = vmatpush1.bf16.msra.mxu0 %v7342_v58  ;;  %v7416_v58 = vld [vmem:[#allocation5 + $0x12d4] ss:$40 sps:$4 sm:$0xff]  }
 0x41c   : > { %5541 = vmatprep.mubr.bf16.mxu0 %v9101_v59  ;;  %5347 = vmatprep.subr.bf16.mxu1 %v7347_v20  ;;  %v7411_v20 = vld [vmem:[#allocation5 + $0x12c8] ss:$40 sps:$4 sm:$0xff]  }
 0x41d   : > { %5511 = vmatprep.subr.bf16.mxu0 %v7350_v39  ;;  %v7414_v39 = vld [vmem:[#allocation5 + $0x12d0] ss:$40 sps:$4 sm:$0xff]  }
 0x41e   : > { %5348 = vmatpush1.bf16.msra.mxu1 %v7345_v24  ;;  %v7419_v24 = vld [vmem:[#allocation5 + $0x131c] ss:$40 sps:$4 sm:$0xff]  }
 0x41f   : > { %5512 = vmatpush1.bf16.msra.mxu0 %v7348_v36  ;;  %5349 = vmatprep.subr.bf16.mxu1 %v7353_v23  ;;  %v7422_v36 = vld [vmem:[#allocation5 + $0x1324] ss:$40 sps:$4 sm:$0xff]   ;;  %v7417_v23 = vld [vmem:[#allocation5 + $0x1318] ss:$40 sps:$4 sm:$0xff]  }
 0x420   : > { %5513 = vmatprep.subr.bf16.mxu0 %v7356_v5  ;;  %v7420_v5 = vld [vmem:[#allocation5 + $0x1320] ss:$40 sps:$4 sm:$0xff]  }
 0x422   : > { %5350 = vmatpush1.bf16.msra.mxu1 %v7351_v44  ;;  %v7425_v44 = vld [vmem:[#allocation5 + $0x136c] ss:$40 sps:$4 sm:$0xff]  }
 0x423   : > { %5514 = vmatpush1.bf16.msra.mxu0 %v7354_v21  ;;  %5351 = vmatprep.subr.bf16.mxu1 %v7359_v41  ;;  %v7428_v21 = vld [vmem:[#allocation5 + $0x1374] ss:$40 sps:$4 sm:$0xff]   ;;  %v7423_v41 = vld [vmem:[#allocation5 + $0x1368] ss:$40 sps:$4 sm:$0xff]  }
 0x424   : > { %5515 = vmatprep.subr.bf16.mxu0 %v7362_v56  ;;  %v7426_v56 = vld [vmem:[#allocation5 + $0x1370] ss:$40 sps:$4 sm:$0xff]  }
 0x426   : > { %5352 = vmatpush1.bf16.msra.mxu1 %v7357_v19  ;;  %v7431_v19 = vld [vmem:[#allocation5 + $0x13bc] ss:$40 sps:$4 sm:$0xff]  }
 0x427   : > { %5516 = vmatpush1.bf16.msra.mxu0 %v7360_v29  ;;  %5353 = vmatprep.subr.bf16.mxu1 %v7365_v18  ;;  %v7434_v29 = vld [vmem:[#allocation5 + $0x13c4] ss:$40 sps:$4 sm:$0xff]   ;;  %v7429_v18 = vld [vmem:[#allocation5 + $0x13b8] ss:$40 sps:$4 sm:$0xff]  }
 0x428   : > { %5517 = vmatprep.subr.bf16.mxu0 %v7368_v40  ;;  %v7432_v40 = vld [vmem:[#allocation5 + $0x13c0] ss:$40 sps:$4 sm:$0xff]  }
 0x42a   : > { %5354 = vmatpush1.bf16.msra.mxu1 %v7363_v15  ;;  %v7437_v15 = vld [vmem:[#allocation5 + $0x1c] ss:$40 sps:$4 sm:$0xff]  }
 0x42b   : > { %5518 = vmatpush1.bf16.msra.mxu0 %v7366_v37  ;;  %5355 = vmatprep.subr.bf16.mxu1 %v7371_v1  ;;  %v7440_v37 = vld [vmem:[#allocation5 + $0x24] ss:$40 sps:$4 sm:$0xff]   ;;  %v7435_v1 = vld [vmem:[#allocation5 + $0x18] ss:$40 sps:$4 sm:$0xff]  }
 0x42c   : > { %v5133_v26 = vpop.f32.mrb[0].mxu1  ;;  %v5215_v32 = vpop.f32.mrb[0].mxu0  ;;  %5519 = vmatprep.subr.bf16.mxu0 %v7374_v22  ;;  %v7438_v22 = vld [vmem:[#allocation5 + $0x20] ss:$40 sps:$4 sm:$0xff]  }
 0x42d   : > { %v9131_v46 = vadd.f32 %v5215_v32, %v5133_v26  ;;  %v5135_v35 = vpop.f32.mrb[1].mxu1  ;;  %v5217_v0 = vpop.f32.mrb[1].mxu0  ;;  %v7444_v26 = vld [vmem:[#allocation5 + $0x70] ss:$40 sps:$4 sm:$0xff]   ;;  %v7449_v32 = vld [vmem:[#allocation5 + $0xbc] ss:$40 sps:$4 sm:$0xff]  }
 0x42e   : > { %v9133_v9 = vadd.f32 %v5217_v0, %v5135_v35  ;;  %v5137_v13 = vpop.f32.mrb[2].mxu1  ;;  %v5219_v38 = vpop.f32.mrb[2].mxu0  ;;  %5356 = vmatpush1.bf16.msra.mxu1 %v7369_v57  ;;  %v7443_v57 = vld [vmem:[#allocation5 + $0x6c] ss:$40 sps:$4 sm:$0xff]   ;;  %v7447_v35 = vld [vmem:[#allocation5 + $0xb8] ss:$40 sps:$4 sm:$0xff]  }
 0x42f   : > { %5520 = vmatpush1.bf16.msra.mxu0 %v7372_v7  ;;  %v5138_v4 = vpop.f32.mrb[3].mxu1  ;;  %v5220_v11 = vpop.f32.mrb[3].mxu0  ;;  %5357 = vmatprep.subr.bf16.mxu1 %v7377_v2  ;;  %v7446_v7 = vld [vmem:[#allocation5 + $0x74] ss:$40 sps:$4 sm:$0xff]   ;;  %v7441_v2 = vld [vmem:[#allocation5 + $0x68] ss:$40 sps:$4 sm:$0xff]  }
 0x430   : > { %5521 = vmatprep.subr.bf16.mxu0 %v7380_v12  ;;  %v7452_v12 = vld [vmem:[#allocation5 + $0xc4] ss:$40 sps:$4 sm:$0xff]   ;;  %v7450_v0 = vld [vmem:[#allocation5 + $0xc0] ss:$40 sps:$4 sm:$0xff]   ;;  %v7458_v38 = vld [vmem:[#allocation5 + $0x114] ss:$40 sps:$4 sm:$0xff]  }
 0x431   : > { %v7455_v13 = vld [vmem:[#allocation5 + $0x10c] ss:$40 sps:$4 sm:$0xff]   ;;  %v7456_v4 = vld [vmem:[#allocation5 + $0x110] ss:$40 sps:$4 sm:$0xff]   ;;  %v7461_v11 = vld [vmem:[#allocation5 + $0x15c] ss:$40 sps:$4 sm:$0xff]  }
 0x432   : > { %5358 = vmatpush1.bf16.msra.mxu1 %v7375_v16  ;;  %v7453_v16 = vld [vmem:[#allocation5 + $0x108] ss:$40 sps:$4 sm:$0xff]  }
 0x433   : > { %5522 = vmatpush1.bf16.msra.mxu0 %v7378_v30  ;;  %5359 = vmatprep.subr.bf16.mxu1 %v7383_v10  ;;  %v7464_v30 = vld [vmem:[#allocation5 + $0x164] ss:$40 sps:$4 sm:$0xff]   ;;  %v7462_v10 = vld [vmem:[#allocation5 + $0x160] ss:$40 sps:$4 sm:$0xff]  }
 0x434   : > { %5523 = vmatprep.subr.bf16.mxu0 %v7386_v60  ;;  %v7467_v60 = vld [vmem:[#allocation5 + $0x1ac] ss:$40 sps:$4 sm:$0xff]  }
 0x436   : > { %5360 = vmatpush1.bf16.msra.mxu1 %v7381_v43  ;;  %v7470_v43 = vld [vmem:[#allocation5 + $0x1b4] ss:$40 sps:$4 sm:$0xff]  }
 0x437   : > { %5524 = vmatpush1.bf16.msra.mxu0 %v7384_v42  ;;  %5361 = vmatprep.subr.bf16.mxu1 %v7389_v48  ;;  %v7465_v42 = vld [vmem:[#allocation5 + $0x1a8] ss:$40 sps:$4 sm:$0xff]  }
 0x438   : > { %5525 = vmatprep.subr.bf16.mxu0 %v7392_v62  ;;  %v7468_v48 = vld [vmem:[#allocation5 + $0x1b0] ss:$40 sps:$4 sm:$0xff]   ;;  %v7473_v62 = vld [vmem:[#allocation5 + $0x1fc] ss:$40 sps:$4 sm:$0xff]  }
 0x43a   : > { %5362 = vmatpush1.bf16.msra.mxu1 %v7387_v49  ;;  %v7476_v49 = vld [vmem:[#allocation5 + $0x204] ss:$40 sps:$4 sm:$0xff]  }
 0x43b   : > { %5526 = vmatpush1.bf16.msra.mxu0 %v7390_v61  ;;  %5363 = vmatprep.subr.bf16.mxu1 %v7395_v55  ;;  %v7471_v61 = vld [vmem:[#allocation5 + $0x1f8] ss:$40 sps:$4 sm:$0xff]  }
 0x43c   : > { %5527 = vmatprep.subr.bf16.mxu0 %v7398_v14  ;;  %v7474_v55 = vld [vmem:[#allocation5 + $0x200] ss:$40 sps:$4 sm:$0xff]   ;;  %v7479_v14 = vld [vmem:[#allocation5 + $0x24c] ss:$40 sps:$4 sm:$0xff]  }
 0x43e   : > { %5364 = vmatpush1.bf16.msra.mxu1 %v7393_v27  ;;  %v7482_v27 = vld [vmem:[#allocation5 + $0x254] ss:$40 sps:$4 sm:$0xff]  }
 0x43f   : > { %5528 = vmatpush1.bf16.msra.mxu0 %v7396_v52  ;;  %5365 = vmatprep.subr.bf16.mxu1 %v7401_v8  ;;  %v7477_v52 = vld [vmem:[#allocation5 + $0x248] ss:$40 sps:$4 sm:$0xff]  }
 0x440   : > { %5529 = vmatprep.subr.bf16.mxu0 %v7404_v53  ;;  %v7480_v8 = vld [vmem:[#allocation5 + $0x250] ss:$40 sps:$4 sm:$0xff]   ;;  %v7485_v53 = vld [vmem:[#allocation5 + $0x29c] ss:$40 sps:$4 sm:$0xff]  }
 0x442   : > { %5366 = vmatpush1.bf16.msra.mxu1 %v7399_v28  ;;  %v7488_v28 = vld [vmem:[#allocation5 + $0x2a4] ss:$40 sps:$4 sm:$0xff]  }
 0x443   : > { %5530 = vmatpush1.bf16.msra.mxu0 %v7402_v31  ;;  %5367 = vmatprep.subr.bf16.mxu1 %v7407_v51  ;;  %v7483_v31 = vld [vmem:[#allocation5 + $0x298] ss:$40 sps:$4 sm:$0xff]  }
 0x444   : > { %5531 = vmatprep.subr.bf16.mxu0 %v7410_v25  ;;  %v7486_v51 = vld [vmem:[#allocation5 + $0x2a0] ss:$40 sps:$4 sm:$0xff]   ;;  %v7491_v25 = vld [vmem:[#allocation5 + $0x2ec] ss:$40 sps:$4 sm:$0xff]  }
 0x446   : > { %5368 = vmatpush1.bf16.msra.mxu1 %v7405_v50  ;;  %v7494_v50 = vld [vmem:[#allocation5 + $0x2f4] ss:$40 sps:$4 sm:$0xff]  }
 0x447   : > { %5532 = vmatpush1.bf16.msra.mxu0 %v7408_v63  ;;  %5369 = vmatprep.subr.bf16.mxu1 %v7413_v6  ;;  %v7489_v63 = vld [vmem:[#allocation5 + $0x2e8] ss:$40 sps:$4 sm:$0xff]  }
 0x448   : > { %5533 = vmatprep.subr.bf16.mxu0 %v7416_v58  ;;  %v7492_v6 = vld [vmem:[#allocation5 + $0x2f0] ss:$40 sps:$4 sm:$0xff]   ;;  %v7497_v58 = vld [vmem:[#allocation5 + $0x33c] ss:$40 sps:$4 sm:$0xff]  }
 0x44a   : > { %5370 = vmatpush1.bf16.msra.mxu1 %v7411_v20  ;;  %v7500_v20 = vld [vmem:[#allocation5 + $0x344] ss:$40 sps:$4 sm:$0xff]  }
 0x44b   : > { %5534 = vmatpush1.bf16.msra.mxu0 %v7414_v39  ;;  %5371 = vmatprep.subr.bf16.mxu1 %v7419_v24  ;;  %v7495_v39 = vld [vmem:[#allocation5 + $0x338] ss:$40 sps:$4 sm:$0xff]  }
 0x44c   : > { %5535 = vmatprep.subr.bf16.mxu0 %v7422_v36  ;;  %v7498_v24 = vld [vmem:[#allocation5 + $0x340] ss:$40 sps:$4 sm:$0xff]   ;;  %v7503_v36 = vld [vmem:[#allocation5 + $0x38c] ss:$40 sps:$4 sm:$0xff]  }
 0x44e   : > { %5372 = vmatpush1.bf16.msra.mxu1 %v7417_v23  ;;  %v7506_v23 = vld [vmem:[#allocation5 + $0x394] ss:$40 sps:$4 sm:$0xff]  }
 0x44f   : > { %5536 = vmatpush1.bf16.msra.mxu0 %v7420_v5  ;;  %5373 = vmatprep.subr.bf16.mxu1 %v7425_v44  ;;  %v7501_v5 = vld [vmem:[#allocation5 + $0x388] ss:$40 sps:$4 sm:$0xff]  }
 0x450   : > { %5537 = vmatprep.subr.bf16.mxu0 %v7428_v21  ;;  %v7504_v44 = vld [vmem:[#allocation5 + $0x390] ss:$40 sps:$4 sm:$0xff]   ;;  %v7509_v21 = vld [vmem:[#allocation5 + $0x3dc] ss:$40 sps:$4 sm:$0xff]  }
 0x452   : > { %5374 = vmatpush1.bf16.msra.mxu1 %v7423_v41  ;;  %v7512_v41 = vld [vmem:[#allocation5 + $0x3e4] ss:$40 sps:$4 sm:$0xff]  }
 0x453   : > { %5538 = vmatpush1.bf16.msra.mxu0 %v7426_v56  ;;  %5375 = vmatprep.subr.bf16.mxu1 %v7431_v19  ;;  %v7507_v56 = vld [vmem:[#allocation5 + $0x3d8] ss:$40 sps:$4 sm:$0xff]  }
 0x454   : > { %5539 = vmatprep.subr.bf16.mxu0 %v7434_v29  ;;  %v7510_v19 = vld [vmem:[#allocation5 + $0x3e0] ss:$40 sps:$4 sm:$0xff]   ;;  %v7515_v29 = vld [vmem:[#allocation5 + $0x42c] ss:$40 sps:$4 sm:$0xff]  }
 0x456   : > { %5376 = vmatpush1.bf16.msra.mxu1 %v7429_v18  ;;  %v7518_v18 = vld [vmem:[#allocation5 + $0x434] ss:$40 sps:$4 sm:$0xff]  }
 0x457   : > { %5540 = vmatpush1.bf16.msra.mxu0 %v7432_v40  ;;  %5550 = vmatprep.subr.bf16.mxu1 %v7437_v15  ;;  %v7513_v40 = vld [vmem:[#allocation5 + $0x428] ss:$40 sps:$4 sm:$0xff]  }
 0x458   : > { %5714 = vmatprep.subr.bf16.mxu0 %v7440_v37  ;;  %v7516_v15 = vld [vmem:[#allocation5 + $0x430] ss:$40 sps:$4 sm:$0xff]   ;;  %v7521_v37 = vld [vmem:[#allocation5 + $0x47c] ss:$40 sps:$4 sm:$0xff]  }
 0x459   : > { %5378 = vmatmul.mubr.bf16.vlgmr.msra.gmra.mrb[4].mxu1 %v9113_v34 }
 0x45a   : > { %5542 = vmatmul.mubr.bf16.vlgmr.msra.gmra.mrb[4].mxu0 %v9113_v34  ;;  %5551 = vmatpush1.bf16.msra.mxu1 %v7435_v1  ;;  %v7524_v1 = vld [vmem:[#allocation5 + $0x484] ss:$40 sps:$4 sm:$0xff]  }
 0x45b   : > { %5582 = vmatprep.mubr.bf16.mxu1 %v9087_v3  ;;  %5715 = vmatpush1.bf16.msra.mxu0 %v7438_v22  ;;  %v7519_v22 = vld [vmem:[#allocation5 + $0x478] ss:$40 sps:$4 sm:$0xff]  }
 0x45c   : > { %5746 = vmatprep.mubr.bf16.mxu0 %v9087_v3  ;;  %5552 = vmatprep.subr.bf16.mxu1 %v7443_v57  ;;  %v7459_v3 = vld [vmem:[#allocation5 + $0x158] ss:$40 sps:$4 sm:$0xff]  }
 0x45d   : > { %5716 = vmatprep.subr.bf16.mxu0 %v7446_v7  ;;  %v7522_v57 = vld [vmem:[#allocation5 + $0x480] ss:$40 sps:$4 sm:$0xff]   ;;  %v7527_v7 = vld [vmem:[#allocation5 + $0x4cc] ss:$40 sps:$4 sm:$0xff]  }
 0x45e   : > { %5553 = vmatpush1.bf16.msra.mxu1 %v7441_v2  ;;  %v7530_v2 = vld [vmem:[#allocation5 + $0x4d4] ss:$40 sps:$4 sm:$0xff]  }
 0x45f   : > { %5717 = vmatpush1.bf16.msra.mxu0 %v7444_v26  ;;  %5554 = vmatprep.subr.bf16.mxu1 %v7449_v32  ;;  %v7525_v26 = vld [vmem:[#allocation5 + $0x4c8] ss:$40 sps:$4 sm:$0xff]  }
 0x460   : > { %5718 = vmatprep.subr.bf16.mxu0 %v7452_v12  ;;  %v7528_v32 = vld [vmem:[#allocation5 + $0x4d0] ss:$40 sps:$4 sm:$0xff]   ;;  %v7533_v12 = vld [vmem:[#allocation5 + $0x51c] ss:$40 sps:$4 sm:$0xff]  }
 0x462   : > { %5555 = vmatpush1.bf16.msra.mxu1 %v7447_v35  ;;  %v7536_v35 = vld [vmem:[#allocation5 + $0x524] ss:$40 sps:$4 sm:$0xff]  }
 0x463   : > { %5719 = vmatpush1.bf16.msra.mxu0 %v7450_v0  ;;  %5556 = vmatprep.subr.bf16.mxu1 %v7455_v13  ;;  %v7531_v0 = vld [vmem:[#allocation5 + $0x518] ss:$40 sps:$4 sm:$0xff]  }
 0x464   : > { %5720 = vmatprep.subr.bf16.mxu0 %v7458_v38  ;;  %v7534_v13 = vld [vmem:[#allocation5 + $0x520] ss:$40 sps:$4 sm:$0xff]   ;;  %v7539_v38 = vld [vmem:[#allocation5 + $0x56c] ss:$40 sps:$4 sm:$0xff]  }
 0x466   : > { %5557 = vmatpush1.bf16.msra.mxu1 %v7453_v16  ;;  %v7542_v16 = vld [vmem:[#allocation5 + $0x574] ss:$40 sps:$4 sm:$0xff]  }
 0x467   : > { %5721 = vmatpush1.bf16.msra.mxu0 %v7456_v4  ;;  %5558 = vmatprep.subr.bf16.mxu1 %v7461_v11  ;;  %v7537_v4 = vld [vmem:[#allocation5 + $0x568] ss:$40 sps:$4 sm:$0xff]  }
 0x468   : > { %5722 = vmatprep.subr.bf16.mxu0 %v7464_v30  ;;  %v7540_v11 = vld [vmem:[#allocation5 + $0x570] ss:$40 sps:$4 sm:$0xff]   ;;  %v7545_v30 = vld [vmem:[#allocation5 + $0x5bc] ss:$40 sps:$4 sm:$0xff]  }
 0x46a   : > { %5559 = vmatpush1.bf16.msra.mxu1 %v7459_v3  ;;  %v7548_v3 = vld [vmem:[#allocation5 + $0x5c4] ss:$40 sps:$4 sm:$0xff]  }
 0x46b   : > { %5723 = vmatpush1.bf16.msra.mxu0 %v7462_v10  ;;  %5560 = vmatprep.subr.bf16.mxu1 %v7467_v60  ;;  %v7543_v10 = vld [vmem:[#allocation5 + $0x5b8] ss:$40 sps:$4 sm:$0xff]  }
 0x46c   : > { %5724 = vmatprep.subr.bf16.mxu0 %v7470_v43  ;;  %v7546_v60 = vld [vmem:[#allocation5 + $0x5c0] ss:$40 sps:$4 sm:$0xff]   ;;  %v7551_v43 = vld [vmem:[#allocation5 + $0x60c] ss:$40 sps:$4 sm:$0xff]  }
 0x46e   : > { %5561 = vmatpush1.bf16.msra.mxu1 %v7465_v42  ;;  %v7549_v42 = vld [vmem:[#allocation5 + $0x608] ss:$40 sps:$4 sm:$0xff]  }
 0x46f   : > { %5725 = vmatpush1.bf16.msra.mxu0 %v7468_v48  ;;  %5562 = vmatprep.subr.bf16.mxu1 %v7473_v62  ;;  %v7552_v48 = vld [vmem:[#allocation5 + $0x610] ss:$40 sps:$4 sm:$0xff]   ;;  %v7557_v62 = vld [vmem:[#allocation5 + $0x65c] ss:$40 sps:$4 sm:$0xff]  }
 0x470   : > { %5726 = vmatprep.subr.bf16.mxu0 %v7476_v49  ;;  %v7560_v49 = vld [vmem:[#allocation5 + $0x664] ss:$40 sps:$4 sm:$0xff]  }
 0x472   : > { %5563 = vmatpush1.bf16.msra.mxu1 %v7471_v61  ;;  %v7558_v61 = vld [vmem:[#allocation5 + $0x660] ss:$40 sps:$4 sm:$0xff]  }
 0x473   : > { %5727 = vmatpush1.bf16.msra.mxu0 %v7474_v55  ;;  %5564 = vmatprep.subr.bf16.mxu1 %v7479_v14  ;;  %v7563_v55 = vld [vmem:[#allocation5 + $0x6ac] ss:$40 sps:$4 sm:$0xff]  }
 0x474   : > { %5728 = vmatprep.subr.bf16.mxu0 %v7482_v27  ;;  %v7566_v14 = vld [vmem:[#allocation5 + $0x6b4] ss:$40 sps:$4 sm:$0xff]   ;;  %v7561_v27 = vld [vmem:[#allocation5 + $0x6a8] ss:$40 sps:$4 sm:$0xff]  }
 0x476   : > { %5565 = vmatpush1.bf16.msra.mxu1 %v7477_v52  ;;  %v7564_v52 = vld [vmem:[#allocation5 + $0x6b0] ss:$40 sps:$4 sm:$0xff]  }
 0x477   : > { %5729 = vmatpush1.bf16.msra.mxu0 %v7480_v8  ;;  %5566 = vmatprep.subr.bf16.mxu1 %v7485_v53  ;;  %v7569_v8 = vld [vmem:[#allocation5 + $0x6fc] ss:$40 sps:$4 sm:$0xff]  }
 0x478   : > { %5730 = vmatprep.subr.bf16.mxu0 %v7488_v28  ;;  %v7572_v53 = vld [vmem:[#allocation5 + $0x704] ss:$40 sps:$4 sm:$0xff]   ;;  %v7567_v28 = vld [vmem:[#allocation5 + $0x6f8] ss:$40 sps:$4 sm:$0xff]  }
 0x47a   : > { %5567 = vmatpush1.bf16.msra.mxu1 %v7483_v31  ;;  %v7570_v31 = vld [vmem:[#allocation5 + $0x700] ss:$40 sps:$4 sm:$0xff]  }
 0x47b   : > { %5731 = vmatpush1.bf16.msra.mxu0 %v7486_v51  ;;  %5568 = vmatprep.subr.bf16.mxu1 %v7491_v25  ;;  %v7575_v51 = vld [vmem:[#allocation5 + $0x74c] ss:$40 sps:$4 sm:$0xff]  }
 0x47c   : > { %5732 = vmatprep.subr.bf16.mxu0 %v7494_v50  ;;  %v7578_v25 = vld [vmem:[#allocation5 + $0x754] ss:$40 sps:$4 sm:$0xff]   ;;  %v7573_v50 = vld [vmem:[#allocation5 + $0x748] ss:$40 sps:$4 sm:$0xff]  }
 0x47e   : > { %5569 = vmatpush1.bf16.msra.mxu1 %v7489_v63  ;;  %v7576_v63 = vld [vmem:[#allocation5 + $0x750] ss:$40 sps:$4 sm:$0xff]  }
 0x47f   : > { %5733 = vmatpush1.bf16.msra.mxu0 %v7492_v6  ;;  %5570 = vmatprep.subr.bf16.mxu1 %v7497_v58  ;;  %v7581_v6 = vld [vmem:[#allocation5 + $0x79c] ss:$40 sps:$4 sm:$0xff]  }
 0x480   : > { %5734 = vmatprep.subr.bf16.mxu0 %v7500_v20  ;;  %v7584_v58 = vld [vmem:[#allocation5 + $0x7a4] ss:$40 sps:$4 sm:$0xff]   ;;  %v7579_v20 = vld [vmem:[#allocation5 + $0x798] ss:$40 sps:$4 sm:$0xff]  }
 0x482   : > { %5571 = vmatpush1.bf16.msra.mxu1 %v7495_v39  ;;  %v7582_v39 = vld [vmem:[#allocation5 + $0x7a0] ss:$40 sps:$4 sm:$0xff]  }
 0x483   : > { %5735 = vmatpush1.bf16.msra.mxu0 %v7498_v24  ;;  %5572 = vmatprep.subr.bf16.mxu1 %v7503_v36  ;;  %v7587_v24 = vld [vmem:[#allocation5 + $0x7ec] ss:$40 sps:$4 sm:$0xff]  }
 0x484   : > { %5736 = vmatprep.subr.bf16.mxu0 %v7506_v23  ;;  %v7590_v36 = vld [vmem:[#allocation5 + $0x7f4] ss:$40 sps:$4 sm:$0xff]   ;;  %v7585_v23 = vld [vmem:[#allocation5 + $0x7e8] ss:$40 sps:$4 sm:$0xff]  }
 0x486   : > { %5573 = vmatpush1.bf16.msra.mxu1 %v7501_v5  ;;  %v7588_v5 = vld [vmem:[#allocation5 + $0x7f0] ss:$40 sps:$4 sm:$0xff]  }
 0x487   : > { %5737 = vmatpush1.bf16.msra.mxu0 %v7504_v44  ;;  %5574 = vmatprep.subr.bf16.mxu1 %v7509_v21  ;;  %v7593_v44 = vld [vmem:[#allocation5 + $0x83c] ss:$40 sps:$4 sm:$0xff]  }
 0x488   : > { %5738 = vmatprep.subr.bf16.mxu0 %v7512_v41  ;;  %v7596_v21 = vld [vmem:[#allocation5 + $0x844] ss:$40 sps:$4 sm:$0xff]   ;;  %v7591_v41 = vld [vmem:[#allocation5 + $0x838] ss:$40 sps:$4 sm:$0xff]  }
 0x48a   : > { %5575 = vmatpush1.bf16.msra.mxu1 %v7507_v56  ;;  %v7594_v56 = vld [vmem:[#allocation5 + $0x840] ss:$40 sps:$4 sm:$0xff]  }
 0x48b   : > { %5739 = vmatpush1.bf16.msra.mxu0 %v7510_v19  ;;  %5576 = vmatprep.subr.bf16.mxu1 %v7515_v29  ;;  %v7599_v19 = vld [vmem:[#allocation5 + $0x88c] ss:$40 sps:$4 sm:$0xff]  }
 0x48c   : > { %5740 = vmatprep.subr.bf16.mxu0 %v7518_v18  ;;  %v7602_v29 = vld [vmem:[#allocation5 + $0x894] ss:$40 sps:$4 sm:$0xff]   ;;  %v7597_v18 = vld [vmem:[#allocation5 + $0x888] ss:$40 sps:$4 sm:$0xff]  }
 0x48e   : > { %5577 = vmatpush1.bf16.msra.mxu1 %v7513_v40  ;;  %v7600_v40 = vld [vmem:[#allocation5 + $0x890] ss:$40 sps:$4 sm:$0xff]  }
 0x48f   : > { %5741 = vmatpush1.bf16.msra.mxu0 %v7516_v15  ;;  %5578 = vmatprep.subr.bf16.mxu1 %v7521_v37  ;;  %v7605_v15 = vld [vmem:[#allocation5 + $0x8dc] ss:$40 sps:$4 sm:$0xff]  }
 0x490   : > { %5742 = vmatprep.subr.bf16.mxu0 %v7524_v1  ;;  %v7608_v37 = vld [vmem:[#allocation5 + $0x8e4] ss:$40 sps:$4 sm:$0xff]   ;;  %v7603_v1 = vld [vmem:[#allocation5 + $0x8d8] ss:$40 sps:$4 sm:$0xff]  }
 0x492   : > { %5579 = vmatpush1.bf16.msra.mxu1 %v7519_v22  ;;  %v7606_v22 = vld [vmem:[#allocation5 + $0x8e0] ss:$40 sps:$4 sm:$0xff]  }
 0x493   : > { %5743 = vmatpush1.bf16.msra.mxu0 %v7522_v57  ;;  %5580 = vmatprep.subr.bf16.mxu1 %v7527_v7  ;;  %v7611_v57 = vld [vmem:[#allocation5 + $0x92c] ss:$40 sps:$4 sm:$0xff]  }
 0x494   : > { %5744 = vmatprep.subr.bf16.mxu0 %v7530_v2  ;;  %v7614_v7 = vld [vmem:[#allocation5 + $0x934] ss:$40 sps:$4 sm:$0xff]   ;;  %v7609_v2 = vld [vmem:[#allocation5 + $0x928] ss:$40 sps:$4 sm:$0xff]  }
 0x496   : > { %5581 = vmatpush1.bf16.msra.mxu1 %v7525_v26  ;;  %v7612_v26 = vld [vmem:[#allocation5 + $0x930] ss:$40 sps:$4 sm:$0xff]  }
 0x497   : > { %5745 = vmatpush1.bf16.msra.mxu0 %v7528_v32  ;;  %5591 = vmatprep.subr.bf16.mxu1 %v7533_v12  ;;  %v7617_v32 = vld [vmem:[#allocation5 + $0x97c] ss:$40 sps:$4 sm:$0xff]  }
 0x498   : > { %5755 = vmatprep.subr.bf16.mxu0 %v7536_v35  ;;  %v7620_v12 = vld [vmem:[#allocation5 + $0x984] ss:$40 sps:$4 sm:$0xff]   ;;  %v7615_v35 = vld [vmem:[#allocation5 + $0x978] ss:$40 sps:$4 sm:$0xff]  }
 0x499   : > { %5583 = vmatmul.mubr.bf16.vlgmr.msra.gmra.mrb[8].mxu1 %v9091_v33 }
 0x49a   : > { %5747 = vmatmul.mubr.bf16.vlgmr.msra.gmra.mrb[8].mxu0 %v9091_v33  ;;  %5592 = vmatpush1.bf16.msra.mxu1 %v7531_v0  ;;  %v7554_v33 = vld [vmem:[#allocation5 + $0x614] ss:$40 sps:$4 sm:$0xff]   ;;  %v7618_v0 = vld [vmem:[#allocation5 + $0x980] ss:$40 sps:$4 sm:$0xff]  }
 0x49b   : > { %5623 = vmatprep.mubr.bf16.mxu1 %v9099_v17  ;;  %5756 = vmatpush1.bf16.msra.mxu0 %v7534_v13  ;;  %v7623_v13 = vld [vmem:[#allocation5 + $0x9cc] ss:$40 sps:$4 sm:$0xff]  }
 0x49c   : > { %5787 = vmatprep.mubr.bf16.mxu0 %v9099_v17  ;;  %5593 = vmatprep.subr.bf16.mxu1 %v7539_v38  ;;  %v7555_v17 = vld [vmem:[#allocation5 + $0x658] ss:$40 sps:$4 sm:$0xff]   ;;  %v7626_v38 = vld [vmem:[#allocation5 + $0x9d4] ss:$40 sps:$4 sm:$0xff]  }
 0x49d   : > { %5757 = vmatprep.subr.bf16.mxu0 %v7542_v16  ;;  %v7621_v16 = vld [vmem:[#allocation5 + $0x9c8] ss:$40 sps:$4 sm:$0xff]  }
 0x49e   : > { %5594 = vmatpush1.bf16.msra.mxu1 %v7537_v4  ;;  %v7624_v4 = vld [vmem:[#allocation5 + $0x9d0] ss:$40 sps:$4 sm:$0xff]  }
 0x49f   : > { %5758 = vmatpush1.bf16.msra.mxu0 %v7540_v11  ;;  %5595 = vmatprep.subr.bf16.mxu1 %v7545_v30  ;;  %v7629_v11 = vld [vmem:[#allocation5 + $0xa1c] ss:$40 sps:$4 sm:$0xff]  }
 0x4a0   : > { %5759 = vmatprep.subr.bf16.mxu0 %v7548_v3  ;;  %v7632_v30 = vld [vmem:[#allocation5 + $0xa24] ss:$40 sps:$4 sm:$0xff]   ;;  %v7627_v3 = vld [vmem:[#allocation5 + $0xa18] ss:$40 sps:$4 sm:$0xff]  }
 0x4a2   : > { %5596 = vmatpush1.bf16.msra.mxu1 %v7543_v10  ;;  %v7630_v10 = vld [vmem:[#allocation5 + $0xa20] ss:$40 sps:$4 sm:$0xff]  }
 0x4a3   : > { %5760 = vmatpush1.bf16.msra.mxu0 %v7546_v60  ;;  %5597 = vmatprep.subr.bf16.mxu1 %v7551_v43  ;;  %v7635_v60 = vld [vmem:[#allocation5 + $0xa6c] ss:$40 sps:$4 sm:$0xff]  }
 0x4a4   : > { %5761 = vmatprep.subr.bf16.mxu0 %v7554_v33  ;;  %v7638_v43 = vld [vmem:[#allocation5 + $0xa74] ss:$40 sps:$4 sm:$0xff]   ;;  %v7633_v33 = vld [vmem:[#allocation5 + $0xa68] ss:$40 sps:$4 sm:$0xff]  }
 0x4a6   : > { %5598 = vmatpush1.bf16.msra.mxu1 %v7549_v42  ;;  %v7636_v42 = vld [vmem:[#allocation5 + $0xa70] ss:$40 sps:$4 sm:$0xff]  }
 0x4a7   : > { %5762 = vmatpush1.bf16.msra.mxu0 %v7552_v48  ;;  %5599 = vmatprep.subr.bf16.mxu1 %v7557_v62  ;;  %v7641_v48 = vld [vmem:[#allocation5 + $0xabc] ss:$40 sps:$4 sm:$0xff]  }
 0x4a8   : > { %5763 = vmatprep.subr.bf16.mxu0 %v7560_v49  ;;  %v7644_v62 = vld [vmem:[#allocation5 + $0xac4] ss:$40 sps:$4 sm:$0xff]   ;;  %v7639_v49 = vld [vmem:[#allocation5 + $0xab8] ss:$40 sps:$4 sm:$0xff]  }
 0x4aa   : > { %5600 = vmatpush1.bf16.msra.mxu1 %v7555_v17  ;;  %v7642_v17 = vld [vmem:[#allocation5 + $0xac0] ss:$40 sps:$4 sm:$0xff]  }
 0x4ab   : > { %5764 = vmatpush1.bf16.msra.mxu0 %v7558_v61  ;;  %5601 = vmatprep.subr.bf16.mxu1 %v7563_v55  ;;  %v7647_v61 = vld [vmem:[#allocation5 + $0xb0c] ss:$40 sps:$4 sm:$0xff]   ;;  %v7645_v55 = vld [vmem:[#allocation5 + $0xb08] ss:$40 sps:$4 sm:$0xff]  }
 0x4ac   : > { %5765 = vmatprep.subr.bf16.mxu0 %v7566_v14  ;;  %v7648_v14 = vld [vmem:[#allocation5 + $0xb10] ss:$40 sps:$4 sm:$0xff]  }
 0x4ae   : > { %5602 = vmatpush1.bf16.msra.mxu1 %v7561_v27  ;;  %v7653_v27 = vld [vmem:[#allocation5 + $0xb5c] ss:$40 sps:$4 sm:$0xff]  }
 0x4af   : > { %5766 = vmatpush1.bf16.msra.mxu0 %v7564_v52  ;;  %5603 = vmatprep.subr.bf16.mxu1 %v7569_v8  ;;  %v7656_v52 = vld [vmem:[#allocation5 + $0xb64] ss:$40 sps:$4 sm:$0xff]   ;;  %v7654_v8 = vld [vmem:[#allocation5 + $0xb60] ss:$40 sps:$4 sm:$0xff]  }
 0x4b0   : > { %5767 = vmatprep.subr.bf16.mxu0 %v7572_v53  ;;  %v7659_v53 = vld [vmem:[#allocation5 + $0xbac] ss:$40 sps:$4 sm:$0xff]  }
 0x4b2   : > { %5604 = vmatpush1.bf16.msra.mxu1 %v7567_v28  ;;  %v7662_v28 = vld [vmem:[#allocation5 + $0xbb4] ss:$40 sps:$4 sm:$0xff]  }
 0x4b3   : > { %5768 = vmatpush1.bf16.msra.mxu0 %v7570_v31  ;;  %5605 = vmatprep.subr.bf16.mxu1 %v7575_v51  ;;  %v7657_v31 = vld [vmem:[#allocation5 + $0xba8] ss:$40 sps:$4 sm:$0xff]  }
 0x4b4   : > { %5769 = vmatprep.subr.bf16.mxu0 %v7578_v25  ;;  %v7660_v51 = vld [vmem:[#allocation5 + $0xbb0] ss:$40 sps:$4 sm:$0xff]   ;;  %v7665_v25 = vld [vmem:[#allocation5 + $0xbfc] ss:$40 sps:$4 sm:$0xff]  }
 0x4b6   : > { %5606 = vmatpush1.bf16.msra.mxu1 %v7573_v50  ;;  %v7668_v50 = vld [vmem:[#allocation5 + $0xc04] ss:$40 sps:$4 sm:$0xff]  }
 0x4b7   : > { %5770 = vmatpush1.bf16.msra.mxu0 %v7576_v63  ;;  %5607 = vmatprep.subr.bf16.mxu1 %v7581_v6  ;;  %v7663_v63 = vld [vmem:[#allocation5 + $0xbf8] ss:$40 sps:$4 sm:$0xff]  }
 0x4b8   : > { %5771 = vmatprep.subr.bf16.mxu0 %v7584_v58  ;;  %v7666_v6 = vld [vmem:[#allocation5 + $0xc00] ss:$40 sps:$4 sm:$0xff]   ;;  %v7671_v58 = vld [vmem:[#allocation5 + $0xc4c] ss:$40 sps:$4 sm:$0xff]  }
 0x4ba   : > { %5608 = vmatpush1.bf16.msra.mxu1 %v7579_v20  ;;  %v7674_v20 = vld [vmem:[#allocation5 + $0xc54] ss:$40 sps:$4 sm:$0xff]  }
 0x4bb   : > { %5772 = vmatpush1.bf16.msra.mxu0 %v7582_v39  ;;  %5609 = vmatprep.subr.bf16.mxu1 %v7587_v24  ;;  %v7669_v39 = vld [vmem:[#allocation5 + $0xc48] ss:$40 sps:$4 sm:$0xff]  }
 0x4bc   : > { %5773 = vmatprep.subr.bf16.mxu0 %v7590_v36  ;;  %v7672_v24 = vld [vmem:[#allocation5 + $0xc50] ss:$40 sps:$4 sm:$0xff]   ;;  %v7677_v36 = vld [vmem:[#allocation5 + $0xc9c] ss:$40 sps:$4 sm:$0xff]  }
 0x4be   : > { %5610 = vmatpush1.bf16.msra.mxu1 %v7585_v23  ;;  %v7680_v23 = vld [vmem:[#allocation5 + $0xca4] ss:$40 sps:$4 sm:$0xff]  }
 0x4bf   : > { %5774 = vmatpush1.bf16.msra.mxu0 %v7588_v5  ;;  %5611 = vmatprep.subr.bf16.mxu1 %v7593_v44  ;;  %v7675_v5 = vld [vmem:[#allocation5 + $0xc98] ss:$40 sps:$4 sm:$0xff]  }
 0x4c0   : > { %5775 = vmatprep.subr.bf16.mxu0 %v7596_v21  ;;  %v7678_v44 = vld [vmem:[#allocation5 + $0xca0] ss:$40 sps:$4 sm:$0xff]   ;;  %v7683_v21 = vld [vmem:[#allocation5 + $0xcec] ss:$40 sps:$4 sm:$0xff]  }
 0x4c2   : > { %5612 = vmatpush1.bf16.msra.mxu1 %v7591_v41  ;;  %v7686_v41 = vld [vmem:[#allocation5 + $0xcf4] ss:$40 sps:$4 sm:$0xff]  }
 0x4c3   : > { %5776 = vmatpush1.bf16.msra.mxu0 %v7594_v56  ;;  %5613 = vmatprep.subr.bf16.mxu1 %v7599_v19  ;;  %v7681_v56 = vld [vmem:[#allocation5 + $0xce8] ss:$40 sps:$4 sm:$0xff]  }
 0x4c4   : > { %5777 = vmatprep.subr.bf16.mxu0 %v7602_v29  ;;  %v7684_v19 = vld [vmem:[#allocation5 + $0xcf0] ss:$40 sps:$4 sm:$0xff]   ;;  %v7689_v29 = vld [vmem:[#allocation5 + $0xd3c] ss:$40 sps:$4 sm:$0xff]  }
 0x4c6   : > { %5614 = vmatpush1.bf16.msra.mxu1 %v7597_v18  ;;  %v7692_v18 = vld [vmem:[#allocation5 + $0xd44] ss:$40 sps:$4 sm:$0xff]  }
 0x4c7   : > { %5778 = vmatpush1.bf16.msra.mxu0 %v7600_v40  ;;  %5615 = vmatprep.subr.bf16.mxu1 %v7605_v15  ;;  %v7687_v40 = vld [vmem:[#allocation5 + $0xd38] ss:$40 sps:$4 sm:$0xff]  }
 0x4c8   : > { %5779 = vmatprep.subr.bf16.mxu0 %v7608_v37  ;;  %v7690_v15 = vld [vmem:[#allocation5 + $0xd40] ss:$40 sps:$4 sm:$0xff]   ;;  %v7695_v37 = vld [vmem:[#allocation5 + $0xd8c] ss:$40 sps:$4 sm:$0xff]  }
 0x4ca   : > { %5616 = vmatpush1.bf16.msra.mxu1 %v7603_v1  ;;  %v7698_v1 = vld [vmem:[#allocation5 + $0xd94] ss:$40 sps:$4 sm:$0xff]  }
 0x4cb   : > { %5780 = vmatpush1.bf16.msra.mxu0 %v7606_v22  ;;  %5617 = vmatprep.subr.bf16.mxu1 %v7611_v57  ;;  %v7693_v22 = vld [vmem:[#allocation5 + $0xd88] ss:$40 sps:$4 sm:$0xff]  }
 0x4cc   : > { %5781 = vmatprep.subr.bf16.mxu0 %v7614_v7  ;;  %v7696_v57 = vld [vmem:[#allocation5 + $0xd90] ss:$40 sps:$4 sm:$0xff]   ;;  %v7701_v7 = vld [vmem:[#allocation5 + $0xddc] ss:$40 sps:$4 sm:$0xff]  }
 0x4ce   : > { %5618 = vmatpush1.bf16.msra.mxu1 %v7609_v2  ;;  %v7704_v2 = vld [vmem:[#allocation5 + $0xde4] ss:$40 sps:$4 sm:$0xff]  }
 0x4cf   : > { %5782 = vmatpush1.bf16.msra.mxu0 %v7612_v26  ;;  %5619 = vmatprep.subr.bf16.mxu1 %v7617_v32  ;;  %v7699_v26 = vld [vmem:[#allocation5 + $0xdd8] ss:$40 sps:$4 sm:$0xff]  }
 0x4d0   : > { %5783 = vmatprep.subr.bf16.mxu0 %v7620_v12  ;;  %v7702_v32 = vld [vmem:[#allocation5 + $0xde0] ss:$40 sps:$4 sm:$0xff]   ;;  %v7707_v12 = vld [vmem:[#allocation5 + $0xe2c] ss:$40 sps:$4 sm:$0xff]  }
 0x4d2   : > { %5620 = vmatpush1.bf16.msra.mxu1 %v7615_v35  ;;  %v7710_v35 = vld [vmem:[#allocation5 + $0xe34] ss:$40 sps:$4 sm:$0xff]  }
 0x4d3   : > { %5784 = vmatpush1.bf16.msra.mxu0 %v7618_v0  ;;  %5621 = vmatprep.subr.bf16.mxu1 %v7623_v13  ;;  %v7705_v0 = vld [vmem:[#allocation5 + $0xe28] ss:$40 sps:$4 sm:$0xff]  }
 0x4d4   : > { %5785 = vmatprep.subr.bf16.mxu0 %v7626_v38  ;;  %v7708_v13 = vld [vmem:[#allocation5 + $0xe30] ss:$40 sps:$4 sm:$0xff]   ;;  %v7713_v38 = vld [vmem:[#allocation5 + $0xe7c] ss:$40 sps:$4 sm:$0xff]  }
 0x4d6   : > { %5622 = vmatpush1.bf16.msra.mxu1 %v7621_v16  ;;  %v7716_v16 = vld [vmem:[#allocation5 + $0xe84] ss:$40 sps:$4 sm:$0xff]  }
 0x4d7   : > { %5786 = vmatpush1.bf16.msra.mxu0 %v7624_v4  ;;  %5632 = vmatprep.subr.bf16.mxu1 %v7629_v11  ;;  %v7711_v4 = vld [vmem:[#allocation5 + $0xe78] ss:$40 sps:$4 sm:$0xff]  }
 0x4d8   : > { %5796 = vmatprep.subr.bf16.mxu0 %v7632_v30  ;;  %v7714_v11 = vld [vmem:[#allocation5 + $0xe80] ss:$40 sps:$4 sm:$0xff]   ;;  %v7719_v30 = vld [vmem:[#allocation5 + $0xecc] ss:$40 sps:$4 sm:$0xff]  }
 0x4d9   : > { %5624 = vmatmul.mubr.bf16.vlgmr.msra.gmra.mrb[8].mxu1 %v9111_v47 }
 0x4da   : > { %5788 = vmatmul.mubr.bf16.vlgmr.msra.gmra.mrb[8].mxu0 %v9111_v47  ;;  %5633 = vmatpush1.bf16.msra.mxu1 %v7627_v3  ;;  %v7650_v47 = vld [vmem:[#allocation5 + $0xb14] ss:$40 sps:$4 sm:$0xff]  }
 0x4db   : > { %5664 = vmatprep.mubr.bf16.mxu1 %v9089_v45  ;;  %5797 = vmatpush1.bf16.msra.mxu0 %v7630_v10  ;;  %v7722_v3 = vld [vmem:[#allocation5 + $0xed4] ss:$40 sps:$4 sm:$0xff]   ;;  %v7717_v10 = vld [vmem:[#allocation5 + $0xec8] ss:$40 sps:$4 sm:$0xff]  }
 0x4dc   : > { %5828 = vmatprep.mubr.bf16.mxu0 %v9089_v45  ;;  %5634 = vmatprep.subr.bf16.mxu1 %v7635_v60  ;;  %v7651_v45 = vld [vmem:[#allocation5 + $0xb58] ss:$40 sps:$4 sm:$0xff]  }
 0x4dd   : > { %5798 = vmatprep.subr.bf16.mxu0 %v7638_v43  ;;  %v7720_v60 = vld [vmem:[#allocation5 + $0xed0] ss:$40 sps:$4 sm:$0xff]   ;;  %v7725_v43 = vld [vmem:[#allocation5 + $0xf1c] ss:$40 sps:$4 sm:$0xff]  }
 0x4de   : > { %5635 = vmatpush1.bf16.msra.mxu1 %v7633_v33  ;;  %v7728_v33 = vld [vmem:[#allocation5 + $0xf24] ss:$40 sps:$4 sm:$0xff]  }
 0x4df   : > { %5799 = vmatpush1.bf16.msra.mxu0 %v7636_v42  ;;  %5636 = vmatprep.subr.bf16.mxu1 %v7641_v48  ;;  %v7723_v42 = vld [vmem:[#allocation5 + $0xf18] ss:$40 sps:$4 sm:$0xff]  }
 0x4e0   : > { %5800 = vmatprep.subr.bf16.mxu0 %v7644_v62  ;;  %v7726_v48 = vld [vmem:[#allocation5 + $0xf20] ss:$40 sps:$4 sm:$0xff]   ;;  %v7731_v62 = vld [vmem:[#allocation5 + $0xf6c] ss:$40 sps:$4 sm:$0xff]  }
 0x4e2   : > { %5637 = vmatpush1.bf16.msra.mxu1 %v7639_v49  ;;  %v7734_v49 = vld [vmem:[#allocation5 + $0xf74] ss:$40 sps:$4 sm:$0xff]  }
 0x4e3   : > { %5801 = vmatpush1.bf16.msra.mxu0 %v7642_v17  ;;  %5638 = vmatprep.subr.bf16.mxu1 %v7647_v61  ;;  %v7729_v17 = vld [vmem:[#allocation5 + $0xf68] ss:$40 sps:$4 sm:$0xff]  }
 0x4e4   : > { %5802 = vmatprep.subr.bf16.mxu0 %v7650_v47  ;;  %v7732_v61 = vld [vmem:[#allocation5 + $0xf70] ss:$40 sps:$4 sm:$0xff]   ;;  %v7737_v47 = vld [vmem:[#allocation5 + $0xfbc] ss:$40 sps:$4 sm:$0xff]  }
 0x4e6   : > { %5639 = vmatpush1.bf16.msra.mxu1 %v7645_v55  ;;  %v7740_v55 = vld [vmem:[#allocation5 + $0xfc4] ss:$40 sps:$4 sm:$0xff]  }
 0x4e7   : > { %5803 = vmatpush1.bf16.msra.mxu0 %v7648_v14  ;;  %5640 = vmatprep.subr.bf16.mxu1 %v7653_v27  ;;  %v7735_v14 = vld [vmem:[#allocation5 + $0xfb8] ss:$40 sps:$4 sm:$0xff]  }
 0x4e8   : > { %5804 = vmatprep.subr.bf16.mxu0 %v7656_v52  ;;  %v7738_v27 = vld [vmem:[#allocation5 + $0xfc0] ss:$40 sps:$4 sm:$0xff]   ;;  %v7743_v52 = vld [vmem:[#allocation5 + $0x100c] ss:$40 sps:$4 sm:$0xff]  }
 0x4ea   : > { %5641 = vmatpush1.bf16.msra.mxu1 %v7651_v45  ;;  %v7741_v45 = vld [vmem:[#allocation5 + $0x1008] ss:$40 sps:$4 sm:$0xff]  }
 0x4eb   : > { %5805 = vmatpush1.bf16.msra.mxu0 %v7654_v8  ;;  %5642 = vmatprep.subr.bf16.mxu1 %v7659_v53  ;;  %v7744_v8 = vld [vmem:[#allocation5 + $0x1010] ss:$40 sps:$4 sm:$0xff]   ;;  %v7749_v53 = vld [vmem:[#allocation5 + $0x105c] ss:$40 sps:$4 sm:$0xff]  }
 0x4ec   : > { %5806 = vmatprep.subr.bf16.mxu0 %v7662_v28  ;;  %v7752_v28 = vld [vmem:[#allocation5 + $0x1064] ss:$40 sps:$4 sm:$0xff]  }
 0x4ee   : > { %5643 = vmatpush1.bf16.msra.mxu1 %v7657_v31  ;;  %v7750_v31 = vld [vmem:[#allocation5 + $0x1060] ss:$40 sps:$4 sm:$0xff]  }
 0x4ef   : > { %5807 = vmatpush1.bf16.msra.mxu0 %v7660_v51  ;;  %5644 = vmatprep.subr.bf16.mxu1 %v7665_v25  ;;  %v7755_v51 = vld [vmem:[#allocation5 + $0x10ac] ss:$40 sps:$4 sm:$0xff]  }
 0x4f0   : > { %5808 = vmatprep.subr.bf16.mxu0 %v7668_v50  ;;  %v7758_v25 = vld [vmem:[#allocation5 + $0x10b4] ss:$40 sps:$4 sm:$0xff]   ;;  %v7753_v50 = vld [vmem:[#allocation5 + $0x10a8] ss:$40 sps:$4 sm:$0xff]  }
 0x4f2   : > { %5645 = vmatpush1.bf16.msra.mxu1 %v7663_v63  ;;  %v7756_v63 = vld [vmem:[#allocation5 + $0x10b0] ss:$40 sps:$4 sm:$0xff]  }
 0x4f3   : > { %5809 = vmatpush1.bf16.msra.mxu0 %v7666_v6  ;;  %5646 = vmatprep.subr.bf16.mxu1 %v7671_v58  ;;  %v7761_v6 = vld [vmem:[#allocation5 + $0x10fc] ss:$40 sps:$4 sm:$0xff]  }
 0x4f4   : > { %5810 = vmatprep.subr.bf16.mxu0 %v7674_v20  ;;  %v7764_v20 = vld [vmem:[#allocation5 + $0x1104] ss:$40 sps:$4 sm:$0xff]  }
 0x4f6   : > { %5647 = vmatpush1.bf16.msra.mxu1 %v7669_v39 }
 0x4f7   : > { %5811 = vmatpush1.bf16.msra.mxu0 %v7672_v24  ;;  %5648 = vmatprep.subr.bf16.mxu1 %v7677_v36 }
 0x4f8   : > { %5812 = vmatprep.subr.bf16.mxu0 %v7680_v23 }
 0x4fa   : > { %5649 = vmatpush1.bf16.msra.mxu1 %v7675_v5  ;;  %v7759_v5 = vld [vmem:[#allocation5 + $0x10f8] ss:$40 sps:$4 sm:$0xff]  }
 0x4fb   : > { %5813 = vmatpush1.bf16.msra.mxu0 %v7678_v44  ;;  %5650 = vmatprep.subr.bf16.mxu1 %v7683_v21  ;;  %v5878_v44 = vmul.f32 %v9131_v46, %v9131_v46  ;;  %v7768_v46 = vld [vmem:[#allocation5 + $0x1150] ss:$40 sps:$4 sm:$0xff]  }
 0x4fc   : > { %5814 = vmatprep.subr.bf16.mxu0 %v7686_v41 }
 0x4fe   : > { %5651 = vmatpush1.bf16.msra.mxu1 %v7681_v56 }
 0x4ff   : > { %5815 = vmatpush1.bf16.msra.mxu0 %v7684_v19  ;;  %5652 = vmatprep.subr.bf16.mxu1 %v7689_v29  ;;  %v7762_v19 = vld [vmem:[#allocation5 + $0x1100] ss:$40 sps:$4 sm:$0xff]   ;;  %v7767_v29 = vld [vmem:[#allocation5 + $0x114c] ss:$40 sps:$4 sm:$0xff]  }
 0x500   : > { %5816 = vmatprep.subr.bf16.mxu0 %v7692_v18 }
 0x502   : > { %5653 = vmatpush1.bf16.msra.mxu1 %v7687_v40  ;;  %v7770_v40 = vld [vmem:[#allocation5 + $0x1154] ss:$40 sps:$4 sm:$0xff]  }
 0x503   : > { %5817 = vmatpush1.bf16.msra.mxu0 %v7690_v15  ;;  %5654 = vmatprep.subr.bf16.mxu1 %v7695_v37  ;;  %v7765_v37 = vld [vmem:[#allocation5 + $0x1148] ss:$40 sps:$4 sm:$0xff]  }
 0x504   : > { %5818 = vmatprep.subr.bf16.mxu0 %v7698_v1  ;;  %v7773_v1 = vld [vmem:[#allocation5 + $0x119c] ss:$40 sps:$4 sm:$0xff]  }
 0x506   : > { %5655 = vmatpush1.bf16.msra.mxu1 %v7693_v22  ;;  %v7776_v22 = vld [vmem:[#allocation5 + $0x11a4] ss:$40 sps:$4 sm:$0xff]  }
 0x507   : > { %5819 = vmatpush1.bf16.msra.mxu0 %v7696_v57  ;;  %5656 = vmatprep.subr.bf16.mxu1 %v7701_v7  ;;  %v7771_v57 = vld [vmem:[#allocation5 + $0x1198] ss:$40 sps:$4 sm:$0xff]  }
 0x508   : > { %5820 = vmatprep.subr.bf16.mxu0 %v7704_v2  ;;  %v7774_v7 = vld [vmem:[#allocation5 + $0x11a0] ss:$40 sps:$4 sm:$0xff]   ;;  %v7779_v2 = vld [vmem:[#allocation5 + $0x11ec] ss:$40 sps:$4 sm:$0xff]  }
 0x50a   : > { %5657 = vmatpush1.bf16.msra.mxu1 %v7699_v26  ;;  %v7782_v26 = vld [vmem:[#allocation5 + $0x11f4] ss:$40 sps:$4 sm:$0xff]  }
 0x50b   : > { %5821 = vmatpush1.bf16.msra.mxu0 %v7702_v32  ;;  %5658 = vmatprep.subr.bf16.mxu1 %v7707_v12  ;;  %v7777_v32 = vld [vmem:[#allocation5 + $0x11e8] ss:$40 sps:$4 sm:$0xff]  }
 0x50c   : > { %5822 = vmatprep.subr.bf16.mxu0 %v7710_v35  ;;  %v7780_v12 = vld [vmem:[#allocation5 + $0x11f0] ss:$40 sps:$4 sm:$0xff]   ;;  %v7785_v35 = vld [vmem:[#allocation5 + $0x123c] ss:$40 sps:$4 sm:$0xff]  }
 0x50e   : > { %5659 = vmatpush1.bf16.msra.mxu1 %v7705_v0  ;;  %v7788_v0 = vld [vmem:[#allocation5 + $0x1244] ss:$40 sps:$4 sm:$0xff]  }
 0x50f   : > { %5823 = vmatpush1.bf16.msra.mxu0 %v7708_v13  ;;  %5660 = vmatprep.subr.bf16.mxu1 %v7713_v38  ;;  %v7783_v13 = vld [vmem:[#allocation5 + $0x1238] ss:$40 sps:$4 sm:$0xff]  }
 0x510   : > { %5824 = vmatprep.subr.bf16.mxu0 %v7716_v16  ;;  %v7786_v38 = vld [vmem:[#allocation5 + $0x1240] ss:$40 sps:$4 sm:$0xff]   ;;  %v7791_v16 = vld [vmem:[#allocation5 + $0x128c] ss:$40 sps:$4 sm:$0xff]  }
 0x512   : > { %5661 = vmatpush1.bf16.msra.mxu1 %v7711_v4  ;;  %v7794_v4 = vld [vmem:[#allocation5 + $0x1294] ss:$40 sps:$4 sm:$0xff]  }
 0x513   : > { %5825 = vmatpush1.bf16.msra.mxu0 %v7714_v11  ;;  %5662 = vmatprep.subr.bf16.mxu1 %v7719_v30  ;;  %v7789_v11 = vld [vmem:[#allocation5 + $0x1288] ss:$40 sps:$4 sm:$0xff]  }
 0x514   : > { %5826 = vmatprep.subr.bf16.mxu0 %v7722_v3  ;;  %v7792_v30 = vld [vmem:[#allocation5 + $0x1290] ss:$40 sps:$4 sm:$0xff]   ;;  %v7797_v3 = vld [vmem:[#allocation5 + $0x12dc] ss:$40 sps:$4 sm:$0xff]  }
 0x516   : > { %5663 = vmatpush1.bf16.msra.mxu1 %v7717_v10  ;;  %v7800_v10 = vld [vmem:[#allocation5 + $0x12e4] ss:$40 sps:$4 sm:$0xff]  }
 0x517   : > { %5827 = vmatpush1.bf16.msra.mxu0 %v7720_v60  ;;  %5673 = vmatprep.subr.bf16.mxu1 %v7725_v43  ;;  %v7795_v60 = vld [vmem:[#allocation5 + $0x12d8] ss:$40 sps:$4 sm:$0xff]  }
 0x518   : > { %5837 = vmatprep.subr.bf16.mxu0 %v7728_v33  ;;  %v7798_v43 = vld [vmem:[#allocation5 + $0x12e0] ss:$40 sps:$4 sm:$0xff]   ;;  %v7803_v33 = vld [vmem:[#allocation5 + $0x132c] ss:$40 sps:$4 sm:$0xff]  }
 0x519   : > { %5665 = vmatmul.mubr.bf16.vlgmr.msra.gmra.mrb[8].mxu1 %v9093_v54 }
 0x51a   : > { %5829 = vmatmul.mubr.bf16.vlgmr.msra.gmra.mrb[8].mxu0 %v9093_v54  ;;  %5674 = vmatpush1.bf16.msra.mxu1 %v7723_v42  ;;  %v7746_v54 = vld [vmem:[#allocation5 + $0x1014] ss:$40 sps:$4 sm:$0xff]  }
 0x51b   : > { %5705 = vmatprep.mubr.bf16.mxu1 %v9101_v59  ;;  %5838 = vmatpush1.bf16.msra.mxu0 %v7726_v48  ;;  %v7806_v42 = vld [vmem:[#allocation5 + $0x1334] ss:$40 sps:$4 sm:$0xff]   ;;  %v7801_v48 = vld [vmem:[#allocation5 + $0x1328] ss:$40 sps:$4 sm:$0xff]  }
 0x51c   : > { %5869 = vmatprep.mubr.bf16.mxu0 %v9101_v59  ;;  %5675 = vmatprep.subr.bf16.mxu1 %v7731_v62  ;;  %v7747_v59 = vld [vmem:[#allocation5 + $0x1058] ss:$40 sps:$4 sm:$0xff]  }
 0x51d   : > { %5839 = vmatprep.subr.bf16.mxu0 %v7734_v49  ;;  %v7804_v62 = vld [vmem:[#allocation5 + $0x1330] ss:$40 sps:$4 sm:$0xff]   ;;  %v7809_v49 = vld [vmem:[#allocation5 + $0x137c] ss:$40 sps:$4 sm:$0xff]  }
 0x51e   : > { %5676 = vmatpush1.bf16.msra.mxu1 %v7729_v17  ;;  %v7812_v17 = vld [vmem:[#allocation5 + $0x1384] ss:$40 sps:$4 sm:$0xff]  }
 0x51f   : > { %5840 = vmatpush1.bf16.msra.mxu0 %v7732_v61  ;;  %5677 = vmatprep.subr.bf16.mxu1 %v7737_v47  ;;  %v7807_v61 = vld [vmem:[#allocation5 + $0x1378] ss:$40 sps:$4 sm:$0xff]  }
 0x520   : > { %5841 = vmatprep.subr.bf16.mxu0 %v7740_v55  ;;  %v7810_v47 = vld [vmem:[#allocation5 + $0x1380] ss:$40 sps:$4 sm:$0xff]   ;;  %v7815_v55 = vld [vmem:[#allocation5 + $0x13cc] ss:$40 sps:$4 sm:$0xff]  }
 0x522   : > { %5678 = vmatpush1.bf16.msra.mxu1 %v7735_v14  ;;  %v7818_v14 = vld [vmem:[#allocation5 + $0x13d4] ss:$40 sps:$4 sm:$0xff]  }
 0x523   : > { %5842 = vmatpush1.bf16.msra.mxu0 %v7738_v27  ;;  %5679 = vmatprep.subr.bf16.mxu1 %v7743_v52  ;;  %v7813_v27 = vld [vmem:[#allocation5 + $0x13c8] ss:$40 sps:$4 sm:$0xff]  }
 0x524   : > { %5843 = vmatprep.subr.bf16.mxu0 %v7746_v54  ;;  %v7816_v52 = vld [vmem:[#allocation5 + $0x13d0] ss:$40 sps:$4 sm:$0xff]  }
 0x526   : > { %5680 = vmatpush1.bf16.msra.mxu1 %v7741_v45  ;;  %v5879_v45 = vmul.f32 %v9133_v9, %v9133_v9 }
 0x527   : > { %5844 = vmatpush1.bf16.msra.mxu0 %v7744_v8  ;;  %5681 = vmatprep.subr.bf16.mxu1 %v7749_v53 }
 0x528   : > { %5845 = vmatprep.subr.bf16.mxu0 %v7752_v28 }
 0x52a   : > { %5682 = vmatpush1.bf16.msra.mxu1 %v7747_v59 }
 0x52b   : > { %5846 = vmatpush1.bf16.msra.mxu0 %v7750_v31  ;;  %5683 = vmatprep.subr.bf16.mxu1 %v7755_v51 }
 0x52c   : > { %v9151_v58 = vpop.f32.mrb[4].mxu1  ;;  %5847 = vmatprep.subr.bf16.mxu0 %v7758_v25 }
 0x52d   : > { %v9154_v39 = vpop.f32.mrb[4].mxu0  ;;  %v9156_v24 = vpop.f32.mrb[5].mxu1  ;;  %v5880_v59 = vmul.f32 %v9151_v58, %v9151_v58 }
 0x52e   : > { %v5545_v36 = vpop.f32.mrb[5].mxu0  ;;  %v5383_v23 = vpop.f32.mrb[6].mxu1  ;;  %5684 = vmatpush1.bf16.msra.mxu1 %v7753_v50  ;;  %v5881_v31 = vmul.f32 %v9156_v24, %v9156_v24  ;;  %v5882_v9 = vmul.f32 %v9154_v39, %v9154_v39 }
 0x52f   : > { %v5883_v21 = vmul.f32 %v5545_v36, %v5545_v36  ;;  %v5547_v41 = vpop.f32.mrb[6].mxu0  ;;  %5848 = vmatpush1.bf16.msra.mxu0 %v7756_v63  ;;  %v5384_v56 = vpop.f32.mrb[7].mxu1  ;;  %5685 = vmatprep.subr.bf16.mxu1 %v7761_v6 }
 0x530   : > { %v5548_v18 = vpop.f32.mrb[7].mxu0  ;;  %5849 = vmatprep.subr.bf16.mxu0 %v7764_v20 }
 0x531   : > { %v5888_v15 = vadd.f32 %v5883_v21, %v5878_v44 }
 0x532   : > { %5686 = vmatpush1.bf16.msra.mxu1 %v7759_v5 }
 0x533   : > { %5893 = vst [vmem:[%s9160_s8] sm:$0xff] %v5888_v15  ;;  %5850 = vmatpush1.bf16.msra.mxu0 %v7762_v19  ;;  %5687 = vmatprep.subr.bf16.mxu1 %v7767_v29 }
 0x534   : > { %5851 = vmatprep.subr.bf16.mxu0 %v7770_v40 }
 0x536   : > { %5688 = vmatpush1.bf16.msra.mxu1 %v7765_v37 }
 0x537   : > { %5852 = vmatpush1.bf16.msra.mxu0 %v7768_v46  ;;  %5689 = vmatprep.subr.bf16.mxu1 %v7773_v1 }
 0x538   : > { %5853 = vmatprep.subr.bf16.mxu0 %v7776_v22 }
 0x53a   : > { %5690 = vmatpush1.bf16.msra.mxu1 %v7771_v57 }
 0x53b   : > { %5854 = vmatpush1.bf16.msra.mxu0 %v7774_v7  ;;  %5691 = vmatprep.subr.bf16.mxu1 %v7779_v2 }
 0x53c   : > { %5855 = vmatprep.subr.bf16.mxu0 %v7782_v26 }
 0x53e   : > { %5692 = vmatpush1.bf16.msra.mxu1 %v7777_v32 }
 0x53f   : > { %5856 = vmatpush1.bf16.msra.mxu0 %v7780_v12  ;;  %5693 = vmatprep.subr.bf16.mxu1 %v7785_v35 }
 0x540   : > { %5857 = vmatprep.subr.bf16.mxu0 %v7788_v0 }
 0x542   : > { %5694 = vmatpush1.bf16.msra.mxu1 %v7783_v13 }
 0x543   : > { %5858 = vmatpush1.bf16.msra.mxu0 %v7786_v38  ;;  %5695 = vmatprep.subr.bf16.mxu1 %v7791_v16 }
 0x544   : > { %5859 = vmatprep.subr.bf16.mxu0 %v7794_v4 }
 0x546   : > { %5696 = vmatpush1.bf16.msra.mxu1 %v7789_v11 }
 0x547   : > { %5860 = vmatpush1.bf16.msra.mxu0 %v7792_v30  ;;  %5697 = vmatprep.subr.bf16.mxu1 %v7797_v3 }
 0x548   : > { %5861 = vmatprep.subr.bf16.mxu0 %v7800_v10 }
 0x54a   : > { %5698 = vmatpush1.bf16.msra.mxu1 %v7795_v60 }
 0x54b   : > { %5862 = vmatpush1.bf16.msra.mxu0 %v7798_v43  ;;  %5699 = vmatprep.subr.bf16.mxu1 %v7803_v33 }
 0x54c   : > { %5863 = vmatprep.subr.bf16.mxu0 %v7806_v42 }
 0x54e   : > { %5700 = vmatpush1.bf16.msra.mxu1 %v7801_v48 }
 0x54f   : > { %5864 = vmatpush1.bf16.msra.mxu0 %v7804_v62  ;;  %5701 = vmatprep.subr.bf16.mxu1 %v7809_v49 }
 0x550   : > { %5865 = vmatprep.subr.bf16.mxu0 %v7812_v17 }
 0x552   : > { %5702 = vmatpush1.bf16.msra.mxu1 %v7807_v61 }
 0x553   : > { %5866 = vmatpush1.bf16.msra.mxu0 %v7810_v47  ;;  %5703 = vmatprep.subr.bf16.mxu1 %v7815_v55 }
 0x554   : > { %5867 = vmatprep.subr.bf16.mxu0 %v7818_v14 }
 0x556   : > { %5704 = vmatpush1.bf16.msra.mxu1 %v7813_v27 }
 0x557   : > { %5868 = vmatpush1.bf16.msra.mxu0 %v7816_v52 }
 0x559   : > { %5706 = vmatmul.mubr.bf16.vlgmr.msra.gmra.mrb[8].mxu1 %v9113_v34 }
 0x55a   : > { %5870 = vmatmul.mubr.bf16.vlgmr.msra.gmra.mrb[8].mxu0 %v9113_v34 }
 0x62c   : > { %v5707_v54 = vpop.f32.mrb[8].mxu1 }
 0x62d   : > { %v5884_v8 = vmul.f32 %v5707_v54, %v5707_v54  ;;  %v5871_v53 = vpop.f32.mrb[8].mxu0  ;;  %v5709_v28 = vpop.f32.mrb[9].mxu1 }
 0x62e   : > { %v5886_v51 = vmul.f32 %v5871_v53, %v5871_v53  ;;  %v5885_v25 = vmul.f32 %v5709_v28, %v5709_v28  ;;  %v5873_v50 = vpop.f32.mrb[9].mxu0  ;;  %v5711_v34 = vpop.f32.mrb[10].mxu1 }
 0x62f   : > { %v5889_v63 = vadd.f32 %v5884_v8, %v5879_v45  ;;  %v5887_v6 = vmul.f32 %v5873_v50, %v5873_v50  ;;  %v5875_v20 = vpop.f32.mrb[10].mxu0  ;;  %v5712_v58 = vpop.f32.mrb[11].mxu1 }
 0x630   : > { %v5891_v36 = vadd.f32 %v5886_v51, %v5881_v31  ;;  %v5890_v23 = vadd.f32 %v5885_v25, %v5880_v59  ;;  %v5876_v24 = vpop.f32.mrb[11].mxu0 }
 0x631   : > { %5894 = vst [vmem:[%s9160_s8 + $0x8] sm:$0xff] %v5889_v63  ;;  %v5892_v5 = vadd.f32 %v5887_v6, %v5882_v9 }
 0x632   : > { %5896 = vst [vmem:[%s9160_s8 + $0x18] sm:$0xff] %v5891_v36  ;;  %5895 = vst [vmem:[%s9160_s8 + $0x10] sm:$0xff] %v5890_v23 }
 0x633   : > { %5897 = vst [vmem:[%s9160_s8 + $0x20] sm:$0xff] %v5892_v5 }
 0x634   : > { %7928 = shalt.err (!%p7925_p9)
}
 0x635   : > { %s7929_s30 = scalar_lea.hbm %s9179_s27, 640  ;;  %s7933_s4 = scalar_lea.hbm %s9229_s3, 1280 }
 0x636   : > { %p7930_p2 = scmp.ne.s32.totalorder %s9179_s27, %s7929_s30  ;;  %p7934_p11 = scmp.lt.u32.totalorder %s9179_s27, %s9229_s3 }
 0x637   : > { %p7935_p1 = scmp.lt.u32.totalorder %s7933_s4, %s7929_s30  ;;  %p7937_p6 = scmp.lt.u32.totalorder %s7929_s30, %s9179_s27 }
 0x638   : > { %p7931_p5 = pnand %p7930_p2, %p8110_p12 }
 0x639   : > { %p7936_p4 = por %p7935_p1, %p7934_p11 }
 0x63a   : > { %p7932_p0 = pneg %p7931_p5 }
 0x63b   : > { %p7938_p8 = por %p7937_p6, %p7936_p4 }
 0x63d   : > { %p7939_p10 = pnand %p7938_p8, %p7932_p0 }
 0x63f   : > { %7942 = shalt.err (!%p7939_p10)
}
 0x640   : > { %6798 = dma.vmem_to_hbm [thread:$0]  (%p8110_p12), %s9181_s10, 640, %s9179_s27, %s5899_s28  }
 0x641 PF: > { %s5925_s5 = sand.u32 1, %s7973_s12   ;;  %p9321_p13 = scmp.ne.s32.totalorder %s9259_s19, 0 }
 0x642   : > { %p9322_p3 = scmp.ge.s32.totalorder %s7985_s15, 2  ;;  %s5926_s18 = scalar_lea.sflag [#allocation4], %s5925_s5 }
 0x644   : > { %p6809_p7 = pnand %p9322_p3, %p9321_p13 }
 0x646   : > { %7968 = dma.done.wait (!%p6809_p7), %s5926_s18, 640  }
 0x647   : > { %7970 = vsyncadd (!%p6809_p7), %s5926_s18, 4294966656  ;;  %p17_p9 = scmp.ge.s32.totalorder %s8075_s24, 4   ;;  %s9323_s12 = smov %s7977_s13 }
 0x648   : > { %s9324_s13 = smov %s7981_s14  ;;  %s9325_s14 = smov %s8106_s17 }
 0x649   : > { %s9326_s15 = smov %s8075_s24  ;;  %19 = sbr.rel (!%p17_p9) target bundleno = 6 (0x6), region = 84 }
 0x650   :  { %5931 = vsyncpa [#allocation3], 1 }
 0x651   :  { %5933 = vsyncpa [#allocation3 + $0x1], 1 }
 0x652   :  { %5934 = vsyncpa [#allocation6], 1 }
 0x653   :  { %5935 = vsyncpa [#allocation4], 1 }
 0x654   :  { %5937 = vsyncpa [#allocation4 + $0x1], 1 }

</bundles_post_ra>
